<compile_context>
chip_gen: v5e
topology: v5e:2x2
jax: 0.10.0
libtpu: 0.0.40
codegen_flags: <defaults>
</compile_context>

<pallas_src>
import functools
import math

import jax
import jax.numpy as jnp
from jax.experimental import pallas as pl
from jax.experimental.pallas import tpu as pltpu


def _round_up(x, m):
    return (x + m - 1) // m * m


def _pick_tile(dim, candidates):
    for c in candidates:
        if dim % c == 0:
            return c
    return dim


# --------------------------------------------------------------------------- #
# Pallas tiled GEMM: bf16 MXU operands, f32 accumulator, fused bias +
# activation + optional residual add in the epilogue.
# Weights are stored pre-padded: (Kp, Np) bf16;  bias: (1, Np) f32.
# --------------------------------------------------------------------------- #
def _mm_kernel(a_ref, b_ref, bias_ref, *rest, activation, has_residual):
    if has_residual:
        res_ref, o_ref, acc_ref = rest
    else:
        res_ref = None
        o_ref, acc_ref = rest

    k = pl.program_id(2)

    @pl.when(k == 0)
    def _():
        acc_ref[...] = jnp.zeros_like(acc_ref)

    acc_ref[...] += jnp.dot(a_ref[...].astype(jnp.bfloat16), b_ref[...],
                            preferred_element_type=jnp.float32)

    @pl.when(k == pl.num_programs(2) - 1)
    def _():
        out = acc_ref[...] + bias_ref[...]
        if activation == "relu":
            out = jnp.maximum(out, 0.0)
        elif activation == "gelu":
            # TODO(synk): exact erf-GELU replaced by tanh approximation.
            out = 0.5 * out * (1.0 + jnp.tanh(
                0.7978845608028654 * (out + 0.044715 * out * out * out)))
        if has_residual:
            out = out + res_ref[...]
        o_ref[...] = out.astype(o_ref.dtype)


def matmul_bias(a, b_p, bias_p, activation=None, residual=None):
    """(M, K) @ pre-padded (Kp, Np) bf16 weight + bias, optional residual."""
    M, K = a.shape
    Kp, Np = b_p.shape
    assert Kp % 128 == 0 and Np % 128 == 0 and K <= Kp

    Mp = _round_up(M, 8)
    if Mp != M or Kp != K:
        a = jnp.pad(a, ((0, Mp - M), (0, Kp - K)))
    if residual is not None:
        assert residual.shape == (M, Np)
        if Mp != M:
            residual = jnp.pad(residual, ((0, Mp - M), (0, 0)))

    tm = _pick_tile(Mp, (256, 128))
    tn = 256 if (Np % 256 == 0 and Np >= 512) else 128
    tk = _pick_tile(Kp, (512, 384, 256, 128))

    in_specs = [
        pl.BlockSpec((tm, tk), lambda i, j, k: (i, k)),
        pl.BlockSpec((tk, tn), lambda i, j, k: (k, j)),
        pl.BlockSpec((1, tn), lambda i, j, k: (0, j)),
    ]
    operands = [a, b_p, bias_p]
    if residual is not None:
        in_specs.append(pl.BlockSpec((tm, tn), lambda i, j, k: (i, j)))
        operands.append(residual)

    out = pl.pallas_call(
        functools.partial(_mm_kernel, activation=activation,
                          has_residual=residual is not None),
        out_shape=jax.ShapeDtypeStruct((Mp, Np), jnp.float32),
        grid_spec=pltpu.PrefetchScalarGridSpec(
            num_scalar_prefetch=0,
            grid=(Mp // tm, Np // tn, Kp // tk),
            in_specs=in_specs,
            out_specs=pl.BlockSpec((tm, tn), lambda i, j, k: (i, j)),
            scratch_shapes=[pltpu.VMEM((tm, tn), jnp.float32)],
        ),
        compiler_params=pltpu.CompilerParams(
            dimension_semantics=("parallel", "parallel", "arbitrary")),
    )(*operands)
    return out[:M] if Mp != M else out


# --------------------------------------------------------------------------- #
# Pallas LayerNorm over the feature (last) axis with large row blocks.
# --------------------------------------------------------------------------- #
def _ln_kernel(x_ref, g_ref, b_ref, o_ref, *, eps):
    x = x_ref[...]
    mu = jnp.mean(x, axis=-1, keepdims=True)
    xc = x - mu
    var = jnp.mean(xc * xc, axis=-1, keepdims=True)
    y = xc * jax.lax.rsqrt(var + eps)
    o_ref[...] = y * g_ref[...] + b_ref[...]


def layer_norm(x2d, gamma, beta, eps=1e-6):
    # eps=1e-6 matches the timm/MAE ViT LayerNorm (PyTorch default is 1e-5).
    R, D = x2d.shape
    assert R % 8 == 0 and D % 128 == 0
    tr = _pick_tile(R, (512, 256, 128))
    return pl.pallas_call(
        functools.partial(_ln_kernel, eps=eps),
        out_shape=jax.ShapeDtypeStruct((R, D), jnp.float32),
        grid=(R // tr,),
        in_specs=[pl.BlockSpec((tr, D), lambda i: (i, 0)),
                  pl.BlockSpec((1, D), lambda i: (0, 0)),
                  pl.BlockSpec((1, D), lambda i: (0, 0))],
        out_specs=pl.BlockSpec((tr, D), lambda i: (i, 0)),
        compiler_params=pltpu.CompilerParams(
            dimension_semantics=("parallel",)),
    )(x2d, gamma.reshape(1, D), beta.reshape(1, D))


# --------------------------------------------------------------------------- #
# Pallas fused attention: one grid step per batch element, all heads batched
# via einsum (no explicit transposes inside the kernel), approx reciprocal.
# Input is the (B, 3, H, S, Dh) QKV tensor, read three times with different
# index maps (squeezed leading dims) so no per-q/k/v host split is needed.
# --------------------------------------------------------------------------- #
def _attn_kernel(q_ref, k_ref, v_ref, o_ref, *, scale):
    q = q_ref[...].astype(jnp.bfloat16)            # (H, S, Dh)
    k = k_ref[...].astype(jnp.bfloat16)
    v = v_ref[...].astype(jnp.bfloat16)
    s = jnp.einsum("hqd,hkd->hqk", q, k,
                   preferred_element_type=jnp.float32) * scale
    s = s - jnp.max(s, axis=-1, keepdims=True)
    p = jnp.exp(s)
    p = p * pl.reciprocal(jnp.sum(p, axis=-1, keepdims=True), approx=True)
    o = jnp.einsum("hqk,hkd->hqd", p.astype(jnp.bfloat16), v,
                   preferred_element_type=jnp.float32)
    o_ref[...] = o


def mhsa_core(qkv5, scale):
    B, _three, H, S, Dh = qkv5.shape

    def in_spec(idx):
        return pl.BlockSpec((None, None, H, S, Dh),
                            lambda b, idx=idx: (b, idx, 0, 0, 0))

    return pl.pallas_call(
        functools.partial(_attn_kernel, scale=scale),
        out_shape=jax.ShapeDtypeStruct((B, H, S, Dh), jnp.float32),
        grid=(B,),
        in_specs=[in_spec(0), in_spec(1), in_spec(2)],
        out_specs=pl.BlockSpec((None, H, S, Dh), lambda b: (b, 0, 0, 0)),
        compiler_params=pltpu.CompilerParams(
            dimension_semantics=("parallel",)),
    )(qkv5, qkv5, qkv5)


# --------------------------------------------------------------------------- #
# NHWC convolution = transpose-free im2col (JAX glue) + Pallas GEMM.
# Weight layout: (kh, kw, c) flattened -> (k*k*Cin_padded, Cout_padded), bf16.
# TODO(synk): the k*k im2col gather is still host-side XLA; folding the taps
# into the GEMM's K grid via Element index_maps would remove the k*k HBM blowup.
# --------------------------------------------------------------------------- #
def conv2d_nhwc(x, w_p, bias_p, *, k, stride, pad, activation=None):
    B, H, W, C = x.shape
    Ho = (H + 2 * pad - k) // stride + 1
    Wo = (W + 2 * pad - k) // stride + 1
    xp = jnp.pad(x, ((0, 0), (pad, pad), (pad, pad), (0, 0)))
    taps = []
    for kh in range(k):
        for kw in range(k):
            taps.append(xp[:, kh:kh + stride * Ho:stride,
                           kw:kw + stride * Wo:stride, :])
    patches = jnp.stack(taps, axis=3)                 # (B, Ho, Wo, k*k, C)
    patches = patches.reshape(B * Ho * Wo, k * k * C)
    y = matmul_bias(patches, w_p, bias_p, activation=activation)
    return y.reshape(B, Ho, Wo, -1)                   # NHWC, channel-padded


def maxpool2d_nhwc(x, k=3, stride=2, pad=1):
    # Glue op (small reduction); semantics match nn.MaxPool2d(3, 2, 1).
    return jax.lax.reduce_window(
        x, -jnp.inf, jax.lax.max,
        (1, k, k, 1), (1, stride, stride, 1),
        ((0, 0), (pad, pad), (pad, pad), (0, 0)))


# --------------------------------------------------------------------------- #
# ViT backbone: patch-embed (pure reshape + GEMM) + transformer blocks + LN.
# --------------------------------------------------------------------------- #
def vit_forward(p, x_nhwc, cfg):
    B, H, W, Cin = x_nhwc.shape
    D, heads, P = cfg["dim"], cfg["heads"], cfg["patch"]
    Dh = D // heads
    scale = 1.0 / math.sqrt(Dh)
    h, w = H // P, W // P
    S = h * w

    # Non-overlapping 16x16 patch embed: reshape only, no im2col.
    patches = x_nhwc.reshape(B, h, P, w, P, Cin).transpose(0, 1, 3, 2, 4, 5)
    patches = patches.reshape(B * S, P * P * Cin)
    tok = matmul_bias(patches, p["patch_w"], p["patch_b"]).reshape(B, S, D)
    tok = tok + p["pos"]

    for blk in p["blocks"]:
        # --- attention ---
        x2 = layer_norm(tok.reshape(B * S, D), blk["ln1_g"], blk["ln1_b"])
        qkv = matmul_bias(x2, blk["qkv_w"], blk["qkv_b"])          # (B*S, 3D)
        qkv = qkv.reshape(B, S, 3, heads, Dh).transpose(0, 2, 3, 1, 4)
        attn = mhsa_core(qkv, scale)                               # (B, H, S, Dh)
        attn = attn.transpose(0, 2, 1, 3).reshape(B * S, D)
        tok = matmul_bias(attn, blk["proj_w"], blk["proj_b"],
                          residual=tok.reshape(B * S, D)).reshape(B, S, D)
        # --- MLP ---
        x2 = layer_norm(tok.reshape(B * S, D), blk["ln2_g"], blk["ln2_b"])
        x2 = matmul_bias(x2, blk["fc1_w"], blk["fc1_b"], activation="gelu")
        tok = matmul_bias(x2, blk["fc2_w"], blk["fc2_b"],
                          residual=tok.reshape(B * S, D)).reshape(B, S, D)

    tok = layer_norm(tok.reshape(B * S, D), p["ln_f_g"], p["ln_f_b"])
    return tok.reshape(B, S, D)


# --------------------------------------------------------------------------- #
# CNN backbone (scaled-down ResNet-style, stride-16 'layer3'), NHWC throughout,
# channels kept lane-padded end-to-end (padded channels stay exactly zero).
# --------------------------------------------------------------------------- #
def cnn_forward(p, x_nhwc):
    y = conv2d_nhwc(x_nhwc, p["conv1_w"], p["conv1_b"], k=7, stride=2, pad=3,
                    activation="relu")
    y = maxpool2d_nhwc(y)
    y = conv2d_nhwc(y, p["l1_w"], p["l1_b"], k=3, stride=1, pad=1,
                    activation="relu")
    y = conv2d_nhwc(y, p["l2_w"], p["l2_b"], k=3, stride=2, pad=1,
                    activation="relu")
    y = conv2d_nhwc(y, p["l3_w"], p["l3_b"], k=3, stride=2, pad=1,
                    activation="relu")
    return {"layer3": y}     # NHWC, channel-padded


# --------------------------------------------------------------------------- #
# Fuse_Backone.forward
# --------------------------------------------------------------------------- #
def fuse_backbone_forward(params, x, cfg, output_layers=("layer3",)):
    outputs = {}
    x_nhwc = jnp.transpose(x, (0, 2, 3, 1))            # single NCHW->NHWC move
    x_v = vit_forward(params["vit"], x_nhwc, cfg)       # (B, S, C) tokens
    x_c = cnn_forward(params["cnn"], x_nhwc)            # NHWC feature maps
    B, _, C = x_v.shape
    hw = cfg["img_sz"] // 16
    x_v = x_v.transpose(0, 2, 1).reshape(B, C, hw, hw)  # permute(0,2,1).reshape
    c4 = cfg["cnn_channels"][-1]
    l3 = x_c["layer3"]
    if l3.shape[-1] != c4:
        l3 = l3[..., :c4]                               # drop channel padding
    l3 = jnp.transpose(l3, (0, 3, 1, 2))                # NHWC -> NCHW once
    outputs["layer3"] = jnp.concatenate([x_v, l3], axis=1)
    return outputs


# --------------------------------------------------------------------------- #
# Deterministic synthetic parameter init (weights stored pre-padded in bf16,
# biases pre-padded in f32; no checkpoint loading).
# --------------------------------------------------------------------------- #
def init_params(key, cfg):
    D, hid, P = cfg["dim"], cfg["mlp_hidden"], cfg["patch"]
    n_tok = (cfg["img_sz"] // P) ** 2
    keys = iter(jax.random.split(key, 64))

    def nrm(shape, s=0.02):
        return jax.random.normal(next(keys), shape, jnp.float32) * s

    def linear(K, N, s=0.02):
        Kp, Np = _round_up(K, 128), _round_up(N, 128)
        w = jnp.zeros((Kp, Np), jnp.float32).at[:K, :N].set(nrm((K, N), s))
        return w.astype(jnp.bfloat16), jnp.zeros((1, Np), jnp.float32)

    def conv_w(k, cin_true, cin_pad, cout, s=0.02):
        cout_p = _round_up(cout, 128)
        K = k * k * cin_pad
        Kp = _round_up(K, 128)
        w = jnp.zeros((k * k, cin_pad, cout_p), jnp.float32)
        w = w.at[:, :cin_true, :cout].set(nrm((k * k, cin_true, cout), s))
        w = w.reshape(K, cout_p)
        if Kp != K:
            w = jnp.pad(w, ((0, Kp - K), (0, 0)))
        return w.astype(jnp.bfloat16), jnp.zeros((1, cout_p), jnp.float32)

    patch_w, patch_b = linear(3 * P * P, D)
    vit = dict(
        patch_w=patch_w, patch_b=patch_b,
        pos=nrm((1, n_tok, D)),
        ln_f_g=jnp.ones((D,), jnp.float32),
        ln_f_b=jnp.zeros((D,), jnp.float32),
        blocks=[],
    )
    for _ in range(cfg["depth"]):
        qkv_w, qkv_b = linear(D, 3 * D)
        proj_w, proj_b = linear(D, D)
        fc1_w, fc1_b = linear(D, hid)
        fc2_w, fc2_b = linear(hid, D)
        vit["blocks"].append(dict(
            ln1_g=jnp.ones((D,), jnp.float32), ln1_b=jnp.zeros((D,), jnp.float32),
            qkv_w=qkv_w, qkv_b=qkv_b,
            proj_w=proj_w, proj_b=proj_b,
            ln2_g=jnp.ones((D,), jnp.float32), ln2_b=jnp.zeros((D,), jnp.float32),
            fc1_w=fc1_w, fc1_b=fc1_b,
            fc2_w=fc2_w, fc2_b=fc2_b,
        ))

    c1, c2, c3, c4 = cfg["cnn_channels"]
    c1p, c2p, c3p = _round_up(c1, 128), _round_up(c2, 128), _round_up(c3, 128)
    conv1_w, conv1_b = conv_w(7, 3, 3, c1)
    l1_w, l1_b = conv_w(3, c1, c1p, c2)
    l2_w, l2_b = conv_w(3, c2, c2p, c3)
    l3_w, l3_b = conv_w(3, c3, c3p, c4)
    cnn = dict(conv1_w=conv1_w, conv1_b=conv1_b,
               l1_w=l1_w, l1_b=l1_b,
               l2_w=l2_w, l2_b=l2_b,
               l3_w=l3_w, l3_b=l3_b)
    return dict(vit=vit, cnn=cnn)


if __name__ == "__main__":
    # Small shapes: img_sz=64 (multiple of 16), batch=2, 3 input channels.
    cfg = dict(img_sz=64, patch=16, dim=128, depth=2, heads=4, mlp_hidden=256,
               cnn_channels=(32, 64, 128, 128))
    key = jax.random.PRNGKey(0)
    kp, kx = jax.random.split(key)
    params = init_params(kp, cfg)
    x = jax.random.normal(kx, (2, 3, cfg["img_sz"], cfg["img_sz"]), jnp.float32)

    fwd = jax.jit(functools.partial(fuse_backbone_forward, cfg=cfg))
    out = fwd(params, x)
    jax.block_until_ready(out)

    hw = cfg["img_sz"] // 16
    expected = (2, cfg["dim"] + cfg["cnn_channels"][-1], hw, hw)
    assert out["layer3"].shape == expected, (out["layer3"].shape, expected)
    assert bool(jnp.all(jnp.isfinite(out["layer3"])))
    print("KERNEL_OK")
</pallas_src>

<mosaic_0001>
module attributes {stable_mosaic.version = 11 : i64} {
  func.func @_mm_kernel(%arg0: i32, %arg1: i32, %arg2: i32, %arg3: memref<256x256xf32, #tpu.memory_space<vmem>>, %arg4: memref<256x128xbf16, #tpu.memory_space<vmem>>, %arg5: memref<1x128xf32, #tpu.memory_space<vmem>>, %arg6: memref<256x128xf32, #tpu.memory_space<vmem>>, %arg7: memref<256x128xf32, #tpu.memory_space<vmem>>) attributes {dimension_semantics = [#tpu.dimension_semantics<parallel>, #tpu.dimension_semantics<parallel>, #tpu.dimension_semantics<arbitrary>], iteration_bounds = array<i64: 8, 1, 1>, scalar_prefetch = 0 : i64, scratch_operands = 1 : i64, tpu.core_type = #tpu.core_type<tc>, window_params = [{transform_indices = @transform_0, window_bounds = array<i64: 256, 256>}, {transform_indices = @transform_1, window_bounds = array<i64: 256, 128>}, {transform_indices = @transform_2, window_bounds = array<i64: 1, 128>}, {transform_indices = @transform_3, window_bounds = array<i64: 256, 128>}]} {
    %c0_i32 = arith.constant 0 : i32
    %0 = arith.cmpi eq, %arg2, %c0_i32 : i32
    %1 = arith.extui %0 : i1 to i32
    %c0_i32_0 = arith.constant 0 : i32
    %2 = arith.cmpi ne, %1, %c0_i32_0 : i32
    scf.if %2 {
      %cst_10 = arith.constant 0.000000e+00 : f32
      %13 = vector.broadcast %cst_10 : f32 to vector<256x128xf32>
      %c0_11 = arith.constant 0 : index
      %c0_12 = arith.constant 0 : index
      %14 = vector.load %arg7[%c0_11, %c0_12] : memref<256x128xf32, #tpu.memory_space<vmem>>, vector<256x128xf32>
      tpu.vector_store %arg7[%c0_11, %c0_12], %13 {strides = array<i32>} : memref<256x128xf32, #tpu.memory_space<vmem>>, vector<256x128xf32>,
    } else {
    }
    %c0 = arith.constant 0 : index
    %c0_1 = arith.constant 0 : index
    %3 = vector.load %arg7[%c0, %c0_1] : memref<256x128xf32, #tpu.memory_space<vmem>>, vector<256x128xf32>
    %c0_2 = arith.constant 0 : index
    %c0_3 = arith.constant 0 : index
    %4 = vector.load %arg3[%c0_2, %c0_3] : memref<256x256xf32, #tpu.memory_space<vmem>>, vector<256x256xf32>
    %5 = arith.truncf %4 : vector<256x256xf32> to vector<256x256xbf16>
    %c0_4 = arith.constant 0 : index
    %c0_5 = arith.constant 0 : index
    %6 = vector.load %arg4[%c0_4, %c0_5] : memref<256x128xbf16, #tpu.memory_space<vmem>>, vector<256x128xbf16>
    %cst = arith.constant dense<0.000000e+00> : vector<256x128xf32>
    %7 = tpu.matmul %5, %6, %cst {dimension_numbers = #tpu.dot_dimension_numbers<[1], [0], [0], [1], [0, 0, 1, 1], [], []>} : vector<256x256xbf16>, vector<256x128xbf16>, vector<256x128xf32> -> vector<256x128xf32>
    %8 = arith.addf %3, %7 : vector<256x128xf32>
    %c0_6 = arith.constant 0 : index
    %c0_7 = arith.constant 0 : index
    %9 = vector.load %arg7[%c0_6, %c0_7] : memref<256x128xf32, #tpu.memory_space<vmem>>, vector<256x128xf32>
    tpu.vector_store %arg7[%c0_6, %c0_7], %8 {strides = array<i32>} : memref<256x128xf32, #tpu.memory_space<vmem>>, vector<256x128xf32>,
    %c0_i32_8 = arith.constant 0 : i32
    %10 = arith.cmpi eq, %arg2, %c0_i32_8 : i32
    %11 = arith.extui %10 : i1 to i32
    %c0_i32_9 = arith.constant 0 : i32
    %12 = arith.cmpi ne, %11, %c0_i32_9 : i32
    scf.if %12 {
      %c0_10 = arith.constant 0 : index
      %c0_11 = arith.constant 0 : index
      %13 = vector.load %arg7[%c0_10, %c0_11] : memref<256x128xf32, #tpu.memory_space<vmem>>, vector<256x128xf32>
      %c0_12 = arith.constant 0 : index
      %c0_13 = arith.constant 0 : index
      %14 = vector.load %arg5[%c0_12, %c0_13] : memref<1x128xf32, #tpu.memory_space<vmem>>, vector<1x128xf32>
      %15 = vector.broadcast %14 : vector<1x128xf32> to vector<256x128xf32>
      %16 = arith.addf %13, %15 : vector<256x128xf32>
      %cst_14 = arith.constant 0.000000e+00 : f32
      %17 = vector.broadcast %cst_14 : f32 to vector<256x128xf32>
      %18 = arith.maximumf %16, %17 : vector<256x128xf32>
      %c0_15 = arith.constant 0 : index
      %c0_16 = arith.constant 0 : index
      %19 = vector.load %arg6[%c0_15, %c0_16] : memref<256x128xf32, #tpu.memory_space<vmem>>, vector<256x128xf32>
      tpu.vector_store %arg6[%c0_15, %c0_16], %18 {strides = array<i32>} : memref<256x128xf32, #tpu.memory_space<vmem>>, vector<256x128xf32>,
    } else {
    }
    return
  }
  func.func @transform_0(%arg0: i32, %arg1: i32, %arg2: i32) -> (i32, i32) {
    %c0_i32 = arith.constant 0 : i32
    return %arg0, %arg2 : i32, i32
  }
  func.func @transform_1(%arg0: i32, %arg1: i32, %arg2: i32) -> (i32, i32) {
    %c0_i32 = arith.constant 0 : i32
    return %arg2, %arg1 : i32, i32
  }
  func.func @transform_2(%arg0: i32, %arg1: i32, %arg2: i32) -> (i32, i32) {
    %c0_i32 = arith.constant 0 : i32
    %c0_i32_0 = arith.constant 0 : i32
    return %c0_i32, %arg1 : i32, i32
  }
  func.func @transform_3(%arg0: i32, %arg1: i32, %arg2: i32) -> (i32, i32) {
    %c0_i32 = arith.constant 0 : i32
    return %arg0, %arg1 : i32, i32
  }
}

module attributes {stable_mosaic.version = 11 : i64} {
  func.func @_mm_kernel(%arg0: i32, %arg1: i32, %arg2: i32, %arg3: memref<256x384xf32, #tpu.memory_space<vmem>>, %arg4: memref<384x128xbf16, #tpu.memory_space<vmem>>, %arg5: memref<1x128xf32, #tpu.memory_space<vmem>>, %arg6: memref<256x128xf32, #tpu.memory_space<vmem>>, %arg7: memref<256x128xf32, #tpu.memory_space<vmem>>) attributes {dimension_semantics = [#tpu.dimension_semantics<parallel>, #tpu.dimension_semantics<parallel>, #tpu.dimension_semantics<arbitrary>], iteration_bounds = array<i64: 2, 1, 3>, scalar_prefetch = 0 : i64, scratch_operands = 1 : i64, tpu.core_type = #tpu.core_type<tc>, window_params = [{transform_indices = @transform_0, window_bounds = array<i64: 256, 384>}, {transform_indices = @transform_1, window_bounds = array<i64: 384, 128>}, {transform_indices = @transform_2, window_bounds = array<i64: 1, 128>}, {transform_indices = @transform_3, window_bounds = array<i64: 256, 128>}]} {
    %c0_i32 = arith.constant 0 : i32
    %0 = arith.cmpi eq, %arg2, %c0_i32 : i32
    %1 = arith.extui %0 : i1 to i32
    %c0_i32_0 = arith.constant 0 : i32
    %2 = arith.cmpi ne, %1, %c0_i32_0 : i32
    scf.if %2 {
      %cst_9 = arith.constant 0.000000e+00 : f32
      %13 = vector.broadcast %cst_9 : f32 to vector<256x128xf32>
      %c0_10 = arith.constant 0 : index
      %c0_11 = arith.constant 0 : index
      %14 = vector.load %arg7[%c0_10, %c0_11] : memref<256x128xf32, #tpu.memory_space<vmem>>, vector<256x128xf32>
      tpu.vector_store %arg7[%c0_10, %c0_11], %13 {strides = array<i32>} : memref<256x128xf32, #tpu.memory_space<vmem>>, vector<256x128xf32>,
    } else {
    }
    %c0 = arith.constant 0 : index
    %c0_1 = arith.constant 0 : index
    %3 = vector.load %arg7[%c0, %c0_1] : memref<256x128xf32, #tpu.memory_space<vmem>>, vector<256x128xf32>
    %c0_2 = arith.constant 0 : index
    %c0_3 = arith.constant 0 : index
    %4 = vector.load %arg3[%c0_2, %c0_3] : memref<256x384xf32, #tpu.memory_space<vmem>>, vector<256x384xf32>
    %5 = arith.truncf %4 : vector<256x384xf32> to vector<256x384xbf16>
    %c0_4 = arith.constant 0 : index
    %c0_5 = arith.constant 0 : index
    %6 = vector.load %arg4[%c0_4, %c0_5] : memref<384x128xbf16, #tpu.memory_space<vmem>>, vector<384x128xbf16>
    %cst = arith.constant dense<0.000000e+00> : vector<256x128xf32>
    %7 = tpu.matmul %5, %6, %cst {dimension_numbers = #tpu.dot_dimension_numbers<[1], [0], [0], [1], [0, 0, 1, 1], [], []>} : vector<256x384xbf16>, vector<384x128xbf16>, vector<256x128xf32> -> vector<256x128xf32>
    %8 = arith.addf %3, %7 : vector<256x128xf32>
    %c0_6 = arith.constant 0 : index
    %c0_7 = arith.constant 0 : index
    %9 = vector.load %arg7[%c0_6, %c0_7] : memref<256x128xf32, #tpu.memory_space<vmem>>, vector<256x128xf32>
    tpu.vector_store %arg7[%c0_6, %c0_7], %8 {strides = array<i32>} : memref<256x128xf32, #tpu.memory_space<vmem>>, vector<256x128xf32>,
    %c2_i32 = arith.constant 2 : i32
    %10 = arith.cmpi eq, %arg2, %c2_i32 : i32
    %11 = arith.extui %10 : i1 to i32
    %c0_i32_8 = arith.constant 0 : i32
    %12 = arith.cmpi ne, %11, %c0_i32_8 : i32
    scf.if %12 {
      %c0_9 = arith.constant 0 : index
      %c0_10 = arith.constant 0 : index
      %13 = vector.load %arg7[%c0_9, %c0_10] : memref<256x128xf32, #tpu.memory_space<vmem>>, vector<256x128xf32>
      %c0_11 = arith.constant 0 : index
      %c0_12 = arith.constant 0 : index
      %14 = vector.load %arg5[%c0_11, %c0_12] : memref<1x128xf32, #tpu.memory_space<vmem>>, vector<1x128xf32>
      %15 = vector.broadcast %14 : vector<1x128xf32> to vector<256x128xf32>
      %16 = arith.addf %13, %15 : vector<256x128xf32>
      %cst_13 = arith.constant 0.000000e+00 : f32
      %17 = vector.broadcast %cst_13 : f32 to vector<256x128xf32>
      %18 = arith.maximumf %16, %17 : vector<256x128xf32>
      %c0_14 = arith.constant 0 : index
      %c0_15 = arith.constant 0 : index
      %19 = vector.load %arg6[%c0_14, %c0_15] : memref<256x128xf32, #tpu.memory_space<vmem>>, vector<256x128xf32>
      tpu.vector_store %arg6[%c0_14, %c0_15], %18 {strides = array<i32>} : memref<256x128xf32, #tpu.memory_space<vmem>>, vector<256x128xf32>,
    } else {
    }
    return
  }
  func.func @transform_0(%arg0: i32, %arg1: i32, %arg2: i32) -> (i32, i32) {
    %c0_i32 = arith.constant 0 : i32
    return %arg0, %arg2 : i32, i32
  }
  func.func @transform_1(%arg0: i32, %arg1: i32, %arg2: i32) -> (i32, i32) {
    %c0_i32 = arith.constant 0 : i32
    return %arg2, %arg1 : i32, i32
  }
  func.func @transform_2(%arg0: i32, %arg1: i32, %arg2: i32) -> (i32, i32) {
    %c0_i32 = arith.constant 0 : i32
    %c0_i32_0 = arith.constant 0 : i32
    return %c0_i32, %arg1 : i32, i32
  }
  func.func @transform_3(%arg0: i32, %arg1: i32, %arg2: i32) -> (i32, i32) {
    %c0_i32 = arith.constant 0 : i32
    return %arg0, %arg1 : i32, i32
  }
}

module attributes {stable_mosaic.version = 11 : i64} {
  func.func @_mm_kernel(%arg0: i32, %arg1: i32, %arg2: i32, %arg3: memref<128x384xf32, #tpu.memory_space<vmem>>, %arg4: memref<384x128xbf16, #tpu.memory_space<vmem>>, %arg5: memref<1x128xf32, #tpu.memory_space<vmem>>, %arg6: memref<128x128xf32, #tpu.memory_space<vmem>>, %arg7: memref<128x128xf32, #tpu.memory_space<vmem>>) attributes {dimension_semantics = [#tpu.dimension_semantics<parallel>, #tpu.dimension_semantics<parallel>, #tpu.dimension_semantics<arbitrary>], iteration_bounds = array<i64: 1, 1, 3>, scalar_prefetch = 0 : i64, scratch_operands = 1 : i64, tpu.core_type = #tpu.core_type<tc>, window_params = [{transform_indices = @transform_0, window_bounds = array<i64: 128, 384>}, {transform_indices = @transform_1, window_bounds = array<i64: 384, 128>}, {transform_indices = @transform_2, window_bounds = array<i64: 1, 128>}, {transform_indices = @transform_3, window_bounds = array<i64: 128, 128>}]} {
    %c0_i32 = arith.constant 0 : i32
    %0 = arith.cmpi eq, %arg2, %c0_i32 : i32
    %1 = arith.extui %0 : i1 to i32
    %c0_i32_0 = arith.constant 0 : i32
    %2 = arith.cmpi ne, %1, %c0_i32_0 : i32
    scf.if %2 {
      %cst_9 = arith.constant 0.000000e+00 : f32
      %13 = vector.broadcast %cst_9 : f32 to vector<128x128xf32>
      %c0_10 = arith.constant 0 : index
      %c0_11 = arith.constant 0 : index
      %14 = vector.load %arg7[%c0_10, %c0_11] : memref<128x128xf32, #tpu.memory_space<vmem>>, vector<128x128xf32>
      tpu.vector_store %arg7[%c0_10, %c0_11], %13 {strides = array<i32>} : memref<128x128xf32, #tpu.memory_space<vmem>>, vector<128x128xf32>,
    } else {
    }
    %c0 = arith.constant 0 : index
    %c0_1 = arith.constant 0 : index
    %3 = vector.load %arg7[%c0, %c0_1] : memref<128x128xf32, #tpu.memory_space<vmem>>, vector<128x128xf32>
    %c0_2 = arith.constant 0 : index
    %c0_3 = arith.constant 0 : index
    %4 = vector.load %arg3[%c0_2, %c0_3] : memref<128x384xf32, #tpu.memory_space<vmem>>, vector<128x384xf32>
    %5 = arith.truncf %4 : vector<128x384xf32> to vector<128x384xbf16>
    %c0_4 = arith.constant 0 : index
    %c0_5 = arith.constant 0 : index
    %6 = vector.load %arg4[%c0_4, %c0_5] : memref<384x128xbf16, #tpu.memory_space<vmem>>, vector<384x128xbf16>
    %cst = arith.constant dense<0.000000e+00> : vector<128x128xf32>
    %7 = tpu.matmul %5, %6, %cst {dimension_numbers = #tpu.dot_dimension_numbers<[1], [0], [0], [1], [0, 0, 1, 1], [], []>} : vector<128x384xbf16>, vector<384x128xbf16>, vector<128x128xf32> -> vector<128x128xf32>
    %8 = arith.addf %3, %7 : vector<128x128xf32>
    %c0_6 = arith.constant 0 : index
    %c0_7 = arith.constant 0 : index
    %9 = vector.load %arg7[%c0_6, %c0_7] : memref<128x128xf32, #tpu.memory_space<vmem>>, vector<128x128xf32>
    tpu.vector_store %arg7[%c0_6, %c0_7], %8 {strides = array<i32>} : memref<128x128xf32, #tpu.memory_space<vmem>>, vector<128x128xf32>,
    %c2_i32 = arith.constant 2 : i32
    %10 = arith.cmpi eq, %arg2, %c2_i32 : i32
    %11 = arith.extui %10 : i1 to i32
    %c0_i32_8 = arith.constant 0 : i32
    %12 = arith.cmpi ne, %11, %c0_i32_8 : i32
    scf.if %12 {
      %c0_9 = arith.constant 0 : index
      %c0_10 = arith.constant 0 : index
      %13 = vector.load %arg7[%c0_9, %c0_10] : memref<128x128xf32, #tpu.memory_space<vmem>>, vector<128x128xf32>
      %c0_11 = arith.constant 0 : index
      %c0_12 = arith.constant 0 : index
      %14 = vector.load %arg5[%c0_11, %c0_12] : memref<1x128xf32, #tpu.memory_space<vmem>>, vector<1x128xf32>
      %15 = vector.broadcast %14 : vector<1x128xf32> to vector<128x128xf32>
      %16 = arith.addf %13, %15 : vector<128x128xf32>
      %cst_13 = arith.constant 0.000000e+00 : f32
      %17 = vector.broadcast %cst_13 : f32 to vector<128x128xf32>
      %18 = arith.maximumf %16, %17 : vector<128x128xf32>
      %c0_14 = arith.constant 0 : index
      %c0_15 = arith.constant 0 : index
      %19 = vector.load %arg6[%c0_14, %c0_15] : memref<128x128xf32, #tpu.memory_space<vmem>>, vector<128x128xf32>
      tpu.vector_store %arg6[%c0_14, %c0_15], %18 {strides = array<i32>} : memref<128x128xf32, #tpu.memory_space<vmem>>, vector<128x128xf32>,
    } else {
    }
    return
  }
  func.func @transform_0(%arg0: i32, %arg1: i32, %arg2: i32) -> (i32, i32) {
    %c0_i32 = arith.constant 0 : i32
    return %arg0, %arg2 : i32, i32
  }
  func.func @transform_1(%arg0: i32, %arg1: i32, %arg2: i32) -> (i32, i32) {
    %c0_i32 = arith.constant 0 : i32
    return %arg2, %arg1 : i32, i32
  }
  func.func @transform_2(%arg0: i32, %arg1: i32, %arg2: i32) -> (i32, i32) {
    %c0_i32 = arith.constant 0 : i32
    %c0_i32_0 = arith.constant 0 : i32
    return %c0_i32, %arg1 : i32, i32
  }
  func.func @transform_3(%arg0: i32, %arg1: i32, %arg2: i32) -> (i32, i32) {
    %c0_i32 = arith.constant 0 : i32
    return %arg0, %arg1 : i32, i32
  }
}

module attributes {stable_mosaic.version = 11 : i64} {
  func.func @_mm_kernel(%arg0: i32, %arg1: i32, %arg2: i32, %arg3: memref<32x384xf32, #tpu.memory_space<vmem>>, %arg4: memref<384x128xbf16, #tpu.memory_space<vmem>>, %arg5: memref<1x128xf32, #tpu.memory_space<vmem>>, %arg6: memref<32x128xf32, #tpu.memory_space<vmem>>, %arg7: memref<32x128xf32, #tpu.memory_space<vmem>>) attributes {dimension_semantics = [#tpu.dimension_semantics<parallel>, #tpu.dimension_semantics<parallel>, #tpu.dimension_semantics<arbitrary>], iteration_bounds = array<i64: 1, 1, 3>, scalar_prefetch = 0 : i64, scratch_operands = 1 : i64, tpu.core_type = #tpu.core_type<tc>, window_params = [{transform_indices = @transform_0, window_bounds = array<i64: 32, 384>}, {transform_indices = @transform_1, window_bounds = array<i64: 384, 128>}, {transform_indices = @transform_2, window_bounds = array<i64: 1, 128>}, {transform_indices = @transform_3, window_bounds = array<i64: 32, 128>}]} {
    %c0_i32 = arith.constant 0 : i32
    %0 = arith.cmpi eq, %arg2, %c0_i32 : i32
    %1 = arith.extui %0 : i1 to i32
    %c0_i32_0 = arith.constant 0 : i32
    %2 = arith.cmpi ne, %1, %c0_i32_0 : i32
    scf.if %2 {
      %cst_9 = arith.constant 0.000000e+00 : f32
      %13 = vector.broadcast %cst_9 : f32 to vector<32x128xf32>
      %c0_10 = arith.constant 0 : index
      %c0_11 = arith.constant 0 : index
      %14 = vector.load %arg7[%c0_10, %c0_11] : memref<32x128xf32, #tpu.memory_space<vmem>>, vector<32x128xf32>
      tpu.vector_store %arg7[%c0_10, %c0_11], %13 {strides = array<i32>} : memref<32x128xf32, #tpu.memory_space<vmem>>, vector<32x128xf32>,
    } else {
    }
    %c0 = arith.constant 0 : index
    %c0_1 = arith.constant 0 : index
    %3 = vector.load %arg7[%c0, %c0_1] : memref<32x128xf32, #tpu.memory_space<vmem>>, vector<32x128xf32>
    %c0_2 = arith.constant 0 : index
    %c0_3 = arith.constant 0 : index
    %4 = vector.load %arg3[%c0_2, %c0_3] : memref<32x384xf32, #tpu.memory_space<vmem>>, vector<32x384xf32>
    %5 = arith.truncf %4 : vector<32x384xf32> to vector<32x384xbf16>
    %c0_4 = arith.constant 0 : index
    %c0_5 = arith.constant 0 : index
    %6 = vector.load %arg4[%c0_4, %c0_5] : memref<384x128xbf16, #tpu.memory_space<vmem>>, vector<384x128xbf16>
    %cst = arith.constant dense<0.000000e+00> : vector<32x128xf32>
    %7 = tpu.matmul %5, %6, %cst {dimension_numbers = #tpu.dot_dimension_numbers<[1], [0], [0], [1], [0, 0, 1, 1], [], []>} : vector<32x384xbf16>, vector<384x128xbf16>, vector<32x128xf32> -> vector<32x128xf32>
    %8 = arith.addf %3, %7 : vector<32x128xf32>
    %c0_6 = arith.constant 0 : index
    %c0_7 = arith.constant 0 : index
    %9 = vector.load %arg7[%c0_6, %c0_7] : memref<32x128xf32, #tpu.memory_space<vmem>>, vector<32x128xf32>
    tpu.vector_store %arg7[%c0_6, %c0_7], %8 {strides = array<i32>} : memref<32x128xf32, #tpu.memory_space<vmem>>, vector<32x128xf32>,
    %c2_i32 = arith.constant 2 : i32
    %10 = arith.cmpi eq, %arg2, %c2_i32 : i32
    %11 = arith.extui %10 : i1 to i32
    %c0_i32_8 = arith.constant 0 : i32
    %12 = arith.cmpi ne, %11, %c0_i32_8 : i32
    scf.if %12 {
      %c0_9 = arith.constant 0 : index
      %c0_10 = arith.constant 0 : index
      %13 = vector.load %arg7[%c0_9, %c0_10] : memref<32x128xf32, #tpu.memory_space<vmem>>, vector<32x128xf32>
      %c0_11 = arith.constant 0 : index
      %c0_12 = arith.constant 0 : index
      %14 = vector.load %arg5[%c0_11, %c0_12] : memref<1x128xf32, #tpu.memory_space<vmem>>, vector<1x128xf32>
      %15 = vector.broadcast %14 : vector<1x128xf32> to vector<32x128xf32>
      %16 = arith.addf %13, %15 : vector<32x128xf32>
      %cst_13 = arith.constant 0.000000e+00 : f32
      %17 = vector.broadcast %cst_13 : f32 to vector<32x128xf32>
      %18 = arith.maximumf %16, %17 : vector<32x128xf32>
      %c0_14 = arith.constant 0 : index
      %c0_15 = arith.constant 0 : index
      %19 = vector.load %arg6[%c0_14, %c0_15] : memref<32x128xf32, #tpu.memory_space<vmem>>, vector<32x128xf32>
      tpu.vector_store %arg6[%c0_14, %c0_15], %18 {strides = array<i32>} : memref<32x128xf32, #tpu.memory_space<vmem>>, vector<32x128xf32>,
    } else {
    }
    return
  }
  func.func @transform_0(%arg0: i32, %arg1: i32, %arg2: i32) -> (i32, i32) {
    %c0_i32 = arith.constant 0 : i32
    return %arg0, %arg2 : i32, i32
  }
  func.func @transform_1(%arg0: i32, %arg1: i32, %arg2: i32) -> (i32, i32) {
    %c0_i32 = arith.constant 0 : i32
    return %arg2, %arg1 : i32, i32
  }
  func.func @transform_2(%arg0: i32, %arg1: i32, %arg2: i32) -> (i32, i32) {
    %c0_i32 = arith.constant 0 : i32
    %c0_i32_0 = arith.constant 0 : i32
    return %c0_i32, %arg1 : i32, i32
  }
  func.func @transform_3(%arg0: i32, %arg1: i32, %arg2: i32) -> (i32, i32) {
    %c0_i32 = arith.constant 0 : i32
    return %arg0, %arg1 : i32, i32
  }
}

module attributes {stable_mosaic.version = 11 : i64} {
  func.func @_mm_kernel(%arg0: i32, %arg1: i32, %arg2: i32, %arg3: memref<32x384xf32, #tpu.memory_space<vmem>>, %arg4: memref<384x128xbf16, #tpu.memory_space<vmem>>, %arg5: memref<1x128xf32, #tpu.memory_space<vmem>>, %arg6: memref<32x128xf32, #tpu.memory_space<vmem>>, %arg7: memref<32x128xf32, #tpu.memory_space<vmem>>) attributes {dimension_semantics = [#tpu.dimension_semantics<parallel>, #tpu.dimension_semantics<parallel>, #tpu.dimension_semantics<arbitrary>], iteration_bounds = array<i64: 1, 1, 2>, scalar_prefetch = 0 : i64, scratch_operands = 1 : i64, tpu.core_type = #tpu.core_type<tc>, window_params = [{transform_indices = @transform_0, window_bounds = array<i64: 32, 384>}, {transform_indices = @transform_1, window_bounds = array<i64: 384, 128>}, {transform_indices = @transform_2, window_bounds = array<i64: 1, 128>}, {transform_indices = @transform_3, window_bounds = array<i64: 32, 128>}]} {
    %c0_i32 = arith.constant 0 : i32
    %0 = arith.cmpi eq, %arg2, %c0_i32 : i32
    %1 = arith.extui %0 : i1 to i32
    %c0_i32_0 = arith.constant 0 : i32
    %2 = arith.cmpi ne, %1, %c0_i32_0 : i32
    scf.if %2 {
      %cst_9 = arith.constant 0.000000e+00 : f32
      %13 = vector.broadcast %cst_9 : f32 to vector<32x128xf32>
      %c0_10 = arith.constant 0 : index
      %c0_11 = arith.constant 0 : index
      %14 = vector.load %arg7[%c0_10, %c0_11] : memref<32x128xf32, #tpu.memory_space<vmem>>, vector<32x128xf32>
      tpu.vector_store %arg7[%c0_10, %c0_11], %13 {strides = array<i32>} : memref<32x128xf32, #tpu.memory_space<vmem>>, vector<32x128xf32>,
    } else {
    }
    %c0 = arith.constant 0 : index
    %c0_1 = arith.constant 0 : index
    %3 = vector.load %arg7[%c0, %c0_1] : memref<32x128xf32, #tpu.memory_space<vmem>>, vector<32x128xf32>
    %c0_2 = arith.constant 0 : index
    %c0_3 = arith.constant 0 : index
    %4 = vector.load %arg3[%c0_2, %c0_3] : memref<32x384xf32, #tpu.memory_space<vmem>>, vector<32x384xf32>
    %5 = arith.truncf %4 : vector<32x384xf32> to vector<32x384xbf16>
    %c0_4 = arith.constant 0 : index
    %c0_5 = arith.constant 0 : index
    %6 = vector.load %arg4[%c0_4, %c0_5] : memref<384x128xbf16, #tpu.memory_space<vmem>>, vector<384x128xbf16>
    %cst = arith.constant dense<0.000000e+00> : vector<32x128xf32>
    %7 = tpu.matmul %5, %6, %cst {dimension_numbers = #tpu.dot_dimension_numbers<[1], [0], [0], [1], [0, 0, 1, 1], [], []>} : vector<32x384xbf16>, vector<384x128xbf16>, vector<32x128xf32> -> vector<32x128xf32>
    %8 = arith.addf %3, %7 : vector<32x128xf32>
    %c0_6 = arith.constant 0 : index
    %c0_7 = arith.constant 0 : index
    %9 = vector.load %arg7[%c0_6, %c0_7] : memref<32x128xf32, #tpu.memory_space<vmem>>, vector<32x128xf32>
    tpu.vector_store %arg7[%c0_6, %c0_7], %8 {strides = array<i32>} : memref<32x128xf32, #tpu.memory_space<vmem>>, vector<32x128xf32>,
    %c1_i32 = arith.constant 1 : i32
    %10 = arith.cmpi eq, %arg2, %c1_i32 : i32
    %11 = arith.extui %10 : i1 to i32
    %c0_i32_8 = arith.constant 0 : i32
    %12 = arith.cmpi ne, %11, %c0_i32_8 : i32
    scf.if %12 {
      %c0_9 = arith.constant 0 : index
      %c0_10 = arith.constant 0 : index
      %13 = vector.load %arg7[%c0_9, %c0_10] : memref<32x128xf32, #tpu.memory_space<vmem>>, vector<32x128xf32>
      %c0_11 = arith.constant 0 : index
      %c0_12 = arith.constant 0 : index
      %14 = vector.load %arg5[%c0_11, %c0_12] : memref<1x128xf32, #tpu.memory_space<vmem>>, vector<1x128xf32>
      %15 = vector.broadcast %14 : vector<1x128xf32> to vector<32x128xf32>
      %16 = arith.addf %13, %15 : vector<32x128xf32>
      %c0_13 = arith.constant 0 : index
      %c0_14 = arith.constant 0 : index
      %17 = vector.load %arg6[%c0_13, %c0_14] : memref<32x128xf32, #tpu.memory_space<vmem>>, vector<32x128xf32>
      tpu.vector_store %arg6[%c0_13, %c0_14], %16 {strides = array<i32>} : memref<32x128xf32, #tpu.memory_space<vmem>>, vector<32x128xf32>,
    } else {
    }
    return
  }
  func.func @transform_0(%arg0: i32, %arg1: i32, %arg2: i32) -> (i32, i32) {
    %c0_i32 = arith.constant 0 : i32
    return %arg0, %arg2 : i32, i32
  }
  func.func @transform_1(%arg0: i32, %arg1: i32, %arg2: i32) -> (i32, i32) {
    %c0_i32 = arith.constant 0 : i32
    return %arg2, %arg1 : i32, i32
  }
  func.func @transform_2(%arg0: i32, %arg1: i32, %arg2: i32) -> (i32, i32) {
    %c0_i32 = arith.constant 0 : i32
    %c0_i32_0 = arith.constant 0 : i32
    return %c0_i32, %arg1 : i32, i32
  }
  func.func @transform_3(%arg0: i32, %arg1: i32, %arg2: i32) -> (i32, i32) {
    %c0_i32 = arith.constant 0 : i32
    return %arg0, %arg1 : i32, i32
  }
}

module attributes {stable_mosaic.version = 11 : i64} {
  func.func @_ln_kernel(%arg0: i32, %arg1: memref<32x128xf32, #tpu.memory_space<vmem>>, %arg2: memref<1x128xf32, #tpu.memory_space<vmem>>, %arg3: memref<1x128xf32, #tpu.memory_space<vmem>>, %arg4: memref<32x128xf32, #tpu.memory_space<vmem>>) attributes {dimension_semantics = [#tpu.dimension_semantics<parallel>], iteration_bounds = array<i64: 1>, scalar_prefetch = 0 : i64, scratch_operands = 0 : i64, tpu.core_type = #tpu.core_type<tc>, window_params = [{transform_indices = @transform_0, window_bounds = array<i64: 32, 128>}, {pipeline_mode = #tpu.pipeline_mode<synchronous>, transform_indices = @transform_1, window_bounds = array<i64: 1, 128>}, {pipeline_mode = #tpu.pipeline_mode<synchronous>, transform_indices = @transform_2, window_bounds = array<i64: 1, 128>}, {transform_indices = @transform_3, window_bounds = array<i64: 32, 128>}]} {
    %c0 = arith.constant 0 : index
    %c0_0 = arith.constant 0 : index
    %0 = vector.load %arg1[%c0, %c0_0] : memref<32x128xf32, #tpu.memory_space<vmem>>, vector<32x128xf32>
    %cst = arith.constant dense<0.000000e+00> : vector<32xf32>
    %1 = vector.multi_reduction <add>, %0, %cst [1] : vector<32x128xf32> to vector<32xf32>
    %2 = vector.shape_cast %1 : vector<32xf32> to vector<32x1xf32>
    %cst_1 = arith.constant 1.280000e+02 : f32
    %3 = vector.broadcast %cst_1 : f32 to vector<32x1xf32>
    %4 = arith.divf %2, %3 : vector<32x1xf32>
    %5 = vector.broadcast %4 : vector<32x1xf32> to vector<32x128xf32>
    %6 = arith.subf %0, %5 : vector<32x128xf32>
    %7 = arith.mulf %6, %6 : vector<32x128xf32>
    %cst_2 = arith.constant dense<0.000000e+00> : vector<32xf32>
    %8 = vector.multi_reduction <add>, %7, %cst_2 [1] : vector<32x128xf32> to vector<32xf32>
    %9 = vector.shape_cast %8 : vector<32xf32> to vector<32x1xf32>
    %cst_3 = arith.constant 1.280000e+02 : f32
    %10 = vector.broadcast %cst_3 : f32 to vector<32x1xf32>
    %11 = arith.divf %9, %10 : vector<32x1xf32>
    %cst_4 = arith.constant 9.99999997E-7 : f32
    %12 = vector.broadcast %cst_4 : f32 to vector<32x1xf32>
    %13 = arith.addf %11, %12 : vector<32x1xf32>
    %14 = math.rsqrt %13 : vector<32x1xf32>
    %15 = vector.broadcast %14 : vector<32x1xf32> to vector<32x128xf32>
    %16 = arith.mulf %6, %15 : vector<32x128xf32>
    %c0_5 = arith.constant 0 : index
    %c0_6 = arith.constant 0 : index
    %17 = vector.load %arg2[%c0_5, %c0_6] : memref<1x128xf32, #tpu.memory_space<vmem>>, vector<1x128xf32>
    %18 = vector.broadcast %17 : vector<1x128xf32> to vector<32x128xf32>
    %19 = arith.mulf %16, %18 : vector<32x128xf32>
    %c0_7 = arith.constant 0 : index
    %c0_8 = arith.constant 0 : index
    %20 = vector.load %arg3[%c0_7, %c0_8] : memref<1x128xf32, #tpu.memory_space<vmem>>, vector<1x128xf32>
    %21 = vector.broadcast %20 : vector<1x128xf32> to vector<32x128xf32>
    %22 = arith.addf %19, %21 : vector<32x128xf32>
    %c0_9 = arith.constant 0 : index
    %c0_10 = arith.constant 0 : index
    %23 = vector.load %arg4[%c0_9, %c0_10] : memref<32x128xf32, #tpu.memory_space<vmem>>, vector<32x128xf32>
    tpu.vector_store %arg4[%c0_9, %c0_10], %22 {strides = array<i32>} : memref<32x128xf32, #tpu.memory_space<vmem>>, vector<32x128xf32>,
    return
  }
  func.func @transform_0(%arg0: i32) -> (i32, i32) {
    %c0_i32 = arith.constant 0 : i32
    %c0_i32_0 = arith.constant 0 : i32
    return %arg0, %c0_i32 : i32, i32
  }
  func.func @transform_1(%arg0: i32) -> (i32, i32) {
    %c0_i32 = arith.constant 0 : i32
    %c0_i32_0 = arith.constant 0 : i32
    %c0_i32_1 = arith.constant 0 : i32
    return %c0_i32, %c0_i32_0 : i32, i32
  }
  func.func @transform_2(%arg0: i32) -> (i32, i32) {
    %c0_i32 = arith.constant 0 : i32
    %c0_i32_0 = arith.constant 0 : i32
    %c0_i32_1 = arith.constant 0 : i32
    return %c0_i32, %c0_i32_0 : i32, i32
  }
  func.func @transform_3(%arg0: i32) -> (i32, i32) {
    %c0_i32 = arith.constant 0 : i32
    %c0_i32_0 = arith.constant 0 : i32
    return %arg0, %c0_i32 : i32, i32
  }
}

module attributes {stable_mosaic.version = 11 : i64} {
  func.func @_mm_kernel(%arg0: i32, %arg1: i32, %arg2: i32, %arg3: memref<32x128xf32, #tpu.memory_space<vmem>>, %arg4: memref<128x128xbf16, #tpu.memory_space<vmem>>, %arg5: memref<1x128xf32, #tpu.memory_space<vmem>>, %arg6: memref<32x128xf32, #tpu.memory_space<vmem>>, %arg7: memref<32x128xf32, #tpu.memory_space<vmem>>) attributes {dimension_semantics = [#tpu.dimension_semantics<parallel>, #tpu.dimension_semantics<parallel>, #tpu.dimension_semantics<arbitrary>], iteration_bounds = array<i64: 1, 3, 1>, scalar_prefetch = 0 : i64, scratch_operands = 1 : i64, tpu.core_type = #tpu.core_type<tc>, window_params = [{transform_indices = @transform_0, window_bounds = array<i64: 32, 128>}, {transform_indices = @transform_1, window_bounds = array<i64: 128, 128>}, {transform_indices = @transform_2, window_bounds = array<i64: 1, 128>}, {transform_indices = @transform_3, window_bounds = array<i64: 32, 128>}]} {
    %c0_i32 = arith.constant 0 : i32
    %0 = arith.cmpi eq, %arg2, %c0_i32 : i32
    %1 = arith.extui %0 : i1 to i32
    %c0_i32_0 = arith.constant 0 : i32
    %2 = arith.cmpi ne, %1, %c0_i32_0 : i32
    scf.if %2 {
      %cst_10 = arith.constant 0.000000e+00 : f32
      %13 = vector.broadcast %cst_10 : f32 to vector<32x128xf32>
      %c0_11 = arith.constant 0 : index
      %c0_12 = arith.constant 0 : index
      %14 = vector.load %arg7[%c0_11, %c0_12] : memref<32x128xf32, #tpu.memory_space<vmem>>, vector<32x128xf32>
      tpu.vector_store %arg7[%c0_11, %c0_12], %13 {strides = array<i32>} : memref<32x128xf32, #tpu.memory_space<vmem>>, vector<32x128xf32>,
    } else {
    }
    %c0 = arith.constant 0 : index
    %c0_1 = arith.constant 0 : index
    %3 = vector.load %arg7[%c0, %c0_1] : memref<32x128xf32, #tpu.memory_space<vmem>>, vector<32x128xf32>
    %c0_2 = arith.constant 0 : index
    %c0_3 = arith.constant 0 : index
    %4 = vector.load %arg3[%c0_2, %c0_3] : memref<32x128xf32, #tpu.memory_space<vmem>>, vector<32x128xf32>
    %5 = arith.truncf %4 : vector<32x128xf32> to vector<32x128xbf16>
    %c0_4 = arith.constant 0 : index
    %c0_5 = arith.constant 0 : index
    %6 = vector.load %arg4[%c0_4, %c0_5] : memref<128x128xbf16, #tpu.memory_space<vmem>>, vector<128x128xbf16>
    %cst = arith.constant dense<0.000000e+00> : vector<32x128xf32>
    %7 = tpu.matmul %5, %6, %cst {dimension_numbers = #tpu.dot_dimension_numbers<[1], [0], [0], [1], [0, 0, 1, 1], [], []>} : vector<32x128xbf16>, vector<128x128xbf16>, vector<32x128xf32> -> vector<32x128xf32>
    %8 = arith.addf %3, %7 : vector<32x128xf32>
    %c0_6 = arith.constant 0 : index
    %c0_7 = arith.constant 0 : index
    %9 = vector.load %arg7[%c0_6, %c0_7] : memref<32x128xf32, #tpu.memory_space<vmem>>, vector<32x128xf32>
    tpu.vector_store %arg7[%c0_6, %c0_7], %8 {strides = array<i32>} : memref<32x128xf32, #tpu.memory_space<vmem>>, vector<32x128xf32>,
    %c0_i32_8 = arith.constant 0 : i32
    %10 = arith.cmpi eq, %arg2, %c0_i32_8 : i32
    %11 = arith.extui %10 : i1 to i32
    %c0_i32_9 = arith.constant 0 : i32
    %12 = arith.cmpi ne, %11, %c0_i32_9 : i32
    scf.if %12 {
      %c0_10 = arith.constant 0 : index
      %c0_11 = arith.constant 0 : index
      %13 = vector.load %arg7[%c0_10, %c0_11] : memref<32x128xf32, #tpu.memory_space<vmem>>, vector<32x128xf32>
      %c0_12 = arith.constant 0 : index
      %c0_13 = arith.constant 0 : index
      %14 = vector.load %arg5[%c0_12, %c0_13] : memref<1x128xf32, #tpu.memory_space<vmem>>, vector<1x128xf32>
      %15 = vector.broadcast %14 : vector<1x128xf32> to vector<32x128xf32>
      %16 = arith.addf %13, %15 : vector<32x128xf32>
      %c0_14 = arith.constant 0 : index
      %c0_15 = arith.constant 0 : index
      %17 = vector.load %arg6[%c0_14, %c0_15] : memref<32x128xf32, #tpu.memory_space<vmem>>, vector<32x128xf32>
      tpu.vector_store %arg6[%c0_14, %c0_15], %16 {strides = array<i32>} : memref<32x128xf32, #tpu.memory_space<vmem>>, vector<32x128xf32>,
    } else {
    }
    return
  }
  func.func @transform_0(%arg0: i32, %arg1: i32, %arg2: i32) -> (i32, i32) {
    %c0_i32 = arith.constant 0 : i32
    return %arg0, %arg2 : i32, i32
  }
  func.func @transform_1(%arg0: i32, %arg1: i32, %arg2: i32) -> (i32, i32) {
    %c0_i32 = arith.constant 0 : i32
    return %arg2, %arg1 : i32, i32
  }
  func.func @transform_2(%arg0: i32, %arg1: i32, %arg2: i32) -> (i32, i32) {
    %c0_i32 = arith.constant 0 : i32
    %c0_i32_0 = arith.constant 0 : i32
    return %c0_i32, %arg1 : i32, i32
  }
  func.func @transform_3(%arg0: i32, %arg1: i32, %arg2: i32) -> (i32, i32) {
    %c0_i32 = arith.constant 0 : i32
    return %arg0, %arg1 : i32, i32
  }
}

module attributes {stable_mosaic.version = 11 : i64} {
  func.func @_attn_kernel(%arg0: i32, %arg1: memref<1x1x4x16x32xf32, #tpu.memory_space<vmem>>, %arg2: memref<1x1x4x16x32xf32, #tpu.memory_space<vmem>>, %arg3: memref<1x1x4x16x32xf32, #tpu.memory_space<vmem>>, %arg4: memref<1x4x16x32xf32, #tpu.memory_space<vmem>>) attributes {dimension_semantics = [#tpu.dimension_semantics<parallel>], iteration_bounds = array<i64: 2>, scalar_prefetch = 0 : i64, scratch_operands = 0 : i64, tpu.core_type = #tpu.core_type<tc>, window_params = [{transform_indices = @transform_0, window_bounds = array<i64: 1, 1, 4, 16, 32>}, {transform_indices = @transform_1, window_bounds = array<i64: 1, 1, 4, 16, 32>}, {transform_indices = @transform_2, window_bounds = array<i64: 1, 1, 4, 16, 32>}, {transform_indices = @transform_3, window_bounds = array<i64: 1, 4, 16, 32>}]} {
    %c0 = arith.constant 0 : index
    %c0_0 = arith.constant 0 : index
    %c0_1 = arith.constant 0 : index
    %c0_2 = arith.constant 0 : index
    %c0_3 = arith.constant 0 : index
    %0 = vector.load %arg1[%c0, %c0_0, %c0_1, %c0_2, %c0_3] : memref<1x1x4x16x32xf32, #tpu.memory_space<vmem>>, vector<1x1x4x16x32xf32>
    %1 = vector.shape_cast %0 : vector<1x1x4x16x32xf32> to vector<4x16x32xf32>
    %2 = arith.truncf %1 : vector<4x16x32xf32> to vector<4x16x32xbf16>
    %c0_4 = arith.constant 0 : index
    %c0_5 = arith.constant 0 : index
    %c0_6 = arith.constant 0 : index
    %c0_7 = arith.constant 0 : index
    %c0_8 = arith.constant 0 : index
    %3 = vector.load %arg2[%c0_4, %c0_5, %c0_6, %c0_7, %c0_8] : memref<1x1x4x16x32xf32, #tpu.memory_space<vmem>>, vector<1x1x4x16x32xf32>
    %4 = vector.shape_cast %3 : vector<1x1x4x16x32xf32> to vector<4x16x32xf32>
    %5 = arith.truncf %4 : vector<4x16x32xf32> to vector<4x16x32xbf16>
    %c0_9 = arith.constant 0 : index
    %c0_10 = arith.constant 0 : index
    %c0_11 = arith.constant 0 : index
    %c0_12 = arith.constant 0 : index
    %c0_13 = arith.constant 0 : index
    %6 = vector.load %arg3[%c0_9, %c0_10, %c0_11, %c0_12, %c0_13] : memref<1x1x4x16x32xf32, #tpu.memory_space<vmem>>, vector<1x1x4x16x32xf32>
    %7 = vector.shape_cast %6 : vector<1x1x4x16x32xf32> to vector<4x16x32xf32>
    %8 = arith.truncf %7 : vector<4x16x32xf32> to vector<4x16x32xbf16>
    "tpu.trace_start"() <{level = 10 : i32, message = "hqd,hkd->hqk"}> : () -> ()
    %cst = arith.constant dense<0.000000e+00> : vector<4x16x16xf32>
    %9 = tpu.matmul %2, %5, %cst {dimension_numbers = #tpu.dot_dimension_numbers<[2], [2], [1], [1], [0, 0, 0, 1, 1, 1], [0], [0]>} : vector<4x16x32xbf16>, vector<4x16x32xbf16>, vector<4x16x16xf32> -> vector<4x16x16xf32>
    "tpu.trace_stop"() : () -> ()
    %cst_14 = arith.constant 0.176776692 : f32
    %10 = vector.broadcast %cst_14 : f32 to vector<4x16x16xf32>
    %11 = arith.mulf %9, %10 : vector<4x16x16xf32>
    %cst_15 = arith.constant dense<0xFF800000> : vector<4x16xf32>
    %12 = vector.multi_reduction <maximumf>, %11, %cst_15 [2] : vector<4x16x16xf32> to vector<4x16xf32>
    %13 = vector.shape_cast %12 : vector<4x16xf32> to vector<4x16x1xf32>
    %14 = vector.broadcast %13 : vector<4x16x1xf32> to vector<4x16x16xf32>
    %15 = arith.subf %11, %14 : vector<4x16x16xf32>
    %16 = math.exp %15 : vector<4x16x16xf32>
    %cst_16 = arith.constant dense<0.000000e+00> : vector<4x16xf32>
    %17 = vector.multi_reduction <add>, %16, %cst_16 [2] : vector<4x16x16xf32> to vector<4x16xf32>
    %18 = vector.shape_cast %17 : vector<4x16xf32> to vector<4x16x1xf32>
    %19 = tpu.reciprocal %18 {approx = true} : vector<4x16x1xf32> -> vector<4x16x1xf32>
    %20 = vector.broadcast %19 : vector<4x16x1xf32> to vector<4x16x16xf32>
    %21 = arith.mulf %16, %20 : vector<4x16x16xf32>
    %22 = arith.truncf %21 : vector<4x16x16xf32> to vector<4x16x16xbf16>
    "tpu.trace_start"() <{level = 10 : i32, message = "hqk,hkd->hqd"}> : () -> ()
    %cst_17 = arith.constant dense<0.000000e+00> : vector<4x16x32xf32>
    %23 = tpu.matmul %22, %8, %cst_17 {dimension_numbers = #tpu.dot_dimension_numbers<[2], [1], [1], [2], [0, 0, 0, 1, 1, 2], [0], [0]>} : vector<4x16x16xbf16>, vector<4x16x32xbf16>, vector<4x16x32xf32> -> vector<4x16x32xf32>
    "tpu.trace_stop"() : () -> ()
    %c0_18 = arith.constant 0 : index
    %c0_19 = arith.constant 0 : index
    %c0_20 = arith.constant 0 : index
    %c0_21 = arith.constant 0 : index
    %24 = vector.load %arg4[%c0_18, %c0_19, %c0_20, %c0_21] : memref<1x4x16x32xf32, #tpu.memory_space<vmem>>, vector<1x4x16x32xf32>
    %25 = vector.shape_cast %24 : vector<1x4x16x32xf32> to vector<4x16x32xf32>
    %26 = vector.shape_cast %23 : vector<4x16x32xf32> to vector<1x4x16x32xf32>
    tpu.vector_store %arg4[%c0_18, %c0_19, %c0_20, %c0_21], %26 {strides = array<i32>} : memref<1x4x16x32xf32, #tpu.memory_space<vmem>>, vector<1x4x16x32xf32>,
    return
  }
  func.func @transform_0(%arg0: i32) -> (i32, i32, i32, i32, i32) {
    %c0_i32 = arith.constant 0 : i32
    %c0_i32_0 = arith.constant 0 : i32
    %c0_i32_1 = arith.constant 0 : i32
    %c0_i32_2 = arith.constant 0 : i32
    %c0_i32_3 = arith.constant 0 : i32
    return %arg0, %c0_i32, %c0_i32_0, %c0_i32_1, %c0_i32_2 : i32, i32, i32, i32, i32
  }
  func.func @transform_1(%arg0: i32) -> (i32, i32, i32, i32, i32) {
    %c1_i32 = arith.constant 1 : i32
    %c0_i32 = arith.constant 0 : i32
    %c0_i32_0 = arith.constant 0 : i32
    %c0_i32_1 = arith.constant 0 : i32
    %c0_i32_2 = arith.constant 0 : i32
    return %arg0, %c1_i32, %c0_i32, %c0_i32_0, %c0_i32_1 : i32, i32, i32, i32, i32
  }
  func.func @transform_2(%arg0: i32) -> (i32, i32, i32, i32, i32) {
    %c2_i32 = arith.constant 2 : i32
    %c0_i32 = arith.constant 0 : i32
    %c0_i32_0 = arith.constant 0 : i32
    %c0_i32_1 = arith.constant 0 : i32
    %c0_i32_2 = arith.constant 0 : i32
    return %arg0, %c2_i32, %c0_i32, %c0_i32_0, %c0_i32_1 : i32, i32, i32, i32, i32
  }
  func.func @transform_3(%arg0: i32) -> (i32, i32, i32, i32) {
    %c0_i32 = arith.constant 0 : i32
    %c0_i32_0 = arith.constant 0 : i32
    %c0_i32_1 = arith.constant 0 : i32
    %c0_i32_2 = arith.constant 0 : i32
    return %arg0, %c0_i32, %c0_i32_0, %c0_i32_1 : i32, i32, i32, i32
  }
}

module attributes {stable_mosaic.version = 11 : i64} {
  func.func @_mm_kernel(%arg0: i32, %arg1: i32, %arg2: i32, %arg3: memref<32x128xf32, #tpu.memory_space<vmem>>, %arg4: memref<128x128xbf16, #tpu.memory_space<vmem>>, %arg5: memref<1x128xf32, #tpu.memory_space<vmem>>, %arg6: memref<32x128xf32, #tpu.memory_space<vmem>>, %arg7: memref<32x128xf32, #tpu.memory_space<vmem>>, %arg8: memref<32x128xf32, #tpu.memory_space<vmem>>) attributes {dimension_semantics = [#tpu.dimension_semantics<parallel>, #tpu.dimension_semantics<parallel>, #tpu.dimension_semantics<arbitrary>], iteration_bounds = array<i64: 1, 1, 1>, scalar_prefetch = 0 : i64, scratch_operands = 1 : i64, tpu.core_type = #tpu.core_type<tc>, window_params = [{transform_indices = @transform_0, window_bounds = array<i64: 32, 128>}, {transform_indices = @transform_1, window_bounds = array<i64: 128, 128>}, {transform_indices = @transform_2, window_bounds = array<i64: 1, 128>}, {transform_indices = @transform_3, window_bounds = array<i64: 32, 128>}, {transform_indices = @transform_4, window_bounds = array<i64: 32, 128>}]} {
    %c0_i32 = arith.constant 0 : i32
    %0 = arith.cmpi eq, %arg2, %c0_i32 : i32
    %1 = arith.extui %0 : i1 to i32
    %c0_i32_0 = arith.constant 0 : i32
    %2 = arith.cmpi ne, %1, %c0_i32_0 : i32
    scf.if %2 {
      %cst_10 = arith.constant 0.000000e+00 : f32
      %13 = vector.broadcast %cst_10 : f32 to vector<32x128xf32>
      %c0_11 = arith.constant 0 : index
      %c0_12 = arith.constant 0 : index
      %14 = vector.load %arg8[%c0_11, %c0_12] : memref<32x128xf32, #tpu.memory_space<vmem>>, vector<32x128xf32>
      tpu.vector_store %arg8[%c0_11, %c0_12], %13 {strides = array<i32>} : memref<32x128xf32, #tpu.memory_space<vmem>>, vector<32x128xf32>,
    } else {
    }
    %c0 = arith.constant 0 : index
    %c0_1 = arith.constant 0 : index
    %3 = vector.load %arg8[%c0, %c0_1] : memref<32x128xf32, #tpu.memory_space<vmem>>, vector<32x128xf32>
    %c0_2 = arith.constant 0 : index
    %c0_3 = arith.constant 0 : index
    %4 = vector.load %arg3[%c0_2, %c0_3] : memref<32x128xf32, #tpu.memory_space<vmem>>, vector<32x128xf32>
    %5 = arith.truncf %4 : vector<32x128xf32> to vector<32x128xbf16>
    %c0_4 = arith.constant 0 : index
    %c0_5 = arith.constant 0 : index
    %6 = vector.load %arg4[%c0_4, %c0_5] : memref<128x128xbf16, #tpu.memory_space<vmem>>, vector<128x128xbf16>
    %cst = arith.constant dense<0.000000e+00> : vector<32x128xf32>
    %7 = tpu.matmul %5, %6, %cst {dimension_numbers = #tpu.dot_dimension_numbers<[1], [0], [0], [1], [0, 0, 1, 1], [], []>} : vector<32x128xbf16>, vector<128x128xbf16>, vector<32x128xf32> -> vector<32x128xf32>
    %8 = arith.addf %3, %7 : vector<32x128xf32>
    %c0_6 = arith.constant 0 : index
    %c0_7 = arith.constant 0 : index
    %9 = vector.load %arg8[%c0_6, %c0_7] : memref<32x128xf32, #tpu.memory_space<vmem>>, vector<32x128xf32>
    tpu.vector_store %arg8[%c0_6, %c0_7], %8 {strides = array<i32>} : memref<32x128xf32, #tpu.memory_space<vmem>>, vector<32x128xf32>,
    %c0_i32_8 = arith.constant 0 : i32
    %10 = arith.cmpi eq, %arg2, %c0_i32_8 : i32
    %11 = arith.extui %10 : i1 to i32
    %c0_i32_9 = arith.constant 0 : i32
    %12 = arith.cmpi ne, %11, %c0_i32_9 : i32
    scf.if %12 {
      %c0_10 = arith.constant 0 : index
      %c0_11 = arith.constant 0 : index
      %13 = vector.load %arg8[%c0_10, %c0_11] : memref<32x128xf32, #tpu.memory_space<vmem>>, vector<32x128xf32>
      %c0_12 = arith.constant 0 : index
      %c0_13 = arith.constant 0 : index
      %14 = vector.load %arg5[%c0_12, %c0_13] : memref<1x128xf32, #tpu.memory_space<vmem>>, vector<1x128xf32>
      %15 = vector.broadcast %14 : vector<1x128xf32> to vector<32x128xf32>
      %16 = arith.addf %13, %15 : vector<32x128xf32>
      %c0_14 = arith.constant 0 : index
      %c0_15 = arith.constant 0 : index
      %17 = vector.load %arg6[%c0_14, %c0_15] : memref<32x128xf32, #tpu.memory_space<vmem>>, vector<32x128xf32>
      %18 = arith.addf %16, %17 : vector<32x128xf32>
      %c0_16 = arith.constant 0 : index
      %c0_17 = arith.constant 0 : index
      %19 = vector.load %arg7[%c0_16, %c0_17] : memref<32x128xf32, #tpu.memory_space<vmem>>, vector<32x128xf32>
      tpu.vector_store %arg7[%c0_16, %c0_17], %18 {strides = array<i32>} : memref<32x128xf32, #tpu.memory_space<vmem>>, vector<32x128xf32>,
    } else {
    }
    return
  }
  func.func @transform_0(%arg0: i32, %arg1: i32, %arg2: i32) -> (i32, i32) {
    %c0_i32 = arith.constant 0 : i32
    return %arg0, %arg2 : i32, i32
  }
  func.func @transform_1(%arg0: i32, %arg1: i32, %arg2: i32) -> (i32, i32) {
    %c0_i32 = arith.constant 0 : i32
    return %arg2, %arg1 : i32, i32
  }
  func.func @transform_2(%arg0: i32, %arg1: i32, %arg2: i32) -> (i32, i32) {
    %c0_i32 = arith.constant 0 : i32
    %c0_i32_0 = arith.constant 0 : i32
    return %c0_i32, %arg1 : i32, i32
  }
  func.func @transform_3(%arg0: i32, %arg1: i32, %arg2: i32) -> (i32, i32) {
    %c0_i32 = arith.constant 0 : i32
    return %arg0, %arg1 : i32, i32
  }
  func.func @transform_4(%arg0: i32, %arg1: i32, %arg2: i32) -> (i32, i32) {
    %c0_i32 = arith.constant 0 : i32
    return %arg0, %arg1 : i32, i32
  }
}

module attributes {stable_mosaic.version = 11 : i64} {
  func.func @_mm_kernel(%arg0: i32, %arg1: i32, %arg2: i32, %arg3: memref<32x128xf32, #tpu.memory_space<vmem>>, %arg4: memref<128x128xbf16, #tpu.memory_space<vmem>>, %arg5: memref<1x128xf32, #tpu.memory_space<vmem>>, %arg6: memref<32x128xf32, #tpu.memory_space<vmem>>, %arg7: memref<32x128xf32, #tpu.memory_space<vmem>>) attributes {dimension_semantics = [#tpu.dimension_semantics<parallel>, #tpu.dimension_semantics<parallel>, #tpu.dimension_semantics<arbitrary>], iteration_bounds = array<i64: 1, 2, 1>, scalar_prefetch = 0 : i64, scratch_operands = 1 : i64, tpu.core_type = #tpu.core_type<tc>, window_params = [{transform_indices = @transform_0, window_bounds = array<i64: 32, 128>}, {transform_indices = @transform_1, window_bounds = array<i64: 128, 128>}, {transform_indices = @transform_2, window_bounds = array<i64: 1, 128>}, {transform_indices = @transform_3, window_bounds = array<i64: 32, 128>}]} {
    %c0_i32 = arith.constant 0 : i32
    %0 = arith.cmpi eq, %arg2, %c0_i32 : i32
    %1 = arith.extui %0 : i1 to i32
    %c0_i32_0 = arith.constant 0 : i32
    %2 = arith.cmpi ne, %1, %c0_i32_0 : i32
    scf.if %2 {
      %cst_10 = arith.constant 0.000000e+00 : f32
      %13 = vector.broadcast %cst_10 : f32 to vector<32x128xf32>
      %c0_11 = arith.constant 0 : index
      %c0_12 = arith.constant 0 : index
      %14 = vector.load %arg7[%c0_11, %c0_12] : memref<32x128xf32, #tpu.memory_space<vmem>>, vector<32x128xf32>
      tpu.vector_store %arg7[%c0_11, %c0_12], %13 {strides = array<i32>} : memref<32x128xf32, #tpu.memory_space<vmem>>, vector<32x128xf32>,
    } else {
    }
    %c0 = arith.constant 0 : index
    %c0_1 = arith.constant 0 : index
    %3 = vector.load %arg7[%c0, %c0_1] : memref<32x128xf32, #tpu.memory_space<vmem>>, vector<32x128xf32>
    %c0_2 = arith.constant 0 : index
    %c0_3 = arith.constant 0 : index
    %4 = vector.load %arg3[%c0_2, %c0_3] : memref<32x128xf32, #tpu.memory_space<vmem>>, vector<32x128xf32>
    %5 = arith.truncf %4 : vector<32x128xf32> to vector<32x128xbf16>
    %c0_4 = arith.constant 0 : index
    %c0_5 = arith.constant 0 : index
    %6 = vector.load %arg4[%c0_4, %c0_5] : memref<128x128xbf16, #tpu.memory_space<vmem>>, vector<128x128xbf16>
    %cst = arith.constant dense<0.000000e+00> : vector<32x128xf32>
    %7 = tpu.matmul %5, %6, %cst {dimension_numbers = #tpu.dot_dimension_numbers<[1], [0], [0], [1], [0, 0, 1, 1], [], []>} : vector<32x128xbf16>, vector<128x128xbf16>, vector<32x128xf32> -> vector<32x128xf32>
    %8 = arith.addf %3, %7 : vector<32x128xf32>
    %c0_6 = arith.constant 0 : index
    %c0_7 = arith.constant 0 : index
    %9 = vector.load %arg7[%c0_6, %c0_7] : memref<32x128xf32, #tpu.memory_space<vmem>>, vector<32x128xf32>
    tpu.vector_store %arg7[%c0_6, %c0_7], %8 {strides = array<i32>} : memref<32x128xf32, #tpu.memory_space<vmem>>, vector<32x128xf32>,
    %c0_i32_8 = arith.constant 0 : i32
    %10 = arith.cmpi eq, %arg2, %c0_i32_8 : i32
    %11 = arith.extui %10 : i1 to i32
    %c0_i32_9 = arith.constant 0 : i32
    %12 = arith.cmpi ne, %11, %c0_i32_9 : i32
    scf.if %12 {
      %c0_10 = arith.constant 0 : index
      %c0_11 = arith.constant 0 : index
      %13 = vector.load %arg7[%c0_10, %c0_11] : memref<32x128xf32, #tpu.memory_space<vmem>>, vector<32x128xf32>
      %c0_12 = arith.constant 0 : index
      %c0_13 = arith.constant 0 : index
      %14 = vector.load %arg5[%c0_12, %c0_13] : memref<1x128xf32, #tpu.memory_space<vmem>>, vector<1x128xf32>
      %15 = vector.broadcast %14 : vector<1x128xf32> to vector<32x128xf32>
      %16 = arith.addf %13, %15 : vector<32x128xf32>
      %cst_14 = arith.constant 5.000000e-01 : f32
      %17 = vector.broadcast %cst_14 : f32 to vector<32x128xf32>
      %18 = arith.mulf %17, %16 : vector<32x128xf32>
      %cst_15 = arith.constant 4.471500e-02 : f32
      %19 = vector.broadcast %cst_15 : f32 to vector<32x128xf32>
      %20 = arith.mulf %19, %16 : vector<32x128xf32>
      %21 = arith.mulf %20, %16 : vector<32x128xf32>
      %22 = arith.mulf %21, %16 : vector<32x128xf32>
      %23 = arith.addf %16, %22 : vector<32x128xf32>
      %cst_16 = arith.constant 0.797884583 : f32
      %24 = vector.broadcast %cst_16 : f32 to vector<32x128xf32>
      %25 = arith.mulf %24, %23 : vector<32x128xf32>
      %26 = math.tanh %25 : vector<32x128xf32>
      %cst_17 = arith.constant 1.000000e+00 : f32
      %27 = vector.broadcast %cst_17 : f32 to vector<32x128xf32>
      %28 = arith.addf %27, %26 : vector<32x128xf32>
      %29 = arith.mulf %18, %28 : vector<32x128xf32>
      %c0_18 = arith.constant 0 : index
      %c0_19 = arith.constant 0 : index
      %30 = vector.load %arg6[%c0_18, %c0_19] : memref<32x128xf32, #tpu.memory_space<vmem>>, vector<32x128xf32>
      tpu.vector_store %arg6[%c0_18, %c0_19], %29 {strides = array<i32>} : memref<32x128xf32, #tpu.memory_space<vmem>>, vector<32x128xf32>,
    } else {
    }
    return
  }
  func.func @transform_0(%arg0: i32, %arg1: i32, %arg2: i32) -> (i32, i32) {
    %c0_i32 = arith.constant 0 : i32
    return %arg0, %arg2 : i32, i32
  }
  func.func @transform_1(%arg0: i32, %arg1: i32, %arg2: i32) -> (i32, i32) {
    %c0_i32 = arith.constant 0 : i32
    return %arg2, %arg1 : i32, i32
  }
  func.func @transform_2(%arg0: i32, %arg1: i32, %arg2: i32) -> (i32, i32) {
    %c0_i32 = arith.constant 0 : i32
    %c0_i32_0 = arith.constant 0 : i32
    return %c0_i32, %arg1 : i32, i32
  }
  func.func @transform_3(%arg0: i32, %arg1: i32, %arg2: i32) -> (i32, i32) {
    %c0_i32 = arith.constant 0 : i32
    return %arg0, %arg1 : i32, i32
  }
}

module attributes {stable_mosaic.version = 11 : i64} {
  func.func @_mm_kernel(%arg0: i32, %arg1: i32, %arg2: i32, %arg3: memref<32x256xf32, #tpu.memory_space<vmem>>, %arg4: memref<256x128xbf16, #tpu.memory_space<vmem>>, %arg5: memref<1x128xf32, #tpu.memory_space<vmem>>, %arg6: memref<32x128xf32, #tpu.memory_space<vmem>>, %arg7: memref<32x128xf32, #tpu.memory_space<vmem>>, %arg8: memref<32x128xf32, #tpu.memory_space<vmem>>) attributes {dimension_semantics = [#tpu.dimension_semantics<parallel>, #tpu.dimension_semantics<parallel>, #tpu.dimension_semantics<arbitrary>], iteration_bounds = array<i64: 1, 1, 1>, scalar_prefetch = 0 : i64, scratch_operands = 1 : i64, tpu.core_type = #tpu.core_type<tc>, window_params = [{transform_indices = @transform_0, window_bounds = array<i64: 32, 256>}, {transform_indices = @transform_1, window_bounds = array<i64: 256, 128>}, {transform_indices = @transform_2, window_bounds = array<i64: 1, 128>}, {transform_indices = @transform_3, window_bounds = array<i64: 32, 128>}, {transform_indices = @transform_4, window_bounds = array<i64: 32, 128>}]} {
    %c0_i32 = arith.constant 0 : i32
    %0 = arith.cmpi eq, %arg2, %c0_i32 : i32
    %1 = arith.extui %0 : i1 to i32
    %c0_i32_0 = arith.constant 0 : i32
    %2 = arith.cmpi ne, %1, %c0_i32_0 : i32
    scf.if %2 {
      %cst_10 = arith.constant 0.000000e+00 : f32
      %13 = vector.broadcast %cst_10 : f32 to vector<32x128xf32>
      %c0_11 = arith.constant 0 : index
      %c0_12 = arith.constant 0 : index
      %14 = vector.load %arg8[%c0_11, %c0_12] : memref<32x128xf32, #tpu.memory_space<vmem>>, vector<32x128xf32>
      tpu.vector_store %arg8[%c0_11, %c0_12], %13 {strides = array<i32>} : memref<32x128xf32, #tpu.memory_space<vmem>>, vector<32x128xf32>,
    } else {
    }
    %c0 = arith.constant 0 : index
    %c0_1 = arith.constant 0 : index
    %3 = vector.load %arg8[%c0, %c0_1] : memref<32x128xf32, #tpu.memory_space<vmem>>, vector<32x128xf32>
    %c0_2 = arith.constant 0 : index
    %c0_3 = arith.constant 0 : index
    %4 = vector.load %arg3[%c0_2, %c0_3] : memref<32x256xf32, #tpu.memory_space<vmem>>, vector<32x256xf32>
    %5 = arith.truncf %4 : vector<32x256xf32> to vector<32x256xbf16>
    %c0_4 = arith.constant 0 : index
    %c0_5 = arith.constant 0 : index
    %6 = vector.load %arg4[%c0_4, %c0_5] : memref<256x128xbf16, #tpu.memory_space<vmem>>, vector<256x128xbf16>
    %cst = arith.constant dense<0.000000e+00> : vector<32x128xf32>
    %7 = tpu.matmul %5, %6, %cst {dimension_numbers = #tpu.dot_dimension_numbers<[1], [0], [0], [1], [0, 0, 1, 1], [], []>} : vector<32x256xbf16>, vector<256x128xbf16>, vector<32x128xf32> -> vector<32x128xf32>
    %8 = arith.addf %3, %7 : vector<32x128xf32>
    %c0_6 = arith.constant 0 : index
    %c0_7 = arith.constant 0 : index
    %9 = vector.load %arg8[%c0_6, %c0_7] : memref<32x128xf32, #tpu.memory_space<vmem>>, vector<32x128xf32>
    tpu.vector_store %arg8[%c0_6, %c0_7], %8 {strides = array<i32>} : memref<32x128xf32, #tpu.memory_space<vmem>>, vector<32x128xf32>,
    %c0_i32_8 = arith.constant 0 : i32
    %10 = arith.cmpi eq, %arg2, %c0_i32_8 : i32
    %11 = arith.extui %10 : i1 to i32
    %c0_i32_9 = arith.constant 0 : i32
    %12 = arith.cmpi ne, %11, %c0_i32_9 : i32
    scf.if %12 {
      %c0_10 = arith.constant 0 : index
      %c0_11 = arith.constant 0 : index
      %13 = vector.load %arg8[%c0_10, %c0_11] : memref<32x128xf32, #tpu.memory_space<vmem>>, vector<32x128xf32>
      %c0_12 = arith.constant 0 : index
      %c0_13 = arith.constant 0 : index
      %14 = vector.load %arg5[%c0_12, %c0_13] : memref<1x128xf32, #tpu.memory_space<vmem>>, vector<1x128xf32>
      %15 = vector.broadcast %14 : vector<1x128xf32> to vector<32x128xf32>
      %16 = arith.addf %13, %15 : vector<32x128xf32>
      %c0_14 = arith.constant 0 : index
      %c0_15 = arith.constant 0 : index
      %17 = vector.load %arg6[%c0_14, %c0_15] : memref<32x128xf32, #tpu.memory_space<vmem>>, vector<32x128xf32>
      %18 = arith.addf %16, %17 : vector<32x128xf32>
      %c0_16 = arith.constant 0 : index
      %c0_17 = arith.constant 0 : index
      %19 = vector.load %arg7[%c0_16, %c0_17] : memref<32x128xf32, #tpu.memory_space<vmem>>, vector<32x128xf32>
      tpu.vector_store %arg7[%c0_16, %c0_17], %18 {strides = array<i32>} : memref<32x128xf32, #tpu.memory_space<vmem>>, vector<32x128xf32>,
    } else {
    }
    return
  }
  func.func @transform_0(%arg0: i32, %arg1: i32, %arg2: i32) -> (i32, i32) {
    %c0_i32 = arith.constant 0 : i32
    return %arg0, %arg2 : i32, i32
  }
  func.func @transform_1(%arg0: i32, %arg1: i32, %arg2: i32) -> (i32, i32) {
    %c0_i32 = arith.constant 0 : i32
    return %arg2, %arg1 : i32, i32
  }
  func.func @transform_2(%arg0: i32, %arg1: i32, %arg2: i32) -> (i32, i32) {
    %c0_i32 = arith.constant 0 : i32
    %c0_i32_0 = arith.constant 0 : i32
    return %c0_i32, %arg1 : i32, i32
  }
  func.func @transform_3(%arg0: i32, %arg1: i32, %arg2: i32) -> (i32, i32) {
    %c0_i32 = arith.constant 0 : i32
    return %arg0, %arg1 : i32, i32
  }
  func.func @transform_4(%arg0: i32, %arg1: i32, %arg2: i32) -> (i32, i32) {
    %c0_i32 = arith.constant 0 : i32
    return %arg0, %arg1 : i32, i32
  }
}

</mosaic_0001>

<bundles_post_ra>
// kernel: fuse_backbone_forward.36
= control target key start
LH: loop header
LB: loop body
LE: loop exit
PB: predicated region body
PF: predicated region fallthrough
CT: control target
= control target key end

     0   :  { %s1230_s12 = smov 0   ;;  %s1232_s13 = smov 0   ;;  %s1455_s0 = inlined_call_operand.vmem [shape: f32[2048,256], index: 0, kind: input, shape index: {}]   ;;  %s1456_s1 = inlined_call_operand.vmem [shape: bf16[256,128], index: 1, kind: input, shape index: {}]   ;;  %s1457_s2 = inlined_call_operand.vmem [shape: f32[1,128], index: 2, kind: input, shape index: {}]   ;;  %s1458_s3 = inlined_call_operand.vmem [shape: f32[2048,128], index: 3, kind: output, shape index: {}]  }
   0x1   :  { %s1234_s14 = smov 0  }
   0x2 LB: > { %s32_s15 = sadd.s32 1, %s1204_s13  ;;  %p1056_p0 = scmp.ge.s32.totalorder %s1208_s14, 1  ;;  %s1208_s14 = sphi %s1234_s14, %s13_s14   ;;  %s1204_s13 = sphi %s1232_s13, %s1460_s13   ;;  %s1200_s12 = sphi %s1230_s12, %s1459_s12  }
   0x3   : > { %p34_p1 = scmp.ge.s32.totalorder %s32_s15, 8  ;;  %p191_p2 = scmp.lt.s32.totalorder %s1208_s14, 9 }
   0x5   : > { %s1462_s15 = smov (%p34_p1, %s32_s15), 0  ;;  %p192_p3 = pnand %p1056_p0, %p191_p2 }
   0x6   : > { %s1057_s28 = sshll.u32 (!%p192_p3), %s1200_s12, 5 }
   0x7   : > { %195 = sbr.rel (%p192_p3) target bundleno = 304 (0x130), region = 32  ;;  %p236_p4 = scmp.lt.s32.totalorder (!%p192_p3), %s1057_s28, 255 }
   0xc   : > { %v1136_v0 = vld [vmem:[%s1456_s1 + $0x38] sm:$0xff]  ;;  %v1135_v2 = vld [vmem:[%s1456_s1 + $0x30] sm:$0xff]  ;;  %v1134_v4 = vld [vmem:[%s1456_s1 + $0x28] sm:$0xff]  ;;  %s1464_s28 = smov (!%p236_p4, %s1057_s28), 255 }
   0xd   : > { %v1144_v1 = vld [vmem:[%s1456_s1 + $0x78] sm:$0xff]  ;;  %559 = vmatpush.bf16.msra.mxu0 %v1136_v0  ;;  %1145 = vmatpush.bf16.msra.mxu2 %v1136_v0  ;;  %v1143_v3 = vld [vmem:[%s1456_s1 + $0x70] sm:$0xff]  ;;  %v1142_v5 = vld [vmem:[%s1456_s1 + $0x68] sm:$0xff]  ;;  %s1128_s17 = sshll.u32 %s1464_s28, 4  ;;  %s1061_s5 = sshll.u32 %s1464_s28, 3 }
   0xe   : > { %648 = vmatpush.bf16.msra.mxu1 %v1144_v1  ;;  %1153 = vmatpush.bf16.msra.mxu3 %v1144_v1  ;;  %v1133_v6 = vld [vmem:[%s1456_s1 + $0x20] sm:$0xff]  ;;  %v1132_v8 = vld [vmem:[%s1456_s1 + $0x18] sm:$0xff]  ;;  %v1131_v10 = vld [vmem:[%s1456_s1 + $0x10] sm:$0xff]  ;;  %s1296_s22 = scalar_lea.vmem %s1455_s0, %s1128_s17  ;;  %s1381_s8 = scalar_lea.vmem %s1458_s3, %s1061_s5 }
   0xf   : > { %v1141_v7 = vld [vmem:[%s1456_s1 + $0x60] sm:$0xff]  ;;  %v1140_v9 = vld [vmem:[%s1456_s1 + $0x58] sm:$0xff]  ;;  %v1139_v11 = vld [vmem:[%s1456_s1 + $0x50] sm:$0xff] }
  0x10   : > { %v1130_v12 = vld [vmem:[%s1456_s1 + $0x8] sm:$0xff]  ;;  %v1129_v14 = vld [vmem:[%s1456_s1] sm:$0xff]  ;;  %v337_v17 = vld [vmem:[%s1296_s22 + $0x10] sm:$0xff] }
  0x11   : > { %560 = vmatpush.bf16.msra.mxu0 %v1135_v2  ;;  %1146 = vmatpush.bf16.msra.mxu2 %v1135_v2  ;;  %v1138_v13 = vld [vmem:[%s1456_s1 + $0x48] sm:$0xff]  ;;  %v1137_v15 = vld [vmem:[%s1456_s1 + $0x40] sm:$0xff]  ;;  %v369_v19 = vld [vmem:[%s1296_s22 + $0x110] sm:$0xff] }
  0x12   : > { %649 = vmatpush.bf16.msra.mxu1 %v1143_v3  ;;  %1154 = vmatpush.bf16.msra.mxu3 %v1143_v3  ;;  %v335_v16 = vld [vmem:[%s1296_s22] sm:$0xff]  ;;  %v336_v20 = vld [vmem:[%s1296_s22 + $0x8] sm:$0xff]  ;;  %v338_v21 = vld [vmem:[%s1296_s22 + $0x18] sm:$0xff] }
  0x13   : > { %v367_v18 = vld [vmem:[%s1296_s22 + $0x100] sm:$0xff]  ;;  %v368_v22 = vld [vmem:[%s1296_s22 + $0x108] sm:$0xff]  ;;  %v370_v23 = vld [vmem:[%s1296_s22 + $0x118] sm:$0xff]  ;;  %v399_v24 = vpack.c.bf16 %v337_v17, %v335_v16  ;;  %v400_v26 = vpack.c.bf16 %v338_v21, %v336_v20 }
  0x14   : > { %v415_v25 = vpack.c.bf16 %v369_v19, %v367_v18  ;;  %v416_v27 = vpack.c.bf16 %v370_v23, %v368_v22  ;;  %v339_v28 = vld [vmem:[%s1296_s22 + $0x20] sm:$0xff]  ;;  %v341_v29 = vld [vmem:[%s1296_s22 + $0x30] sm:$0xff]  ;;  %v340_v32 = vld [vmem:[%s1296_s22 + $0x28] sm:$0xff] }
  0x15   : > { %561 = vmatpush.bf16.msra.mxu0 %v1134_v4  ;;  %1147 = vmatpush.bf16.msra.mxu2 %v1134_v4  ;;  %v371_v30 = vld [vmem:[%s1296_s22 + $0x120] sm:$0xff]  ;;  %v373_v31 = vld [vmem:[%s1296_s22 + $0x130] sm:$0xff]  ;;  %v342_v33 = vld [vmem:[%s1296_s22 + $0x38] sm:$0xff]  ;;  %v401_v36 = vpack.c.bf16 %v341_v29, %v339_v28 }
  0x16   : > { %650 = vmatpush.bf16.msra.mxu1 %v1142_v5  ;;  %1155 = vmatpush.bf16.msra.mxu3 %v1142_v5  ;;  %v372_v34 = vld [vmem:[%s1296_s22 + $0x128] sm:$0xff]  ;;  %v374_v35 = vld [vmem:[%s1296_s22 + $0x138] sm:$0xff]  ;;  %v417_v37 = vpack.c.bf16 %v373_v31, %v371_v30  ;;  %v402_v38 = vpack.c.bf16 %v342_v33, %v340_v32  ;;  %v343_v40 = vld [vmem:[%s1296_s22 + $0x40] sm:$0xff] }
  0x17   : > { %v418_v39 = vpack.c.bf16 %v374_v35, %v372_v34  ;;  %v345_v41 = vld [vmem:[%s1296_s22 + $0x50] sm:$0xff]  ;;  %v375_v42 = vld [vmem:[%s1296_s22 + $0x140] sm:$0xff]  ;;  %v344_v44 = vld [vmem:[%s1296_s22 + $0x48] sm:$0xff] }
  0x18   : > { %v377_v43 = vld [vmem:[%s1296_s22 + $0x150] sm:$0xff]  ;;  %v346_v45 = vld [vmem:[%s1296_s22 + $0x58] sm:$0xff]  ;;  %v376_v46 = vld [vmem:[%s1296_s22 + $0x148] sm:$0xff]  ;;  %v403_v48 = vpack.c.bf16 %v345_v41, %v343_v40 }
  0x19   : > { %562 = vmatpush.bf16.msra.mxu0 %v1133_v6  ;;  %1148 = vmatpush.bf16.msra.mxu2 %v1133_v6  ;;  %v378_v47 = vld [vmem:[%s1296_s22 + $0x158] sm:$0xff]  ;;  %v419_v49 = vpack.c.bf16 %v377_v43, %v375_v42  ;;  %v404_v50 = vpack.c.bf16 %v346_v45, %v344_v44  ;;  %v347_v52 = vld [vmem:[%s1296_s22 + $0x60] sm:$0xff]  ;;  %v349_v53 = vld [vmem:[%s1296_s22 + $0x70] sm:$0xff] }
  0x1a   : > { %651 = vmatpush.bf16.msra.mxu1 %v1141_v7  ;;  %1156 = vmatpush.bf16.msra.mxu3 %v1141_v7  ;;  %v420_v51 = vpack.c.bf16 %v378_v47, %v376_v46  ;;  %v379_v54 = vld [vmem:[%s1296_s22 + $0x160] sm:$0xff]  ;;  %v381_v55 = vld [vmem:[%s1296_s22 + $0x170] sm:$0xff]  ;;  %v348_v56 = vld [vmem:[%s1296_s22 + $0x68] sm:$0xff]  ;;  %v405_v60 = vpack.c.bf16 %v349_v53, %v347_v52 }
  0x1b   : > { %v350_v57 = vld [vmem:[%s1296_s22 + $0x78] sm:$0xff]  ;;  %v380_v58 = vld [vmem:[%s1296_s22 + $0x168] sm:$0xff]  ;;  %v421_v61 = vpack.c.bf16 %v381_v55, %v379_v54  ;;  %v351_v0 = vld [vmem:[%s1296_s22 + $0x80] sm:$0xff] }
  0x1c   : > { %v382_v59 = vld [vmem:[%s1296_s22 + $0x178] sm:$0xff]  ;;  %v406_v62 = vpack.c.bf16 %v350_v57, %v348_v56  ;;  %v353_v1 = vld [vmem:[%s1296_s22 + $0x90] sm:$0xff]  ;;  %v383_v2 = vld [vmem:[%s1296_s22 + $0x180] sm:$0xff] }
  0x1d   : > { %563 = vmatpush.bf16.msra.mxu0 %v1132_v8  ;;  %1149 = vmatpush.bf16.msra.mxu2 %v1132_v8  ;;  %v422_v63 = vpack.c.bf16 %v382_v59, %v380_v58  ;;  %v385_v3 = vld [vmem:[%s1296_s22 + $0x190] sm:$0xff]  ;;  %v352_v4 = vld [vmem:[%s1296_s22 + $0x88] sm:$0xff]  ;;  %v354_v5 = vld [vmem:[%s1296_s22 + $0x98] sm:$0xff]  ;;  %v407_v8 = vpack.c.bf16 %v353_v1, %v351_v0 }
  0x1e   : > { %652 = vmatpush.bf16.msra.mxu1 %v1140_v9  ;;  %1157 = vmatpush.bf16.msra.mxu3 %v1140_v9  ;;  %v384_v6 = vld [vmem:[%s1296_s22 + $0x188] sm:$0xff]  ;;  %v386_v7 = vld [vmem:[%s1296_s22 + $0x198] sm:$0xff]  ;;  %v423_v9 = vpack.c.bf16 %v385_v3, %v383_v2 }
  0x1f   : > { %v356_v16 = vld [vmem:[%s1296_s22 + $0xa8] sm:$0xff]  ;;  %v358_v17 = vld [vmem:[%s1296_s22 + $0xb8] sm:$0xff] }
  0x20   : > { %v388_v18 = vld [vmem:[%s1296_s22 + $0x1a8] sm:$0xff]  ;;  %v390_v19 = vld [vmem:[%s1296_s22 + $0x1b8] sm:$0xff]  ;;  %v410_v22 = vpack.c.bf16 %v358_v17, %v356_v16 }
  0x21   : > { %564 = vmatpush.bf16.msra.mxu0 %v1131_v10  ;;  %1150 = vmatpush.bf16.msra.mxu2 %v1131_v10  ;;  %v408_v10 = vpack.c.bf16 %v354_v5, %v352_v4  ;;  %v426_v23 = vpack.c.bf16 %v390_v19, %v388_v18  ;;  %v360_v28 = vld [vmem:[%s1296_s22 + $0xc8] sm:$0xff]  ;;  %v362_v29 = vld [vmem:[%s1296_s22 + $0xd8] sm:$0xff] }
  0x22   : > { %653 = vmatpush.bf16.msra.mxu1 %v1139_v11  ;;  %1158 = vmatpush.bf16.msra.mxu3 %v1139_v11  ;;  %v424_v11 = vpack.c.bf16 %v386_v7, %v384_v6  ;;  %v392_v30 = vld [vmem:[%s1296_s22 + $0x1c8] sm:$0xff]  ;;  %v394_v31 = vld [vmem:[%s1296_s22 + $0x1d8] sm:$0xff]  ;;  %v412_v34 = vpack.c.bf16 %v362_v29, %v360_v28 }
  0x23   : > { %v428_v35 = vpack.c.bf16 %v394_v31, %v392_v30  ;;  %v364_v40 = vld [vmem:[%s1296_s22 + $0xe8] sm:$0xff]  ;;  %v366_v41 = vld [vmem:[%s1296_s22 + $0xf8] sm:$0xff] }
  0x24   : > { %v396_v42 = vld [vmem:[%s1296_s22 + $0x1e8] sm:$0xff]  ;;  %v398_v43 = vld [vmem:[%s1296_s22 + $0x1f8] sm:$0xff]  ;;  %v414_v46 = vpack.c.bf16 %v366_v41, %v364_v40 }
  0x25   : > { %565 = vmatpush.bf16.msra.mxu0 %v1130_v12  ;;  %1151 = vmatpush.bf16.msra.mxu2 %v1130_v12  ;;  %v355_v12 = vld [vmem:[%s1296_s22 + $0xa0] sm:$0xff]  ;;  %v430_v47 = vpack.c.bf16 %v398_v43, %v396_v42 }
  0x26   : > { %654 = vmatpush.bf16.msra.mxu1 %v1138_v13  ;;  %1159 = vmatpush.bf16.msra.mxu3 %v1138_v13  ;;  %v357_v13 = vld [vmem:[%s1296_s22 + $0xb0] sm:$0xff] }
  0x27   : > { %v409_v20 = vpack.c.bf16 %v357_v13, %v355_v12 }
  0x29   : > { %566 = vmatpush.bf16.msra.mxu0 %v1129_v14  ;;  %1152 = vmatpush.bf16.msra.mxu2 %v1129_v14  ;;  %v387_v14 = vld [vmem:[%s1296_s22 + $0x1a0] sm:$0xff] }
  0x2a   : > { %655 = vmatpush.bf16.msra.mxu1 %v1137_v15  ;;  %1160 = vmatpush.bf16.msra.mxu3 %v1137_v15  ;;  %v389_v15 = vld [vmem:[%s1296_s22 + $0x1b0] sm:$0xff] }
  0x2b   : > { %v425_v21 = vpack.c.bf16 %v389_v15, %v387_v14 }
  0x2c   : > { %567 = vmatmul.bf16.vlgmr.msra.gmra.mxu0 %v399_v24  ;;  %607 = vmatmul.bf16.vlgmr.msra.gmra.mxu2 %v415_v25  ;;  %v359_v24 = vld [vmem:[%s1296_s22 + $0xc0] sm:$0xff]  ;;  %v361_v25 = vld [vmem:[%s1296_s22 + $0xd0] sm:$0xff] }
  0x2d   : > { %656 = vmatmul.bf16.vlgmr.msra.gmra.mxu1 %v400_v26  ;;  %696 = vmatmul.bf16.vlgmr.msra.gmra.mxu3 %v416_v27  ;;  %v391_v26 = vld [vmem:[%s1296_s22 + $0x1c0] sm:$0xff]  ;;  %v393_v27 = vld [vmem:[%s1296_s22 + $0x1d0] sm:$0xff]  ;;  %v411_v32 = vpack.c.bf16 %v361_v25, %v359_v24 }
  0x2e   : > { %v427_v33 = vpack.c.bf16 %v393_v27, %v391_v26 }
  0x3c   : > { %572 = vmatmul.bf16.gmra.mxu0 %v401_v36  ;;  %612 = vmatmul.bf16.gmra.mxu2 %v417_v37  ;;  %v363_v36 = vld [vmem:[%s1296_s22 + $0xe0] sm:$0xff]  ;;  %v365_v37 = vld [vmem:[%s1296_s22 + $0xf0] sm:$0xff] }
  0x3d   : > { %661 = vmatmul.bf16.gmra.mxu1 %v402_v38  ;;  %701 = vmatmul.bf16.gmra.mxu3 %v418_v39  ;;  %v395_v38 = vld [vmem:[%s1296_s22 + $0x1e0] sm:$0xff]  ;;  %v397_v39 = vld [vmem:[%s1296_s22 + $0x1f0] sm:$0xff]  ;;  %v413_v44 = vpack.c.bf16 %v365_v37, %v363_v36 }
  0x3e   : > { %v429_v45 = vpack.c.bf16 %v397_v39, %v395_v38 }
  0x4c   : > { %577 = vmatmul.bf16.gmra.mxu0 %v403_v48  ;;  %617 = vmatmul.bf16.gmra.mxu2 %v419_v49  ;;  %v1374_v49 = vld [vmem:[%s1457_s2] ss:$0 sm:$0xff] }
  0x4d   : > { %666 = vmatmul.bf16.gmra.mxu1 %v404_v50  ;;  %706 = vmatmul.bf16.gmra.mxu3 %v420_v51 }
  0x5c   : > { %582 = vmatmul.bf16.gmra.mxu0 %v405_v60  ;;  %622 = vmatmul.bf16.gmra.mxu2 %v421_v61 }
  0x5d   : > { %671 = vmatmul.bf16.gmra.mxu1 %v406_v62  ;;  %711 = vmatmul.bf16.gmra.mxu3 %v422_v63 }
  0x6c   : > { %587 = vmatmul.bf16.gmra.mxu0 %v407_v8  ;;  %627 = vmatmul.bf16.gmra.mxu2 %v423_v9 }
  0x6d   : > { %676 = vmatmul.bf16.gmra.mxu1 %v408_v10  ;;  %716 = vmatmul.bf16.gmra.mxu3 %v424_v11 }
  0x7c   : > { %592 = vmatmul.bf16.gmra.mxu0 %v409_v20  ;;  %632 = vmatmul.bf16.gmra.mxu2 %v425_v21 }
  0x7d   : > { %681 = vmatmul.bf16.gmra.mxu1 %v410_v22  ;;  %721 = vmatmul.bf16.gmra.mxu3 %v426_v23 }
  0x8c   : > { %597 = vmatmul.bf16.gmra.mxu0 %v411_v32  ;;  %637 = vmatmul.bf16.gmra.mxu2 %v427_v33 }
  0x8d   : > { %686 = vmatmul.bf16.gmra.mxu1 %v412_v34  ;;  %726 = vmatmul.bf16.gmra.mxu3 %v428_v35 }
  0x9c   : > { %602 = vmatmul.bf16.gmra.mxu0 %v413_v44  ;;  %642 = vmatmul.bf16.gmra.mxu2 %v429_v45 }
  0x9d   : > { %691 = vmatmul.bf16.gmra.mxu1 %v414_v46  ;;  %731 = vmatmul.bf16.gmra.mxu3 %v430_v47 }
  0xa9   : > { %v568_v48 = vpop.f32.mrf.mxu0 }
  0xaa   : > { %v657_v50 = vpop.f32.mrf.mxu1 }
  0xab   : > { %v658_v51 = vadd.f32 %v657_v50, %v568_v48 }
  0xad   : > { %v840_v52 = vadd.f32 %v1374_v49, %v658_v51 }
  0xaf   : > { %v872_v53 = vmax.f32 %v840_v52, 0.0  ;;  %v608_v54 = vpop.f32.mrf.mxu2 }
  0xb0   : > { %v697_v55 = vpop.f32.mrf.mxu3 }
  0xb1   : > { %904 = vst [vmem:[%s1381_s8] sm:$0xff] %v872_v53  ;;  %v698_v56 = vadd.f32 %v697_v55, %v608_v54  ;;  %v570_v57 = vpop.f32.mrf.mxu0 }
  0xb2   : > { %v659_v58 = vpop.f32.mrf.mxu1 }
  0xb3   : > { %v856_v59 = vadd.f32 %v1374_v49, %v698_v56  ;;  %v660_v60 = vadd.f32 %v659_v58, %v570_v57 }
  0xb5   : > { %v888_v61 = vmax.f32 %v856_v59, 0.0  ;;  %v841_v62 = vadd.f32 %v1374_v49, %v660_v60 }
  0xb7   : > { %920 = vst [vmem:[%s1381_s8 + $0x80] sm:$0xff] %v888_v61  ;;  %v873_v63 = vmax.f32 %v841_v62, 0.0  ;;  %v610_v0 = vpop.f32.mrf.mxu2 }
  0xb8   : > { %v699_v1 = vpop.f32.mrf.mxu3 }
  0xb9   : > { %905 = vst [vmem:[%s1381_s8 + $0x8] sm:$0xff] %v873_v63  ;;  %v700_v2 = vadd.f32 %v699_v1, %v610_v0  ;;  %v573_v3 = vpop.f32.mrf.mxu0 }
  0xba   : > { %v662_v4 = vpop.f32.mrf.mxu1 }
  0xbb   : > { %v857_v5 = vadd.f32 %v1374_v49, %v700_v2  ;;  %v663_v6 = vadd.f32 %v662_v4, %v573_v3 }
  0xbd   : > { %v889_v7 = vmax.f32 %v857_v5, 0.0  ;;  %v842_v8 = vadd.f32 %v1374_v49, %v663_v6 }
  0xbf   : > { %921 = vst [vmem:[%s1381_s8 + $0x88] sm:$0xff] %v889_v7  ;;  %v874_v9 = vmax.f32 %v842_v8, 0.0  ;;  %v613_v10 = vpop.f32.mrf.mxu2 }
  0xc0   : > { %v702_v11 = vpop.f32.mrf.mxu3 }
  0xc1   : > { %906 = vst [vmem:[%s1381_s8 + $0x10] sm:$0xff] %v874_v9  ;;  %v703_v12 = vadd.f32 %v702_v11, %v613_v10  ;;  %v575_v13 = vpop.f32.mrf.mxu0 }
  0xc2   : > { %v664_v14 = vpop.f32.mrf.mxu1 }
  0xc3   : > { %v858_v15 = vadd.f32 %v1374_v49, %v703_v12  ;;  %v665_v16 = vadd.f32 %v664_v14, %v575_v13 }
  0xc5   : > { %v890_v17 = vmax.f32 %v858_v15, 0.0  ;;  %v843_v18 = vadd.f32 %v1374_v49, %v665_v16 }
  0xc7   : > { %922 = vst [vmem:[%s1381_s8 + $0x90] sm:$0xff] %v890_v17  ;;  %v875_v19 = vmax.f32 %v843_v18, 0.0  ;;  %v615_v20 = vpop.f32.mrf.mxu2 }
  0xc8   : > { %v704_v21 = vpop.f32.mrf.mxu3 }
  0xc9   : > { %907 = vst [vmem:[%s1381_s8 + $0x18] sm:$0xff] %v875_v19  ;;  %v705_v22 = vadd.f32 %v704_v21, %v615_v20  ;;  %v578_v23 = vpop.f32.mrf.mxu0 }
  0xca   : > { %v667_v24 = vpop.f32.mrf.mxu1 }
  0xcb   : > { %v859_v25 = vadd.f32 %v1374_v49, %v705_v22  ;;  %v668_v26 = vadd.f32 %v667_v24, %v578_v23 }
  0xcd   : > { %v891_v27 = vmax.f32 %v859_v25, 0.0  ;;  %v844_v28 = vadd.f32 %v1374_v49, %v668_v26 }
  0xcf   : > { %923 = vst [vmem:[%s1381_s8 + $0x98] sm:$0xff] %v891_v27  ;;  %v876_v29 = vmax.f32 %v844_v28, 0.0  ;;  %v618_v30 = vpop.f32.mrf.mxu2 }
  0xd0   : > { %v707_v31 = vpop.f32.mrf.mxu3 }
  0xd1   : > { %908 = vst [vmem:[%s1381_s8 + $0x20] sm:$0xff] %v876_v29  ;;  %v708_v32 = vadd.f32 %v707_v31, %v618_v30  ;;  %v580_v33 = vpop.f32.mrf.mxu0 }
  0xd2   : > { %v669_v34 = vpop.f32.mrf.mxu1 }
  0xd3   : > { %v860_v35 = vadd.f32 %v1374_v49, %v708_v32  ;;  %v670_v36 = vadd.f32 %v669_v34, %v580_v33 }
  0xd5   : > { %v892_v37 = vmax.f32 %v860_v35, 0.0  ;;  %v845_v38 = vadd.f32 %v1374_v49, %v670_v36 }
  0xd7   : > { %924 = vst [vmem:[%s1381_s8 + $0xa0] sm:$0xff] %v892_v37  ;;  %v877_v39 = vmax.f32 %v845_v38, 0.0  ;;  %v620_v40 = vpop.f32.mrf.mxu2 }
  0xd8   : > { %v709_v41 = vpop.f32.mrf.mxu3 }
  0xd9   : > { %909 = vst [vmem:[%s1381_s8 + $0x28] sm:$0xff] %v877_v39  ;;  %v710_v42 = vadd.f32 %v709_v41, %v620_v40  ;;  %v583_v43 = vpop.f32.mrf.mxu0 }
  0xda   : > { %v672_v44 = vpop.f32.mrf.mxu1 }
  0xdb   : > { %v861_v45 = vadd.f32 %v1374_v49, %v710_v42  ;;  %v673_v46 = vadd.f32 %v672_v44, %v583_v43 }
  0xdd   : > { %v893_v47 = vmax.f32 %v861_v45, 0.0  ;;  %v846_v48 = vadd.f32 %v1374_v49, %v673_v46 }
  0xdf   : > { %925 = vst [vmem:[%s1381_s8 + $0xa8] sm:$0xff] %v893_v47  ;;  %v878_v50 = vmax.f32 %v846_v48, 0.0  ;;  %v623_v51 = vpop.f32.mrf.mxu2 }
  0xe0   : > { %v712_v52 = vpop.f32.mrf.mxu3 }
  0xe1   : > { %910 = vst [vmem:[%s1381_s8 + $0x30] sm:$0xff] %v878_v50  ;;  %v713_v53 = vadd.f32 %v712_v52, %v623_v51  ;;  %v585_v54 = vpop.f32.mrf.mxu0 }
  0xe2   : > { %v674_v55 = vpop.f32.mrf.mxu1 }
  0xe3   : > { %v862_v56 = vadd.f32 %v1374_v49, %v713_v53  ;;  %v675_v57 = vadd.f32 %v674_v55, %v585_v54 }
  0xe5   : > { %v894_v58 = vmax.f32 %v862_v56, 0.0  ;;  %v847_v59 = vadd.f32 %v1374_v49, %v675_v57 }
  0xe7   : > { %926 = vst [vmem:[%s1381_s8 + $0xb0] sm:$0xff] %v894_v58  ;;  %v879_v60 = vmax.f32 %v847_v59, 0.0  ;;  %v625_v61 = vpop.f32.mrf.mxu2 }
  0xe8   : > { %v714_v62 = vpop.f32.mrf.mxu3 }
  0xe9   : > { %911 = vst [vmem:[%s1381_s8 + $0x38] sm:$0xff] %v879_v60  ;;  %v715_v63 = vadd.f32 %v714_v62, %v625_v61  ;;  %v588_v0 = vpop.f32.mrf.mxu0 }
  0xea   : > { %v677_v1 = vpop.f32.mrf.mxu1 }
  0xeb   : > { %v863_v2 = vadd.f32 %v1374_v49, %v715_v63  ;;  %v678_v3 = vadd.f32 %v677_v1, %v588_v0 }
  0xed   : > { %v895_v4 = vmax.f32 %v863_v2, 0.0  ;;  %v848_v5 = vadd.f32 %v1374_v49, %v678_v3 }
  0xef   : > { %927 = vst [vmem:[%s1381_s8 + $0xb8] sm:$0xff] %v895_v4  ;;  %v880_v6 = vmax.f32 %v848_v5, 0.0  ;;  %v628_v7 = vpop.f32.mrf.mxu2 }
  0xf0   : > { %v717_v8 = vpop.f32.mrf.mxu3 }
  0xf1   : > { %912 = vst [vmem:[%s1381_s8 + $0x40] sm:$0xff] %v880_v6  ;;  %v718_v9 = vadd.f32 %v717_v8, %v628_v7  ;;  %v590_v10 = vpop.f32.mrf.mxu0 }
  0xf2   : > { %v679_v11 = vpop.f32.mrf.mxu1 }
  0xf3   : > { %v864_v12 = vadd.f32 %v1374_v49, %v718_v9  ;;  %v680_v13 = vadd.f32 %v679_v11, %v590_v10 }
  0xf5   : > { %v896_v14 = vmax.f32 %v864_v12, 0.0  ;;  %v849_v15 = vadd.f32 %v1374_v49, %v680_v13 }
  0xf7   : > { %928 = vst [vmem:[%s1381_s8 + $0xc0] sm:$0xff] %v896_v14  ;;  %v881_v16 = vmax.f32 %v849_v15, 0.0  ;;  %v630_v17 = vpop.f32.mrf.mxu2 }
  0xf8   : > { %v719_v18 = vpop.f32.mrf.mxu3 }
  0xf9   : > { %913 = vst [vmem:[%s1381_s8 + $0x48] sm:$0xff] %v881_v16  ;;  %v720_v19 = vadd.f32 %v719_v18, %v630_v17  ;;  %v593_v20 = vpop.f32.mrf.mxu0 }
  0xfa   : > { %v682_v21 = vpop.f32.mrf.mxu1 }
  0xfb   : > { %v865_v22 = vadd.f32 %v1374_v49, %v720_v19  ;;  %v683_v23 = vadd.f32 %v682_v21, %v593_v20 }
  0xfd   : > { %v897_v24 = vmax.f32 %v865_v22, 0.0  ;;  %v850_v25 = vadd.f32 %v1374_v49, %v683_v23 }
  0xff   : > { %929 = vst [vmem:[%s1381_s8 + $0xc8] sm:$0xff] %v897_v24  ;;  %v882_v26 = vmax.f32 %v850_v25, 0.0  ;;  %v633_v27 = vpop.f32.mrf.mxu2 }
 0x100   : > { %v722_v28 = vpop.f32.mrf.mxu3 }
 0x101   : > { %914 = vst [vmem:[%s1381_s8 + $0x50] sm:$0xff] %v882_v26  ;;  %v723_v29 = vadd.f32 %v722_v28, %v633_v27  ;;  %v595_v30 = vpop.f32.mrf.mxu0 }
 0x102   : > { %v684_v31 = vpop.f32.mrf.mxu1 }
 0x103   : > { %v866_v32 = vadd.f32 %v1374_v49, %v723_v29  ;;  %v685_v33 = vadd.f32 %v684_v31, %v595_v30 }
 0x105   : > { %v898_v34 = vmax.f32 %v866_v32, 0.0  ;;  %v851_v35 = vadd.f32 %v1374_v49, %v685_v33 }
 0x107   : > { %930 = vst [vmem:[%s1381_s8 + $0xd0] sm:$0xff] %v898_v34  ;;  %v883_v36 = vmax.f32 %v851_v35, 0.0  ;;  %v635_v37 = vpop.f32.mrf.mxu2 }
 0x108   : > { %v724_v38 = vpop.f32.mrf.mxu3 }
 0x109   : > { %915 = vst [vmem:[%s1381_s8 + $0x58] sm:$0xff] %v883_v36  ;;  %v725_v39 = vadd.f32 %v724_v38, %v635_v37  ;;  %v598_v40 = vpop.f32.mrf.mxu0 }
 0x10a   : > { %v687_v41 = vpop.f32.mrf.mxu1 }
 0x10b   : > { %v867_v42 = vadd.f32 %v1374_v49, %v725_v39  ;;  %v688_v43 = vadd.f32 %v687_v41, %v598_v40 }
 0x10d   : > { %v899_v44 = vmax.f32 %v867_v42, 0.0  ;;  %v852_v45 = vadd.f32 %v1374_v49, %v688_v43 }
 0x10f   : > { %931 = vst [vmem:[%s1381_s8 + $0xd8] sm:$0xff] %v899_v44  ;;  %v884_v46 = vmax.f32 %v852_v45, 0.0  ;;  %v638_v47 = vpop.f32.mrf.mxu2 }
 0x110   : > { %v727_v48 = vpop.f32.mrf.mxu3 }
 0x111   : > { %916 = vst [vmem:[%s1381_s8 + $0x60] sm:$0xff] %v884_v46  ;;  %v728_v50 = vadd.f32 %v727_v48, %v638_v47  ;;  %v600_v51 = vpop.f32.mrf.mxu0 }
 0x112   : > { %v689_v52 = vpop.f32.mrf.mxu1 }
 0x113   : > { %v868_v53 = vadd.f32 %v1374_v49, %v728_v50  ;;  %v690_v54 = vadd.f32 %v689_v52, %v600_v51 }
 0x115   : > { %v900_v55 = vmax.f32 %v868_v53, 0.0  ;;  %v853_v56 = vadd.f32 %v1374_v49, %v690_v54 }
 0x117   : > { %932 = vst [vmem:[%s1381_s8 + $0xe0] sm:$0xff] %v900_v55  ;;  %v885_v57 = vmax.f32 %v853_v56, 0.0  ;;  %v640_v58 = vpop.f32.mrf.mxu2 }
 0x118   : > { %v729_v59 = vpop.f32.mrf.mxu3 }
 0x119   : > { %917 = vst [vmem:[%s1381_s8 + $0x68] sm:$0xff] %v885_v57  ;;  %v730_v60 = vadd.f32 %v729_v59, %v640_v58  ;;  %v603_v61 = vpop.f32.mrf.mxu0 }
 0x11a   : > { %v692_v62 = vpop.f32.mrf.mxu1 }
 0x11b   : > { %v869_v63 = vadd.f32 %v1374_v49, %v730_v60  ;;  %v693_v0 = vadd.f32 %v692_v62, %v603_v61 }
 0x11d   : > { %v901_v1 = vmax.f32 %v869_v63, 0.0  ;;  %v854_v2 = vadd.f32 %v1374_v49, %v693_v0 }
 0x11f   : > { %933 = vst [vmem:[%s1381_s8 + $0xe8] sm:$0xff] %v901_v1  ;;  %v886_v3 = vmax.f32 %v854_v2, 0.0  ;;  %v643_v4 = vpop.f32.mrf.mxu2 }
 0x120   : > { %v732_v5 = vpop.f32.mrf.mxu3 }
 0x121   : > { %918 = vst [vmem:[%s1381_s8 + $0x70] sm:$0xff] %v886_v3  ;;  %v733_v6 = vadd.f32 %v732_v5, %v643_v4  ;;  %v605_v7 = vpop.f32.mrf.mxu0 }
 0x122   : > { %v694_v8 = vpop.f32.mrf.mxu1 }
 0x123   : > { %v870_v9 = vadd.f32 %v1374_v49, %v733_v6  ;;  %v695_v10 = vadd.f32 %v694_v8, %v605_v7 }
 0x125   : > { %v902_v11 = vmax.f32 %v870_v9, 0.0  ;;  %v855_v12 = vadd.f32 %v1374_v49, %v695_v10 }
 0x127   : > { %934 = vst [vmem:[%s1381_s8 + $0xf0] sm:$0xff] %v902_v11  ;;  %v887_v13 = vmax.f32 %v855_v12, 0.0  ;;  %v645_v14 = vpop.f32.mrf.mxu2 }
 0x128   : > { %v734_v15 = vpop.f32.mrf.mxu3 }
 0x129   : > { %919 = vst [vmem:[%s1381_s8 + $0x78] sm:$0xff] %v887_v13  ;;  %v735_v16 = vadd.f32 %v734_v15, %v645_v14 }
 0x12b   : > { %v871_v17 = vadd.f32 %v1374_v49, %v735_v16 }
 0x12d   : > { %v903_v18 = vmax.f32 %v871_v17, 0.0 }
 0x12f   : > { %935 = vst [vmem:[%s1381_s8 + $0xf8] sm:$0xff] %v903_v18 }
 0x130 PF: > { %s13_s14 = sadd.s32 1, %s1208_s14   ;;  %s1459_s12 = smov %s1204_s13 }
 0x131   : > { %p10_p5 = scmp.ge.s32.totalorder %s13_s14, 10   ;;  %s1460_s13 = smov %s1462_s15 }
 0x133   :  { %12 = sbr.rel (!%p10_p5) target bundleno = 2 (0x2), region = 76 }

// kernel: fuse_backbone_forward.37
= control target key start
LH: loop header
LB: loop body
LE: loop exit
PB: predicated region body
PF: predicated region fallthrough
CT: control target
= control target key end

     0   :  { %s1749_s12 = smov 0   ;;  %s1751_s13 = smov 0   ;;  %s2322_s0 = inlined_call_operand.vmem [shape: f32[512,1152], index: 0, kind: input, shape index: {}]   ;;  %s2323_s1 = inlined_call_operand.vmem [shape: bf16[1152,128], index: 1, kind: input, shape index: {}]   ;;  %s2324_s2 = inlined_call_operand.vmem [shape: f32[1,128], index: 2, kind: input, shape index: {}]   ;;  %s2325_s3 = inlined_call_operand.vmem [shape: f32[512,128], index: 3, kind: output, shape index: {}]  }
   0x1   :  { %s1753_s14 = smov 0   ;;  %s1755_s15 = smov 0  }
   0x2   :  { %s1757_s16 = smov 0   ;;  %s1759_s17 = smov 0  }
   0x3   :  { %s1761_s18 = smov 0  }
   0x4 LB: > { %s25_s19 = sadd.s32 1, %s1718_s16  ;;  %s32_s20 = sadd.s32 1, %s1722_s17  ;;  %s1726_s18 = sphi %s1761_s18, %s13_s18   ;;  %s1722_s17 = sphi %s1759_s17, %s2331_s17   ;;  %s1718_s16 = sphi %s1757_s16, %s2330_s16   ;;  %s1714_s15 = sphi %s1755_s15, %s2329_s15   ;;  %s1710_s14 = sphi %s1753_s14, %s2328_s14   ;;  %s1706_s13 = sphi %s1751_s13, %s2327_s13   ;;  %s1702_s12 = sphi %s1749_s12, %s2326_s12  }
   0x5   : > { %p26_p0 = scmp.ge.s32.totalorder %s25_s19, 3  ;;  %p48_p1 = scmp.ne.s32.totalorder %s1706_s13, %s1702_s12 }
   0x6   : > { %p49_p2 = scmp.eq.s32.totalorder %s1726_s18, 0  ;;  %s41_s24 = sadd.s32 1, %s1706_s13 }
   0x7   : > { %s2333_s19 = smov (%p26_p0, %s25_s19), 0  ;;  %s2335_s20 = smov (!%p26_p0, %s32_s20), %s1722_s17 }
   0x8   : > { %p50_p3 = por %p49_p2, %p48_p1  ;;  %p34_p4 = scmp.ge.s32.totalorder %s2335_s20, 2 }
   0x9   : > { %s37_s21 = ssub.s32 %s1718_s16, %s2333_s19  ;;  %p1455_p6 = scmp.ge.s32.totalorder %s1726_s18, 6 }
   0xa   : > { %s2337_s20 = smov (%p34_p4, %s2335_s20), 0 }
   0xb   : > { %s36_s22 = ssub.s32 %s1722_s17, %s2337_s20  ;;  %162 = sbr.rel (%p1455_p6) target bundleno = 121 (0x79), region = 20 }
   0xc   : > { %s38_s23 = sor.u32 %s37_s21, %s36_s22 }
   0xd   : > { %p39_p5 = scmp.eq.s32.totalorder %s38_s23, 0 }
   0xf   : > { %s1800_s25 = scalar_select %p39_p5, %s1706_s13, %s41_s24  }
  0x10   : > { %165 = sbr.rel (!%p50_p3) target bundleno = 121 (0x79), region = 24  ;;  %s167_s26 = sand.u32 (%p50_p3), 1, %s1706_s13  }
  0x11   : > { %s171_s27 = smul.u32 (%p50_p3), 3, %s1718_s16 }
  0x12   : > { %s1611_s28 = smul.u32 (%p50_p3), 768, %s167_s26 }
  0x13   : > { %s1612_s29 = smul.u32 (%p50_p3), 288, %s1722_s17 }
  0x14   : > { %s1814_s8 = scalar_lea.vmem (%p50_p3), [#allocation3], %s1611_s28 }
  0x15   : > { %s173_s30 = sadd.s32 %s1612_s29, %s171_s27 }
  0x16   : > { %s1458_s4 = sshll.u32 %s173_s30, 3 }
  0x17   : > { %s1809_s7 = scalar_lea.vmem %s2322_s0, %s1458_s4 }
  0x18   : > { %v188_v0 = vld [vmem:[%s1809_s7] sm:$0xff]  ;;  %v190_v1 = vld [vmem:[%s1809_s7 + $0x8] sm:$0xff]  ;;  %v192_v2 = vld [vmem:[%s1809_s7 + $0x10] sm:$0xff] }
  0x19   : > { %189 = vst [vmem:[%s1814_s8] sm:$0xff] %v188_v0  ;;  %v194_v3 = vld [vmem:[%s1809_s7 + $0x48] sm:$0xff]  ;;  %v196_v4 = vld [vmem:[%s1809_s7 + $0x50] sm:$0xff]  ;;  %v198_v5 = vld [vmem:[%s1809_s7 + $0x58] sm:$0xff] }
  0x1a   : > { %191 = vst [vmem:[%s1814_s8 + $0x8] sm:$0xff] %v190_v1  ;;  %v200_v6 = vld [vmem:[%s1809_s7 + $0x90] sm:$0xff]  ;;  %v202_v7 = vld [vmem:[%s1809_s7 + $0x98] sm:$0xff]  ;;  %v204_v8 = vld [vmem:[%s1809_s7 + $0xa0] sm:$0xff] }
  0x1b   : > { %193 = vst [vmem:[%s1814_s8 + $0x10] sm:$0xff] %v192_v2  ;;  %v206_v9 = vld [vmem:[%s1809_s7 + $0xd8] sm:$0xff]  ;;  %v208_v10 = vld [vmem:[%s1809_s7 + $0xe0] sm:$0xff]  ;;  %v210_v11 = vld [vmem:[%s1809_s7 + $0xe8] sm:$0xff] }
  0x1c   : > { %195 = vst [vmem:[%s1814_s8 + $0x18] sm:$0xff] %v194_v3  ;;  %v212_v12 = vld [vmem:[%s1809_s7 + $0x120] sm:$0xff]  ;;  %v214_v13 = vld [vmem:[%s1809_s7 + $0x128] sm:$0xff]  ;;  %v216_v14 = vld [vmem:[%s1809_s7 + $0x130] sm:$0xff] }
  0x1d   : > { %197 = vst [vmem:[%s1814_s8 + $0x20] sm:$0xff] %v196_v4  ;;  %v218_v15 = vld [vmem:[%s1809_s7 + $0x168] sm:$0xff]  ;;  %v220_v16 = vld [vmem:[%s1809_s7 + $0x170] sm:$0xff]  ;;  %v222_v17 = vld [vmem:[%s1809_s7 + $0x178] sm:$0xff] }
  0x1e   : > { %199 = vst [vmem:[%s1814_s8 + $0x28] sm:$0xff] %v198_v5  ;;  %v224_v18 = vld [vmem:[%s1809_s7 + $0x1b0] sm:$0xff]  ;;  %v226_v19 = vld [vmem:[%s1809_s7 + $0x1b8] sm:$0xff]  ;;  %v228_v20 = vld [vmem:[%s1809_s7 + $0x1c0] sm:$0xff] }
  0x1f   : > { %201 = vst [vmem:[%s1814_s8 + $0x30] sm:$0xff] %v200_v6  ;;  %v230_v21 = vld [vmem:[%s1809_s7 + $0x1f8] sm:$0xff]  ;;  %v232_v22 = vld [vmem:[%s1809_s7 + $0x200] sm:$0xff]  ;;  %v234_v23 = vld [vmem:[%s1809_s7 + $0x208] sm:$0xff] }
  0x20   : > { %203 = vst [vmem:[%s1814_s8 + $0x38] sm:$0xff] %v202_v7  ;;  %v236_v24 = vld [vmem:[%s1809_s7 + $0x240] sm:$0xff]  ;;  %v238_v25 = vld [vmem:[%s1809_s7 + $0x248] sm:$0xff]  ;;  %v240_v26 = vld [vmem:[%s1809_s7 + $0x250] sm:$0xff] }
  0x21   : > { %205 = vst [vmem:[%s1814_s8 + $0x40] sm:$0xff] %v204_v8  ;;  %v242_v27 = vld [vmem:[%s1809_s7 + $0x288] sm:$0xff]  ;;  %v244_v28 = vld [vmem:[%s1809_s7 + $0x290] sm:$0xff]  ;;  %v246_v29 = vld [vmem:[%s1809_s7 + $0x298] sm:$0xff] }
  0x22   : > { %207 = vst [vmem:[%s1814_s8 + $0x48] sm:$0xff] %v206_v9  ;;  %v248_v30 = vld [vmem:[%s1809_s7 + $0x2d0] sm:$0xff]  ;;  %v250_v31 = vld [vmem:[%s1809_s7 + $0x2d8] sm:$0xff]  ;;  %v252_v32 = vld [vmem:[%s1809_s7 + $0x2e0] sm:$0xff] }
  0x23   : > { %209 = vst [vmem:[%s1814_s8 + $0x50] sm:$0xff] %v208_v10  ;;  %v254_v33 = vld [vmem:[%s1809_s7 + $0x318] sm:$0xff]  ;;  %v256_v34 = vld [vmem:[%s1809_s7 + $0x320] sm:$0xff]  ;;  %v258_v35 = vld [vmem:[%s1809_s7 + $0x328] sm:$0xff] }
  0x24   : > { %211 = vst [vmem:[%s1814_s8 + $0x58] sm:$0xff] %v210_v11  ;;  %v260_v36 = vld [vmem:[%s1809_s7 + $0x360] sm:$0xff]  ;;  %v262_v37 = vld [vmem:[%s1809_s7 + $0x368] sm:$0xff]  ;;  %v264_v38 = vld [vmem:[%s1809_s7 + $0x370] sm:$0xff] }
  0x25   : > { %213 = vst [vmem:[%s1814_s8 + $0x60] sm:$0xff] %v212_v12  ;;  %v266_v39 = vld [vmem:[%s1809_s7 + $0x3a8] sm:$0xff]  ;;  %v268_v40 = vld [vmem:[%s1809_s7 + $0x3b0] sm:$0xff]  ;;  %v270_v41 = vld [vmem:[%s1809_s7 + $0x3b8] sm:$0xff] }
  0x26   : > { %215 = vst [vmem:[%s1814_s8 + $0x68] sm:$0xff] %v214_v13  ;;  %v272_v42 = vld [vmem:[%s1809_s7 + $0x3f0] sm:$0xff]  ;;  %v274_v43 = vld [vmem:[%s1809_s7 + $0x3f8] sm:$0xff]  ;;  %v276_v44 = vld [vmem:[%s1809_s7 + $0x400] sm:$0xff] }
  0x27   : > { %217 = vst [vmem:[%s1814_s8 + $0x70] sm:$0xff] %v216_v14  ;;  %v278_v45 = vld [vmem:[%s1809_s7 + $0x438] sm:$0xff]  ;;  %v280_v46 = vld [vmem:[%s1809_s7 + $0x440] sm:$0xff]  ;;  %v282_v47 = vld [vmem:[%s1809_s7 + $0x448] sm:$0xff] }
  0x28   : > { %219 = vst [vmem:[%s1814_s8 + $0x78] sm:$0xff] %v218_v15  ;;  %v284_v48 = vld [vmem:[%s1809_s7 + $0x480] sm:$0xff]  ;;  %v286_v49 = vld [vmem:[%s1809_s7 + $0x488] sm:$0xff]  ;;  %v288_v50 = vld [vmem:[%s1809_s7 + $0x490] sm:$0xff] }
  0x29   : > { %221 = vst [vmem:[%s1814_s8 + $0x80] sm:$0xff] %v220_v16  ;;  %v290_v51 = vld [vmem:[%s1809_s7 + $0x4c8] sm:$0xff]  ;;  %v292_v52 = vld [vmem:[%s1809_s7 + $0x4d0] sm:$0xff]  ;;  %v294_v53 = vld [vmem:[%s1809_s7 + $0x4d8] sm:$0xff] }
  0x2a   : > { %223 = vst [vmem:[%s1814_s8 + $0x88] sm:$0xff] %v222_v17  ;;  %v296_v54 = vld [vmem:[%s1809_s7 + $0x510] sm:$0xff]  ;;  %v298_v55 = vld [vmem:[%s1809_s7 + $0x518] sm:$0xff]  ;;  %v300_v56 = vld [vmem:[%s1809_s7 + $0x520] sm:$0xff] }
  0x2b   : > { %225 = vst [vmem:[%s1814_s8 + $0x90] sm:$0xff] %v224_v18  ;;  %v302_v57 = vld [vmem:[%s1809_s7 + $0x558] sm:$0xff]  ;;  %v304_v58 = vld [vmem:[%s1809_s7 + $0x560] sm:$0xff]  ;;  %v306_v59 = vld [vmem:[%s1809_s7 + $0x568] sm:$0xff] }
  0x2c   : > { %227 = vst [vmem:[%s1814_s8 + $0x98] sm:$0xff] %v226_v19  ;;  %v308_v60 = vld [vmem:[%s1809_s7 + $0x5a0] sm:$0xff]  ;;  %v310_v61 = vld [vmem:[%s1809_s7 + $0x5a8] sm:$0xff]  ;;  %v312_v62 = vld [vmem:[%s1809_s7 + $0x5b0] sm:$0xff] }
  0x2d   : > { %229 = vst [vmem:[%s1814_s8 + $0xa0] sm:$0xff] %v228_v20  ;;  %v314_v63 = vld [vmem:[%s1809_s7 + $0x5e8] sm:$0xff]  ;;  %v316_v0 = vld [vmem:[%s1809_s7 + $0x5f0] sm:$0xff]  ;;  %v318_v1 = vld [vmem:[%s1809_s7 + $0x5f8] sm:$0xff] }
  0x2e   : > { %231 = vst [vmem:[%s1814_s8 + $0xa8] sm:$0xff] %v230_v21  ;;  %v320_v2 = vld [vmem:[%s1809_s7 + $0x630] sm:$0xff]  ;;  %v322_v3 = vld [vmem:[%s1809_s7 + $0x638] sm:$0xff]  ;;  %v324_v4 = vld [vmem:[%s1809_s7 + $0x640] sm:$0xff] }
  0x2f   : > { %233 = vst [vmem:[%s1814_s8 + $0xb0] sm:$0xff] %v232_v22  ;;  %v326_v5 = vld [vmem:[%s1809_s7 + $0x678] sm:$0xff]  ;;  %v328_v6 = vld [vmem:[%s1809_s7 + $0x680] sm:$0xff]  ;;  %v330_v7 = vld [vmem:[%s1809_s7 + $0x688] sm:$0xff] }
  0x30   : > { %235 = vst [vmem:[%s1814_s8 + $0xb8] sm:$0xff] %v234_v23  ;;  %v332_v8 = vld [vmem:[%s1809_s7 + $0x6c0] sm:$0xff]  ;;  %v334_v9 = vld [vmem:[%s1809_s7 + $0x6c8] sm:$0xff]  ;;  %v336_v10 = vld [vmem:[%s1809_s7 + $0x6d0] sm:$0xff] }
  0x31   : > { %237 = vst [vmem:[%s1814_s8 + $0xc0] sm:$0xff] %v236_v24  ;;  %v338_v11 = vld [vmem:[%s1809_s7 + $0x708] sm:$0xff]  ;;  %v340_v12 = vld [vmem:[%s1809_s7 + $0x710] sm:$0xff]  ;;  %v342_v13 = vld [vmem:[%s1809_s7 + $0x718] sm:$0xff] }
  0x32   : > { %239 = vst [vmem:[%s1814_s8 + $0xc8] sm:$0xff] %v238_v25  ;;  %v344_v14 = vld [vmem:[%s1809_s7 + $0x750] sm:$0xff]  ;;  %v346_v15 = vld [vmem:[%s1809_s7 + $0x758] sm:$0xff]  ;;  %v348_v16 = vld [vmem:[%s1809_s7 + $0x760] sm:$0xff] }
  0x33   : > { %241 = vst [vmem:[%s1814_s8 + $0xd0] sm:$0xff] %v240_v26  ;;  %v350_v17 = vld [vmem:[%s1809_s7 + $0x798] sm:$0xff]  ;;  %v352_v18 = vld [vmem:[%s1809_s7 + $0x7a0] sm:$0xff]  ;;  %v354_v19 = vld [vmem:[%s1809_s7 + $0x7a8] sm:$0xff] }
  0x34   : > { %243 = vst [vmem:[%s1814_s8 + $0xd8] sm:$0xff] %v242_v27  ;;  %v356_v20 = vld [vmem:[%s1809_s7 + $0x7e0] sm:$0xff]  ;;  %v358_v21 = vld [vmem:[%s1809_s7 + $0x7e8] sm:$0xff]  ;;  %v360_v22 = vld [vmem:[%s1809_s7 + $0x7f0] sm:$0xff] }
  0x35   : > { %245 = vst [vmem:[%s1814_s8 + $0xe0] sm:$0xff] %v244_v28  ;;  %v362_v23 = vld [vmem:[%s1809_s7 + $0x828] sm:$0xff]  ;;  %v364_v24 = vld [vmem:[%s1809_s7 + $0x830] sm:$0xff]  ;;  %v366_v25 = vld [vmem:[%s1809_s7 + $0x838] sm:$0xff] }
  0x36   : > { %247 = vst [vmem:[%s1814_s8 + $0xe8] sm:$0xff] %v246_v29  ;;  %v368_v26 = vld [vmem:[%s1809_s7 + $0x870] sm:$0xff]  ;;  %v370_v27 = vld [vmem:[%s1809_s7 + $0x878] sm:$0xff]  ;;  %v372_v28 = vld [vmem:[%s1809_s7 + $0x880] sm:$0xff] }
  0x37   : > { %249 = vst [vmem:[%s1814_s8 + $0xf0] sm:$0xff] %v248_v30  ;;  %v374_v29 = vld [vmem:[%s1809_s7 + $0x8b8] sm:$0xff]  ;;  %v376_v30 = vld [vmem:[%s1809_s7 + $0x8c0] sm:$0xff] }
  0x38   : > { %251 = vst [vmem:[%s1814_s8 + $0xf8] sm:$0xff] %v250_v31  ;;  %v378_v31 = vld [vmem:[%s1809_s7 + $0x8c8] sm:$0xff] }
  0x39   : > { %253 = vst [vmem:[%s1814_s8 + $0x100] sm:$0xff] %v252_v32 }
  0x3a   : > { %255 = vst [vmem:[%s1814_s8 + $0x108] sm:$0xff] %v254_v33 }
  0x3b   : > { %257 = vst [vmem:[%s1814_s8 + $0x110] sm:$0xff] %v256_v34 }
  0x3c   : > { %259 = vst [vmem:[%s1814_s8 + $0x118] sm:$0xff] %v258_v35 }
  0x3d   : > { %261 = vst [vmem:[%s1814_s8 + $0x120] sm:$0xff] %v260_v36 }
  0x3e   : > { %263 = vst [vmem:[%s1814_s8 + $0x128] sm:$0xff] %v262_v37 }
  0x3f   : > { %265 = vst [vmem:[%s1814_s8 + $0x130] sm:$0xff] %v264_v38 }
  0x40   : > { %267 = vst [vmem:[%s1814_s8 + $0x138] sm:$0xff] %v266_v39 }
  0x41   : > { %269 = vst [vmem:[%s1814_s8 + $0x140] sm:$0xff] %v268_v40 }
  0x42   : > { %271 = vst [vmem:[%s1814_s8 + $0x148] sm:$0xff] %v270_v41 }
  0x43   : > { %273 = vst [vmem:[%s1814_s8 + $0x150] sm:$0xff] %v272_v42 }
  0x44   : > { %275 = vst [vmem:[%s1814_s8 + $0x158] sm:$0xff] %v274_v43 }
  0x45   : > { %277 = vst [vmem:[%s1814_s8 + $0x160] sm:$0xff] %v276_v44 }
  0x46   : > { %279 = vst [vmem:[%s1814_s8 + $0x168] sm:$0xff] %v278_v45 }
  0x47   : > { %281 = vst [vmem:[%s1814_s8 + $0x170] sm:$0xff] %v280_v46 }
  0x48   : > { %283 = vst [vmem:[%s1814_s8 + $0x178] sm:$0xff] %v282_v47 }
  0x49   : > { %285 = vst [vmem:[%s1814_s8 + $0x180] sm:$0xff] %v284_v48 }
  0x4a   : > { %287 = vst [vmem:[%s1814_s8 + $0x188] sm:$0xff] %v286_v49 }
  0x4b   : > { %289 = vst [vmem:[%s1814_s8 + $0x190] sm:$0xff] %v288_v50 }
  0x4c   : > { %291 = vst [vmem:[%s1814_s8 + $0x198] sm:$0xff] %v290_v51 }
  0x4d   : > { %293 = vst [vmem:[%s1814_s8 + $0x1a0] sm:$0xff] %v292_v52 }
  0x4e   : > { %295 = vst [vmem:[%s1814_s8 + $0x1a8] sm:$0xff] %v294_v53 }
  0x4f   : > { %297 = vst [vmem:[%s1814_s8 + $0x1b0] sm:$0xff] %v296_v54 }
  0x50   : > { %299 = vst [vmem:[%s1814_s8 + $0x1b8] sm:$0xff] %v298_v55 }
  0x51   : > { %301 = vst [vmem:[%s1814_s8 + $0x1c0] sm:$0xff] %v300_v56 }
  0x52   : > { %303 = vst [vmem:[%s1814_s8 + $0x1c8] sm:$0xff] %v302_v57 }
  0x53   : > { %305 = vst [vmem:[%s1814_s8 + $0x1d0] sm:$0xff] %v304_v58 }
  0x54   : > { %307 = vst [vmem:[%s1814_s8 + $0x1d8] sm:$0xff] %v306_v59 }
  0x55   : > { %309 = vst [vmem:[%s1814_s8 + $0x1e0] sm:$0xff] %v308_v60 }
  0x56   : > { %311 = vst [vmem:[%s1814_s8 + $0x1e8] sm:$0xff] %v310_v61 }
  0x57   : > { %313 = vst [vmem:[%s1814_s8 + $0x1f0] sm:$0xff] %v312_v62 }
  0x58   : > { %315 = vst [vmem:[%s1814_s8 + $0x1f8] sm:$0xff] %v314_v63 }
  0x59   : > { %317 = vst [vmem:[%s1814_s8 + $0x200] sm:$0xff] %v316_v0 }
  0x5a   : > { %319 = vst [vmem:[%s1814_s8 + $0x208] sm:$0xff] %v318_v1 }
  0x5b   : > { %321 = vst [vmem:[%s1814_s8 + $0x210] sm:$0xff] %v320_v2 }
  0x5c   : > { %323 = vst [vmem:[%s1814_s8 + $0x218] sm:$0xff] %v322_v3 }
  0x5d   : > { %325 = vst [vmem:[%s1814_s8 + $0x220] sm:$0xff] %v324_v4 }
  0x5e   : > { %327 = vst [vmem:[%s1814_s8 + $0x228] sm:$0xff] %v326_v5 }
  0x5f   : > { %329 = vst [vmem:[%s1814_s8 + $0x230] sm:$0xff] %v328_v6 }
  0x60   : > { %331 = vst [vmem:[%s1814_s8 + $0x238] sm:$0xff] %v330_v7 }
  0x61   : > { %333 = vst [vmem:[%s1814_s8 + $0x240] sm:$0xff] %v332_v8 }
  0x62   : > { %335 = vst [vmem:[%s1814_s8 + $0x248] sm:$0xff] %v334_v9 }
  0x63   : > { %337 = vst [vmem:[%s1814_s8 + $0x250] sm:$0xff] %v336_v10 }
  0x64   : > { %339 = vst [vmem:[%s1814_s8 + $0x258] sm:$0xff] %v338_v11 }
  0x65   : > { %341 = vst [vmem:[%s1814_s8 + $0x260] sm:$0xff] %v340_v12 }
  0x66   : > { %343 = vst [vmem:[%s1814_s8 + $0x268] sm:$0xff] %v342_v13 }
  0x67   : > { %345 = vst [vmem:[%s1814_s8 + $0x270] sm:$0xff] %v344_v14 }
  0x68   : > { %347 = vst [vmem:[%s1814_s8 + $0x278] sm:$0xff] %v346_v15 }
  0x69   : > { %349 = vst [vmem:[%s1814_s8 + $0x280] sm:$0xff] %v348_v16 }
  0x6a   : > { %351 = vst [vmem:[%s1814_s8 + $0x288] sm:$0xff] %v350_v17 }
  0x6b   : > { %353 = vst [vmem:[%s1814_s8 + $0x290] sm:$0xff] %v352_v18 }
  0x6c   : > { %355 = vst [vmem:[%s1814_s8 + $0x298] sm:$0xff] %v354_v19 }
  0x6d   : > { %357 = vst [vmem:[%s1814_s8 + $0x2a0] sm:$0xff] %v356_v20 }
  0x6e   : > { %359 = vst [vmem:[%s1814_s8 + $0x2a8] sm:$0xff] %v358_v21 }
  0x6f   : > { %361 = vst [vmem:[%s1814_s8 + $0x2b0] sm:$0xff] %v360_v22 }
  0x70   : > { %363 = vst [vmem:[%s1814_s8 + $0x2b8] sm:$0xff] %v362_v23 }
  0x71   : > { %365 = vst [vmem:[%s1814_s8 + $0x2c0] sm:$0xff] %v364_v24 }
  0x72   : > { %367 = vst [vmem:[%s1814_s8 + $0x2c8] sm:$0xff] %v366_v25 }
  0x73   : > { %369 = vst [vmem:[%s1814_s8 + $0x2d0] sm:$0xff] %v368_v26 }
  0x74   : > { %371 = vst [vmem:[%s1814_s8 + $0x2d8] sm:$0xff] %v370_v27 }
  0x75   : > { %373 = vst [vmem:[%s1814_s8 + $0x2e0] sm:$0xff] %v372_v28 }
  0x76   : > { %375 = vst [vmem:[%s1814_s8 + $0x2e8] sm:$0xff] %v374_v29 }
  0x77   : > { %377 = vst [vmem:[%s1814_s8 + $0x2f0] sm:$0xff] %v376_v30 }
  0x78   : > { %379 = vst [vmem:[%s1814_s8 + $0x2f8] sm:$0xff] %v378_v31 }
  0x79 PF: > { %p1459_p7 = scmp.ge.s32.totalorder %s1726_s18, 1  ;;  %p396_p8 = scmp.lt.s32.totalorder %s1726_s18, 7 }
  0x7b   : > { %p397_p9 = pnand %p1459_p7, %p396_p8 }
  0x7c   : > { %s403_s9 = sand.u32 (!%p397_p9), 1, %s1702_s12   ;;  %s442_s10 = smul.u32 (!%p397_p9), 48, %s1710_s14 }
  0x7d   : > { %400 = sbr.rel (%p397_p9) target bundleno = 563 (0x233), region = 51  ;;  %s1461_s21 = sshll.u32 (!%p397_p9), %s1714_s15, 5 }
  0x7e   : > { %s1613_s11 = smul.u32 (!%p397_p9), 768, %s403_s9  ;;  %p443_p10 = scmp.lt.s32.totalorder (!%p397_p9), %s442_s10, 143 }
  0x7f   : > { %p455_p11 = scmp.lt.s32.totalorder (!%p397_p9), %s1461_s21, 63  ;;  %p1463_p12 = scmp.ne.s32.totalorder (!%p397_p9), %s1710_s14, 0 }
  0x80   : > { %s2020_s12 = scalar_lea.vmem (!%p397_p9), [#allocation3], %s1613_s11 }
  0x82   : > { %s2339_s10 = smov (!%p443_p10, %s442_s10), 143  ;;  %s2341_s21 = smov (!%p455_p11, %s1461_s21), 63 }
  0x83   : > { %s1460_s22 = sshll.u32 %s2339_s10, 2  ;;  %s1462_s27 = sshll.u32 %s2341_s21, 3 }
  0x84   : > { %s2013_s26 = scalar_lea.vmem %s2323_s1, %s1460_s22  ;;  %s2018_s30 = scalar_lea.vmem %s2325_s3, %s1462_s27 }
  0x85   : > { %466 = sbr.rel (%p1463_p12) target bundleno = 171 (0xab), region = 59 }
  0x8a   : > { %v1728_v32 = vmov 0.0  }
  0x8b   : > { %467 = vst [vmem:[#allocation2 + $0xb0] sm:$0xff] %v1728_v32 }
  0x8c   : > { %468 = vst [vmem:[#allocation2] sm:$0xff] %v1728_v32 }
  0x8d   : > { %469 = vst [vmem:[#allocation2 + $0xd8] sm:$0xff] %v1728_v32 }
  0x8e   : > { %470 = vst [vmem:[#allocation2 + $0x18] sm:$0xff] %v1728_v32 }
  0x8f   : > { %471 = vst [vmem:[#allocation2 + $0x50] sm:$0xff] %v1728_v32 }
  0x90   : > { %472 = vst [vmem:[#allocation2 + $0x68] sm:$0xff] %v1728_v32 }
  0x91   : > { %473 = vst [vmem:[#allocation2 + $0x30] sm:$0xff] %v1728_v32 }
  0x92   : > { %474 = vst [vmem:[#allocation2 + $0x48] sm:$0xff] %v1728_v32 }
  0x93   : > { %475 = vst [vmem:[#allocation2 + $0x80] sm:$0xff] %v1728_v32 }
  0x94   : > { %476 = vst [vmem:[#allocation2 + $0x88] sm:$0xff] %v1728_v32 }
  0x95   : > { %477 = vst [vmem:[#allocation2 + $0xe8] sm:$0xff] %v1728_v32 }
  0x96   : > { %478 = vst [vmem:[#allocation2 + $0xb8] sm:$0xff] %v1728_v32 }
  0x97   : > { %479 = vst [vmem:[#allocation2 + $0x60] sm:$0xff] %v1728_v32 }
  0x98   : > { %480 = vst [vmem:[#allocation2 + $0xf0] sm:$0xff] %v1728_v32 }
  0x99   : > { %481 = vst [vmem:[#allocation2 + $0x8] sm:$0xff] %v1728_v32 }
  0x9a   : > { %482 = vst [vmem:[#allocation2 + $0x78] sm:$0xff] %v1728_v32 }
  0x9b   : > { %483 = vst [vmem:[#allocation2 + $0x38] sm:$0xff] %v1728_v32 }
  0x9c   : > { %484 = vst [vmem:[#allocation2 + $0x58] sm:$0xff] %v1728_v32 }
  0x9d   : > { %485 = vst [vmem:[#allocation2 + $0x40] sm:$0xff] %v1728_v32 }
  0x9e   : > { %486 = vst [vmem:[#allocation2 + $0xc8] sm:$0xff] %v1728_v32 }
  0x9f   : > { %487 = vst [vmem:[#allocation2 + $0xe0] sm:$0xff] %v1728_v32 }
  0xa0   : > { %488 = vst [vmem:[#allocation2 + $0x90] sm:$0xff] %v1728_v32 }
  0xa1   : > { %489 = vst [vmem:[#allocation2 + $0x70] sm:$0xff] %v1728_v32 }
  0xa2   : > { %490 = vst [vmem:[#allocation2 + $0xc0] sm:$0xff] %v1728_v32 }
  0xa3   : > { %491 = vst [vmem:[#allocation2 + $0xa8] sm:$0xff] %v1728_v32 }
  0xa4   : > { %492 = vst [vmem:[#allocation2 + $0xd0] sm:$0xff] %v1728_v32 }
  0xa5   : > { %493 = vst [vmem:[#allocation2 + $0x10] sm:$0xff] %v1728_v32 }
  0xa6   : > { %494 = vst [vmem:[#allocation2 + $0x28] sm:$0xff] %v1728_v32 }
  0xa7   : > { %495 = vst [vmem:[#allocation2 + $0xa0] sm:$0xff] %v1728_v32 }
  0xa8   : > { %496 = vst [vmem:[#allocation2 + $0xf8] sm:$0xff] %v1728_v32 }
  0xa9   : > { %497 = vst [vmem:[#allocation2 + $0x20] sm:$0xff] %v1728_v32 }
  0xaa   : > { %498 = vst [vmem:[#allocation2 + $0x98] sm:$0xff] %v1728_v32 }
  0xab PF: > { %v1570_v33 = vld [vmem:[%s2013_s26 + $0x38] sm:$0xff]  ;;  %v1569_v36 = vld [vmem:[%s2013_s26 + $0x30] sm:$0xff]  ;;  %v1568_v39 = vld [vmem:[%s2013_s26 + $0x28] sm:$0xff]  ;;  %p1560_p13 = scmp.ne.s32.totalorder %s1710_s14, 2 }
  0xac   : > { %v2025_v34 = vld [vmem:[%s2013_s26 + $0x78] sm:$0xff]  ;;  %867 = vmatpush.bf16.msra.mxu0 %v1570_v33  ;;  %1587 = vmatpush.bf16.msra.mxu3 %v1570_v33  ;;  %v2034_v37 = vld [vmem:[%s2013_s26 + $0x70] sm:$0xff]  ;;  %v1576_v40 = vld [vmem:[%s2013_s26 + $0x68] sm:$0xff] }
  0xad   : > { %v2028_v35 = vld [vmem:[%s2013_s26 + $0xb8] sm:$0xff]  ;;  %956 = vmatpush.bf16.msra.mxu1 %v2025_v34  ;;  %v2037_v38 = vld [vmem:[%s2013_s26 + $0xb0] sm:$0xff]  ;;  %v2044_v41 = vld [vmem:[%s2013_s26 + $0xa8] sm:$0xff] }
  0xae   : > { %1045 = vmatpush.bf16.msra.mxu2 %v2028_v35  ;;  %v1567_v42 = vld [vmem:[%s2013_s26 + $0x20] sm:$0xff]  ;;  %v1566_v45 = vld [vmem:[%s2013_s26 + $0x18] sm:$0xff]  ;;  %v1565_v48 = vld [vmem:[%s2013_s26 + $0x10] sm:$0xff] }
  0xaf   : > { %v1575_v43 = vld [vmem:[%s2013_s26 + $0x60] sm:$0xff]  ;;  %v1574_v46 = vld [vmem:[%s2013_s26 + $0x58] sm:$0xff]  ;;  %v1573_v49 = vld [vmem:[%s2013_s26 + $0x50] sm:$0xff] }
  0xb0   : > { %868 = vmatpush.bf16.msra.mxu0 %v1569_v36  ;;  %1588 = vmatpush.bf16.msra.mxu3 %v1569_v36  ;;  %v2050_v44 = vld [vmem:[%s2013_s26 + $0xa0] sm:$0xff]  ;;  %v2056_v47 = vld [vmem:[%s2013_s26 + $0x98] sm:$0xff]  ;;  %v2062_v50 = vld [vmem:[%s2013_s26 + $0x90] sm:$0xff] }
  0xb1   : > { %957 = vmatpush.bf16.msra.mxu1 %v2034_v37  ;;  %v1564_v51 = vld [vmem:[%s2013_s26 + $0x8] sm:$0xff]  ;;  %v1563_v54 = vld [vmem:[%s2013_s26] sm:$0xff]  ;;  %v534_v58 = vld [vmem:[%s2020_s12 + $0x18] sm:$0xff] }
  0xb2   : > { %1046 = vmatpush.bf16.msra.mxu2 %v2037_v38  ;;  %v1572_v52 = vld [vmem:[%s2013_s26 + $0x48] sm:$0xff]  ;;  %v1571_v55 = vld [vmem:[%s2013_s26 + $0x40] sm:$0xff]  ;;  %v606_v60 = vld [vmem:[%s2020_s12 + $0x258] sm:$0xff] }
  0xb3   : > { %v2068_v53 = vld [vmem:[%s2013_s26 + $0x88] sm:$0xff]  ;;  %v2073_v56 = vld [vmem:[%s2013_s26 + $0x80] sm:$0xff]  ;;  %v533_v63 = vld [vmem:[%s2020_s12 + $0x10] sm:$0xff] }
  0xb4   : > { %869 = vmatpush.bf16.msra.mxu0 %v1568_v39  ;;  %1589 = vmatpush.bf16.msra.mxu3 %v1568_v39  ;;  %v531_v57 = vld [vmem:[%s2020_s12] sm:$0xff]  ;;  %v532_v61 = vld [vmem:[%s2020_s12 + $0x8] sm:$0xff]  ;;  %v537_v5 = vld [vmem:[%s2020_s12 + $0x30] sm:$0xff] }
  0xb5   : > { %958 = vmatpush.bf16.msra.mxu1 %v1576_v40  ;;  %v603_v59 = vld [vmem:[%s2020_s12 + $0x240] sm:$0xff]  ;;  %v536_v0 = vld [vmem:[%s2020_s12 + $0x28] sm:$0xff]  ;;  %v627_v1 = vpack.c.bf16 %v534_v58, %v531_v57  ;;  %v609_v7 = vld [vmem:[%s2020_s12 + $0x270] sm:$0xff] }
  0xb6   : > { %1047 = vmatpush.bf16.msra.mxu2 %v2044_v41  ;;  %v535_v62 = vld [vmem:[%s2020_s12 + $0x20] sm:$0xff]  ;;  %v663_v2 = vpack.c.bf16 %v606_v60, %v603_v59  ;;  %v629_v4 = vpack.c.bf16 %v536_v0, %v533_v63  ;;  %v540_v6 = vld [vmem:[%s2020_s12 + $0x48] sm:$0xff]  ;;  %v538_v9 = vld [vmem:[%s2020_s12 + $0x38] sm:$0xff] }
  0xb7   : > { %v628_v3 = vpack.c.bf16 %v535_v62, %v532_v61  ;;  %v612_v8 = vld [vmem:[%s2020_s12 + $0x288] sm:$0xff]  ;;  %v541_v10 = vld [vmem:[%s2020_s12 + $0x50] sm:$0xff]  ;;  %v539_v11 = vld [vmem:[%s2020_s12 + $0x40] sm:$0xff]  ;;  %v630_v13 = vpack.c.bf16 %v540_v6, %v537_v5 }
  0xb8   : > { %870 = vmatpush.bf16.msra.mxu0 %v1567_v42  ;;  %1590 = vmatpush.bf16.msra.mxu3 %v1567_v42  ;;  %v542_v12 = vld [vmem:[%s2020_s12 + $0x58] sm:$0xff]  ;;  %v666_v14 = vpack.c.bf16 %v612_v8, %v609_v7  ;;  %v631_v15 = vpack.c.bf16 %v541_v10, %v538_v9  ;;  %v543_v17 = vld [vmem:[%s2020_s12 + $0x60] sm:$0xff]  ;;  %v544_v21 = vld [vmem:[%s2020_s12 + $0x68] sm:$0xff] }
  0xb9   : > { %959 = vmatpush.bf16.msra.mxu1 %v1575_v43  ;;  %v632_v16 = vpack.c.bf16 %v542_v12, %v539_v11  ;;  %v546_v18 = vld [vmem:[%s2020_s12 + $0x78] sm:$0xff]  ;;  %v615_v19 = vld [vmem:[%s2020_s12 + $0x2a0] sm:$0xff]  ;;  %v545_v23 = vld [vmem:[%s2020_s12 + $0x70] sm:$0xff] }
  0xba   : > { %1048 = vmatpush.bf16.msra.mxu2 %v2050_v44  ;;  %v618_v20 = vld [vmem:[%s2020_s12 + $0x2b8] sm:$0xff]  ;;  %v547_v22 = vld [vmem:[%s2020_s12 + $0x80] sm:$0xff]  ;;  %v548_v24 = vld [vmem:[%s2020_s12 + $0x88] sm:$0xff]  ;;  %v633_v25 = vpack.c.bf16 %v546_v18, %v543_v17 }
  0xbb   : > { %v669_v26 = vpack.c.bf16 %v618_v20, %v615_v19  ;;  %v634_v27 = vpack.c.bf16 %v547_v22, %v544_v21  ;;  %v635_v28 = vpack.c.bf16 %v548_v24, %v545_v23  ;;  %v549_v29 = vld [vmem:[%s2020_s12 + $0x90] sm:$0xff]  ;;  %v552_v30 = vld [vmem:[%s2020_s12 + $0xa8] sm:$0xff]  ;;  %v550_v33 = vld [vmem:[%s2020_s12 + $0x98] sm:$0xff] }
  0xbc   : > { %871 = vmatpush.bf16.msra.mxu0 %v1566_v45  ;;  %1591 = vmatpush.bf16.msra.mxu3 %v1566_v45  ;;  %v621_v31 = vld [vmem:[%s2020_s12 + $0x2d0] sm:$0xff]  ;;  %v624_v32 = vld [vmem:[%s2020_s12 + $0x2e8] sm:$0xff]  ;;  %v554_v36 = vld [vmem:[%s2020_s12 + $0xb8] sm:$0xff] }
  0xbd   : > { %960 = vmatpush.bf16.msra.mxu1 %v1574_v46  ;;  %v558_v42 = vld [vmem:[%s2020_s12 + $0xd8] sm:$0xff]  ;;  %v607_v45 = vld [vmem:[%s2020_s12 + $0x260] sm:$0xff]  ;;  %v613_v58 = vld [vmem:[%s2020_s12 + $0x290] sm:$0xff] }
  0xbe   : > { %1049 = vmatpush.bf16.msra.mxu2 %v2056_v47  ;;  %v610_v57 = vld [vmem:[%s2020_s12 + $0x278] sm:$0xff]  ;;  %v563_v59 = vld [vmem:[%s2020_s12 + $0x100] sm:$0xff]  ;;  %v569_v7 = vld [vmem:[%s2020_s12 + $0x130] sm:$0xff] }
  0xbf   : > { %v566_v60 = vld [vmem:[%s2020_s12 + $0x118] sm:$0xff]  ;;  %v667_v62 = vpack.c.bf16 %v613_v58, %v610_v57  ;;  %v619_v5 = vld [vmem:[%s2020_s12 + $0x2c0] sm:$0xff]  ;;  %v572_v8 = vld [vmem:[%s2020_s12 + $0x148] sm:$0xff] }
  0xc0   : > { %872 = vmatpush.bf16.msra.mxu0 %v1565_v48  ;;  %1592 = vmatpush.bf16.msra.mxu3 %v1565_v48  ;;  %v560_v48 = vld [vmem:[%s2020_s12 + $0xe8] sm:$0xff]  ;;  %v644_v0 = vpack.c.bf16 %v566_v60, %v563_v59  ;;  %v571_v6 = vld [vmem:[%s2020_s12 + $0x140] sm:$0xff]  ;;  %v647_v12 = vpack.c.bf16 %v572_v8, %v569_v7  ;;  %v625_v17 = vld [vmem:[%s2020_s12 + $0x2f0] sm:$0xff] }
  0xc1   : > { %961 = vmatpush.bf16.msra.mxu1 %v1573_v49  ;;  %v577_v18 = vld [vmem:[%s2020_s12 + $0x170] sm:$0xff]  ;;  %v575_v19 = vld [vmem:[%s2020_s12 + $0x160] sm:$0xff]  ;;  %v578_v20 = vld [vmem:[%s2020_s12 + $0x178] sm:$0xff] }
  0xc2   : > { %1050 = vmatpush.bf16.msra.mxu2 %v2062_v50  ;;  %v650_v24 = vpack.c.bf16 %v578_v20, %v575_v19  ;;  %v500_v58 = vld [vmem:[#allocation2] sm:$0xff] }
  0xc4   : > { %873 = vmatpush.bf16.msra.mxu0 %v1564_v51  ;;  %1593 = vmatpush.bf16.msra.mxu3 %v1564_v51 }
  0xc5   : > { %962 = vmatpush.bf16.msra.mxu1 %v1572_v52 }
  0xc6   : > { %1051 = vmatpush.bf16.msra.mxu2 %v2068_v53 }
  0xc8   : > { %874 = vmatpush.bf16.msra.mxu0 %v1563_v54  ;;  %1594 = vmatpush.bf16.msra.mxu3 %v1563_v54  ;;  %v564_v54 = vld [vmem:[%s2020_s12 + $0x108] sm:$0xff] }
  0xc9   : > { %963 = vmatpush.bf16.msra.mxu1 %v1571_v55 }
  0xca   : > { %1052 = vmatpush.bf16.msra.mxu2 %v2073_v56 }
  0xcb   : > { %875 = vmatmul.bf16.vlgmr.msra.gmra.mxu0 %v627_v1  ;;  %935 = vmatmul.bf16.vlgmr.msra.gmra.mxu3 %v663_v2  ;;  %v567_v1 = vld [vmem:[%s2020_s12 + $0x120] sm:$0xff]  ;;  %v570_v2 = vld [vmem:[%s2020_s12 + $0x138] sm:$0xff] }
  0xcc   : > { %1595 = vmatpush.bf16.msrb.mxu3 %v2025_v34  ;;  %964 = vmatmul.bf16.vlgmr.msra.gmra.mxu1 %v628_v3  ;;  %v553_v34 = vld [vmem:[%s2020_s12 + $0xb0] sm:$0xff]  ;;  %v568_v3 = vld [vmem:[%s2020_s12 + $0x128] sm:$0xff]  ;;  %v645_v9 = vpack.c.bf16 %v570_v2, %v567_v1 }
  0xcd   : > { %1053 = vmatmul.bf16.vlgmr.msra.gmra.mxu2 %v629_v4  ;;  %v637_v39 = vpack.c.bf16 %v553_v34, %v550_v33  ;;  %v616_v4 = vld [vmem:[%s2020_s12 + $0x2a8] sm:$0xff]  ;;  %v646_v11 = vpack.c.bf16 %v571_v6, %v568_v3 }
  0xce   : > { %v670_v10 = vpack.c.bf16 %v619_v5, %v616_v4  ;;  %v501_v5 = vld [vmem:[#allocation2 + $0xd8] sm:$0xff] }
  0xd0   : > { %1596 = vmatpush.bf16.msrb.mxu3 %v2034_v37  ;;  %v636_v37 = vpack.c.bf16 %v552_v30, %v549_v29  ;;  %v608_v29 = vld [vmem:[%s2020_s12 + $0x268] sm:$0xff]  ;;  %v583_v30 = vld [vmem:[%s2020_s12 + $0x1a0] sm:$0xff] }
  0xd4   : > { %1597 = vmatpush.bf16.msrb.mxu3 %v1576_v40 }
  0xd8   : > { %1598 = vmatpush.bf16.msrb.mxu3 %v1575_v43  ;;  %v556_v43 = vld [vmem:[%s2020_s12 + $0xc8] sm:$0xff] }
  0xdb   : > { %880 = vmatmul.bf16.gmra.mxu0 %v630_v13  ;;  %940 = vmatmul.bf16.gmra.mxu3 %v666_v14  ;;  %v573_v13 = vld [vmem:[%s2020_s12 + $0x150] sm:$0xff]  ;;  %v576_v14 = vld [vmem:[%s2020_s12 + $0x168] sm:$0xff] }
  0xdc   : > { %1599 = vmatpush.bf16.msrb.mxu3 %v1574_v46  ;;  %969 = vmatmul.bf16.gmra.mxu1 %v631_v15  ;;  %v559_v46 = vld [vmem:[%s2020_s12 + $0xe0] sm:$0xff]  ;;  %v574_v15 = vld [vmem:[%s2020_s12 + $0x158] sm:$0xff]  ;;  %v648_v21 = vpack.c.bf16 %v576_v14, %v573_v13  ;;  %v592_v13 = vld [vmem:[%s2020_s12 + $0x1e8] sm:$0xff] }
  0xdd   : > { %1058 = vmatmul.bf16.gmra.mxu2 %v632_v16  ;;  %v640_v51 = vpack.c.bf16 %v559_v46, %v556_v43  ;;  %v622_v16 = vld [vmem:[%s2020_s12 + $0x2d8] sm:$0xff]  ;;  %v649_v23 = vpack.c.bf16 %v577_v18, %v574_v15  ;;  %v617_v14 = vld [vmem:[%s2020_s12 + $0x2b0] sm:$0xff]  ;;  %v620_v15 = vld [vmem:[%s2020_s12 + $0x2c8] sm:$0xff] }
  0xde   : > { %v673_v22 = vpack.c.bf16 %v625_v17, %v622_v16  ;;  %v595_v16 = vld [vmem:[%s2020_s12 + $0x200] sm:$0xff]  ;;  %v593_v17 = vld [vmem:[%s2020_s12 + $0x1f0] sm:$0xff]  ;;  %v596_v18 = vld [vmem:[%s2020_s12 + $0x208] sm:$0xff] }
  0xe0   : > { %1600 = vmatpush.bf16.msrb.mxu3 %v1573_v49 }
  0xe4   : > { %1601 = vmatpush.bf16.msrb.mxu3 %v1572_v52 }
  0xe8   : > { %1602 = vmatpush.bf16.msrb.mxu3 %v1571_v55  ;;  %v562_v55 = vld [vmem:[%s2020_s12 + $0xf8] sm:$0xff] }
  0xeb   : > { %885 = vmatmul.bf16.gmra.mxu0 %v633_v25  ;;  %945 = vmatmul.bf16.gmra.mxu3 %v669_v26  ;;  %v579_v25 = vld [vmem:[%s2020_s12 + $0x180] sm:$0xff]  ;;  %v582_v26 = vld [vmem:[%s2020_s12 + $0x198] sm:$0xff] }
  0xec   : > { %1603 = vmatpush.bf16.msra.mxu3 %v2028_v35  ;;  %974 = vmatmul.bf16.gmra.mxu1 %v634_v27  ;;  %v551_v35 = vld [vmem:[%s2020_s12 + $0xa0] sm:$0xff]  ;;  %v580_v27 = vld [vmem:[%s2020_s12 + $0x188] sm:$0xff]  ;;  %v651_v33 = vpack.c.bf16 %v582_v26, %v579_v25 }
  0xed   : > { %1063 = vmatmul.bf16.gmra.mxu2 %v635_v28  ;;  %v638_v40 = vpack.c.bf16 %v554_v36, %v551_v35  ;;  %v605_v28 = vld [vmem:[%s2020_s12 + $0x250] sm:$0xff]  ;;  %v652_v36 = vpack.c.bf16 %v583_v30, %v580_v27  ;;  %v658_v27 = vpack.c.bf16 %v595_v16, %v592_v13  ;;  %v507_v16 = vld [vmem:[#allocation2 + $0x80] sm:$0xff] }
  0xee   : > { %v665_v34 = vpack.c.bf16 %v608_v29, %v605_v28  ;;  %v659_v28 = vpack.c.bf16 %v596_v18, %v593_v17 }
  0xf0   : > { %1604 = vmatpush.bf16.msra.mxu3 %v2037_v38  ;;  %v672_v38 = vpack.c.bf16 %v624_v32, %v621_v31  ;;  %v581_v31 = vld [vmem:[%s2020_s12 + $0x190] sm:$0xff]  ;;  %v584_v32 = vld [vmem:[%s2020_s12 + $0x1a8] sm:$0xff] }
  0xf4   : > { %1605 = vmatpush.bf16.msra.mxu3 %v2044_v41  ;;  %v555_v41 = vld [vmem:[%s2020_s12 + $0xc0] sm:$0xff] }
  0xf5   : > { %v639_v49 = vpack.c.bf16 %v558_v42, %v555_v41  ;;  %v499_v41 = vld [vmem:[#allocation2 + $0xb0] sm:$0xff] }
  0xf8   : > { %1606 = vmatpush.bf16.msra.mxu3 %v2050_v44  ;;  %v604_v44 = vld [vmem:[%s2020_s12 + $0x248] sm:$0xff] }
  0xfb   : > { %890 = vmatmul.bf16.gmra.mxu0 %v636_v37  ;;  %950 = vmatmul.bf16.gmra.mxu3 %v672_v38  ;;  %v653_v37 = vpack.c.bf16 %v584_v32, %v581_v31 }
  0xfc   : > { %1607 = vmatpush.bf16.msra.mxu3 %v2056_v47  ;;  %979 = vmatmul.bf16.gmra.mxu1 %v637_v39  ;;  %v557_v47 = vld [vmem:[%s2020_s12 + $0xd0] sm:$0xff] }
  0xfd   : > { %1068 = vmatmul.bf16.gmra.mxu2 %v638_v40  ;;  %v641_v52 = vpack.c.bf16 %v560_v48, %v557_v47  ;;  %v585_v47 = vld [vmem:[%s2020_s12 + $0x1b0] sm:$0xff]  ;;  %v588_v48 = vld [vmem:[%s2020_s12 + $0x1c8] sm:$0xff] }
  0xfe   : > { %v654_v59 = vpack.c.bf16 %v588_v48, %v585_v47  ;;  %v602_v47 = vld [vmem:[%s2020_s12 + $0x238] sm:$0xff] }
 0x100   : > { %1608 = vmatpush.bf16.msra.mxu3 %v2062_v50  ;;  %v664_v50 = vpack.c.bf16 %v607_v45, %v604_v44 }
 0x104   : > { %1609 = vmatpush.bf16.msra.mxu3 %v2068_v53  ;;  %v561_v53 = vld [vmem:[%s2020_s12 + $0xf0] sm:$0xff] }
 0x105   : > { %v642_v61 = vpack.c.bf16 %v564_v54, %v561_v53  ;;  %v587_v53 = vld [vmem:[%s2020_s12 + $0x1c0] sm:$0xff]  ;;  %v590_v54 = vld [vmem:[%s2020_s12 + $0x1d8] sm:$0xff] }
 0x108   : > { %1610 = vmatpush.bf16.msra.mxu3 %v2073_v56  ;;  %v565_v56 = vld [vmem:[%s2020_s12 + $0x110] sm:$0xff] }
 0x109   : > { %v643_v63 = vpack.c.bf16 %v565_v56, %v562_v55 }
 0x10b   : > { %895 = vmatmul.bf16.gmra.mxu0 %v639_v49  ;;  %1024 = vmatmul.bf16.vlgmr.msrb.gmra.mxu3 %v664_v50  ;;  %v586_v49 = vld [vmem:[%s2020_s12 + $0x1b8] sm:$0xff]  ;;  %v611_v50 = vld [vmem:[%s2020_s12 + $0x280] sm:$0xff] }
 0x10c   : > { %984 = vmatmul.bf16.gmra.mxu1 %v640_v51  ;;  %v614_v51 = vld [vmem:[%s2020_s12 + $0x298] sm:$0xff] }
 0x10d   : > { %1073 = vmatmul.bf16.gmra.mxu2 %v641_v52  ;;  %v589_v52 = vld [vmem:[%s2020_s12 + $0x1d0] sm:$0xff]  ;;  %v668_v60 = vpack.c.bf16 %v614_v51, %v611_v50  ;;  %v504_v50 = vld [vmem:[#allocation2 + $0x68] sm:$0xff] }
 0x11b   : > { %900 = vmatmul.bf16.gmra.mxu0 %v642_v61  ;;  %1029 = vmatmul.bf16.gmra.mxu3 %v667_v62 }
 0x11c   : > { %989 = vmatmul.bf16.gmra.mxu1 %v643_v63  ;;  %v655_v63 = vpack.c.bf16 %v589_v52, %v586_v49 }
 0x11d   : > { %1078 = vmatmul.bf16.gmra.mxu2 %v644_v0  ;;  %v656_v0 = vpack.c.bf16 %v590_v54, %v587_v53 }
 0x12b   : > { %905 = vmatmul.bf16.gmra.mxu0 %v645_v9  ;;  %1034 = vmatmul.bf16.gmra.mxu3 %v670_v10 }
 0x12c   : > { %994 = vmatmul.bf16.gmra.mxu1 %v646_v11  ;;  %v591_v11 = vld [vmem:[%s2020_s12 + $0x1e0] sm:$0xff] }
 0x12d   : > { %1083 = vmatmul.bf16.gmra.mxu2 %v647_v12  ;;  %v594_v12 = vld [vmem:[%s2020_s12 + $0x1f8] sm:$0xff] }
 0x13b   : > { %910 = vmatmul.bf16.gmra.mxu0 %v648_v21  ;;  %1039 = vmatmul.bf16.gmra.mxu3 %v673_v22  ;;  %v502_v21 = vld [vmem:[#allocation2 + $0x18] sm:$0xff] }
 0x13c   : > { %999 = vmatmul.bf16.gmra.mxu1 %v649_v23  ;;  %v657_v23 = vpack.c.bf16 %v594_v12, %v591_v11 }
 0x13d   : > { %1088 = vmatmul.bf16.gmra.mxu2 %v650_v24  ;;  %v671_v24 = vpack.c.bf16 %v620_v15, %v617_v14 }
 0x148   : > { %v876_v35 = vpop.f32.mrf.mxu0 }
 0x149   : > { %v965_v38 = vpop.f32.mrf.mxu1 }
 0x14a   : > { %v966_v39 = vadd.f32 %v965_v38, %v876_v35 }
 0x14b   : > { %915 = vmatmul.bf16.gmra.mxu0 %v651_v33  ;;  %1113 = vmatmul.bf16.vlgmr.msra.gmra.mxu3 %v665_v34  ;;  %v503_v33 = vld [vmem:[#allocation2 + $0x50] sm:$0xff] }
 0x14c   : > { %1004 = vmatmul.bf16.gmra.mxu1 %v652_v36 }
 0x14d   : > { %1093 = vmatmul.bf16.gmra.mxu2 %v653_v37 }
 0x14e   : > { %v2159_v40 = vpop.f32.mrf.mxu3 }
 0x150   : > { %v1054_v42 = vpop.f32.mrf.mxu2  ;;  %v878_v44 = vpop.f32.mrf.mxu0 }
 0x151   : > { %v1055_v43 = vadd.f32 %v1054_v42, %v966_v39  ;;  %v967_v45 = vpop.f32.mrf.mxu1  ;;  %v597_v39 = vld [vmem:[%s2020_s12 + $0x210] sm:$0xff]  ;;  %v598_v42 = vld [vmem:[%s2020_s12 + $0x218] sm:$0xff] }
 0x152   : > { %v968_v55 = vadd.f32 %v967_v45, %v878_v44  ;;  %v626_v44 = vld [vmem:[%s2020_s12 + $0x2f8] sm:$0xff]  ;;  %v601_v45 = vld [vmem:[%s2020_s12 + $0x230] sm:$0xff] }
 0x153   : > { %v1134_v46 = vadd.f32 %v1055_v43, %v499_v41  ;;  %v600_v41 = vld [vmem:[%s2020_s12 + $0x228] sm:$0xff]  ;;  %v623_v43 = vld [vmem:[%s2020_s12 + $0x2e0] sm:$0xff] }
 0x154   : > { %v660_v52 = vpack.c.bf16 %v600_v41, %v597_v39  ;;  %v674_v53 = vpack.c.bf16 %v626_v44, %v623_v43  ;;  %v510_v43 = vld [vmem:[#allocation2 + $0xb8] sm:$0xff] }
 0x155   : > { %1166 = vst [vmem:[#allocation2 + $0xb0] sm:$0xff] %v1134_v46  ;;  %v599_v46 = vld [vmem:[%s2020_s12 + $0x220] sm:$0xff] }
 0x156   : > { %v2169_v57 = vpop.f32.mrf.mxu3 }
 0x158   : > { %v1056_v56 = vpop.f32.mrf.mxu2  ;;  %v881_v62 = vpop.f32.mrf.mxu0 }
 0x159   : > { %v1057_v61 = vadd.f32 %v1056_v56, %v968_v55  ;;  %v970_v1 = vpop.f32.mrf.mxu1  ;;  %v662_v56 = vpack.c.bf16 %v602_v47, %v599_v46 }
 0x15a   : > { %v971_v3 = vadd.f32 %v970_v1, %v881_v62 }
 0x15b   : > { %v1135_v2 = vadd.f32 %v1057_v61, %v500_v58  ;;  %920 = vmatmul.bf16.gmra.mxu0 %v654_v59  ;;  %1118 = vmatmul.bf16.gmra.mxu3 %v668_v60  ;;  %v661_v58 = vpack.c.bf16 %v601_v45, %v598_v42 }
 0x15c   : > { %1009 = vmatmul.bf16.gmra.mxu1 %v655_v63  ;;  %v505_v63 = vld [vmem:[#allocation2 + $0x30] sm:$0xff] }
 0x15d   : > { %1167 = vst [vmem:[#allocation2] sm:$0xff] %v1135_v2  ;;  %1098 = vmatmul.bf16.gmra.mxu2 %v656_v0 }
 0x15e   : > { %v2171_v4 = vpop.f32.mrf.mxu3 }
 0x160   : > { %v1059_v6 = vpop.f32.mrf.mxu2  ;;  %v883_v8 = vpop.f32.mrf.mxu0 }
 0x161   : > { %v1060_v7 = vadd.f32 %v1059_v6, %v971_v3  ;;  %v972_v9 = vpop.f32.mrf.mxu1 }
 0x162   : > { %v973_v19 = vadd.f32 %v972_v9, %v883_v8  ;;  %v506_v8 = vld [vmem:[#allocation2 + $0x48] sm:$0xff] }
 0x163   : > { %v1136_v10 = vadd.f32 %v1060_v7, %v501_v5 }
 0x165   : > { %1168 = vst [vmem:[#allocation2 + $0xd8] sm:$0xff] %v1136_v10 }
 0x166   : > { %v2181_v20 = vpop.f32.mrf.mxu3 }
 0x168   : > { %v1061_v22 = vpop.f32.mrf.mxu2  ;;  %v886_v26 = vpop.f32.mrf.mxu0 }
 0x169   : > { %v1062_v25 = vadd.f32 %v1061_v22, %v973_v19  ;;  %v975_v29 = vpop.f32.mrf.mxu1 }
 0x16a   : > { %v976_v31 = vadd.f32 %v975_v29, %v886_v26 }
 0x16b   : > { %v1137_v30 = vadd.f32 %v1062_v25, %v502_v21  ;;  %925 = vmatmul.bf16.gmra.mxu0 %v657_v23  ;;  %1123 = vmatmul.bf16.gmra.mxu3 %v671_v24  ;;  %v508_v25 = vld [vmem:[#allocation2 + $0x88] sm:$0xff] }
 0x16c   : > { %1014 = vmatmul.bf16.gmra.mxu1 %v658_v27 }
 0x16d   : > { %1169 = vst [vmem:[#allocation2 + $0x18] sm:$0xff] %v1137_v30  ;;  %1103 = vmatmul.bf16.gmra.mxu2 %v659_v28 }
 0x16e   : > { %v2183_v32 = vpop.f32.mrf.mxu3 }
 0x170   : > { %v1064_v34 = vpop.f32.mrf.mxu2  ;;  %v888_v36 = vpop.f32.mrf.mxu0 }
 0x171   : > { %v1065_v35 = vadd.f32 %v1064_v34, %v976_v31  ;;  %v977_v37 = vpop.f32.mrf.mxu1  ;;  %v509_v34 = vld [vmem:[#allocation2 + $0xe8] sm:$0xff] }
 0x172   : > { %v978_v48 = vadd.f32 %v977_v37, %v888_v36 }
 0x173   : > { %v1138_v38 = vadd.f32 %v1065_v35, %v503_v33 }
 0x175   : > { %1170 = vst [vmem:[#allocation2 + $0x50] sm:$0xff] %v1138_v38 }
 0x176   : > { %v2193_v49 = vpop.f32.mrf.mxu3 }
 0x178   : > { %v1066_v51 = vpop.f32.mrf.mxu2  ;;  %v891_v55 = vpop.f32.mrf.mxu0 }
 0x179   : > { %v1067_v54 = vadd.f32 %v1066_v51, %v978_v48  ;;  %v980_v59 = vpop.f32.mrf.mxu1 }
 0x17a   : > { %v981_v61 = vadd.f32 %v980_v59, %v891_v55 }
 0x17b   : > { %v1139_v60 = vadd.f32 %v1067_v54, %v504_v50  ;;  %930 = vmatmul.bf16.gmra.mxu0 %v660_v52  ;;  %1128 = vmatmul.bf16.gmra.mxu3 %v674_v53  ;;  %v511_v52 = vld [vmem:[#allocation2 + $0x60] sm:$0xff] }
 0x17c   : > { %1019 = vmatmul.bf16.gmra.mxu1 %v661_v58 }
 0x17d   : > { %1171 = vst [vmem:[#allocation2 + $0x68] sm:$0xff] %v1139_v60  ;;  %1108 = vmatmul.bf16.gmra.mxu2 %v662_v56 }
 0x17e   : > { %v2195_v62 = vpop.f32.mrf.mxu3 }
 0x180   : > { %v1069_v0 = vpop.f32.mrf.mxu2  ;;  %v893_v2 = vpop.f32.mrf.mxu0 }
 0x181   : > { %v1070_v1 = vadd.f32 %v1069_v0, %v981_v61  ;;  %v982_v3 = vpop.f32.mrf.mxu1  ;;  %v512_v61 = vld [vmem:[#allocation2 + $0xf0] sm:$0xff] }
 0x182   : > { %v983_v6 = vadd.f32 %v982_v3, %v893_v2 }
 0x183   : > { %v1140_v5 = vadd.f32 %v1070_v1, %v505_v63 }
 0x185   : > { %1172 = vst [vmem:[#allocation2 + $0x30] sm:$0xff] %v1140_v5 }
 0x186   : > { %v2197_v7 = vpop.f32.mrf.mxu3 }
 0x188   : > { %v1071_v9 = vpop.f32.mrf.mxu2  ;;  %v896_v11 = vpop.f32.mrf.mxu0 }
 0x189   : > { %v1072_v10 = vadd.f32 %v1071_v9, %v983_v6  ;;  %v985_v12 = vpop.f32.mrf.mxu1 }
 0x18a   : > { %v986_v14 = vadd.f32 %v985_v12, %v896_v11 }
 0x18b   : > { %v1141_v13 = vadd.f32 %v1072_v10, %v506_v8  ;;  %v513_v8 = vld [vmem:[#allocation2 + $0x8] sm:$0xff] }
 0x18d   : > { %1173 = vst [vmem:[#allocation2 + $0x48] sm:$0xff] %v1141_v13 }
 0x18e   : > { %v2199_v15 = vpop.f32.mrf.mxu3 }
 0x190   : > { %v1074_v17 = vpop.f32.mrf.mxu2  ;;  %v898_v19 = vpop.f32.mrf.mxu0 }
 0x191   : > { %v1075_v18 = vadd.f32 %v1074_v17, %v986_v14  ;;  %v987_v21 = vpop.f32.mrf.mxu1  ;;  %v514_v17 = vld [vmem:[#allocation2 + $0x78] sm:$0xff] }
 0x192   : > { %v988_v23 = vadd.f32 %v987_v21, %v898_v19 }
 0x193   : > { %v1142_v22 = vadd.f32 %v1075_v18, %v507_v16 }
 0x195   : > { %1174 = vst [vmem:[#allocation2 + $0x80] sm:$0xff] %v1142_v22 }
 0x196   : > { %v2201_v24 = vpop.f32.mrf.mxu3 }
 0x198   : > { %v1076_v26 = vpop.f32.mrf.mxu2  ;;  %v901_v28 = vpop.f32.mrf.mxu0 }
 0x199   : > { %v1077_v27 = vadd.f32 %v1076_v26, %v988_v23  ;;  %v990_v29 = vpop.f32.mrf.mxu1  ;;  %v1026_v26 = vadd.f32 %v2199_v15, %v2159_v40 }
 0x19a   : > { %v991_v31 = vadd.f32 %v990_v29, %v901_v28  ;;  %v515_v29 = vld [vmem:[#allocation2 + $0x38] sm:$0xff] }
 0x19b   : > { %v1143_v30 = vadd.f32 %v1077_v27, %v508_v25  ;;  %v523_v27 = vld [vmem:[#allocation2 + $0xa8] sm:$0xff] }
 0x19d   : > { %1175 = vst [vmem:[#allocation2 + $0x88] sm:$0xff] %v1143_v30 }
 0x19e   : > { %v2203_v33 = vpop.f32.mrf.mxu3 }
 0x1a0   : > { %v1079_v35 = vpop.f32.mrf.mxu2  ;;  %v903_v37 = vpop.f32.mrf.mxu0 }
 0x1a1   : > { %v1080_v36 = vadd.f32 %v1079_v35, %v991_v31  ;;  %v992_v38 = vpop.f32.mrf.mxu1 }
 0x1a2   : > { %v993_v41 = vadd.f32 %v992_v38, %v903_v37 }
 0x1a3   : > { %v1144_v39 = vadd.f32 %v1080_v36, %v509_v34 }
 0x1a5   : > { %1176 = vst [vmem:[#allocation2 + $0xe8] sm:$0xff] %v1144_v39  ;;  %v1028_v39 = vadd.f32 %v2201_v24, %v2169_v57  ;;  %v517_v57 = vld [vmem:[#allocation2 + $0x40] sm:$0xff] }
 0x1a6   : > { %v2205_v42 = vpop.f32.mrf.mxu3 }
 0x1a8   : > { %v1081_v44 = vpop.f32.mrf.mxu2  ;;  %v906_v46 = vpop.f32.mrf.mxu0 }
 0x1a9   : > { %v1082_v45 = vadd.f32 %v1081_v44, %v993_v41  ;;  %v995_v47 = vpop.f32.mrf.mxu1 }
 0x1aa   : > { %v996_v50 = vadd.f32 %v995_v47, %v906_v46 }
 0x1ab   : > { %v1145_v48 = vadd.f32 %v1082_v45, %v510_v43  ;;  %v524_v43 = vld [vmem:[#allocation2 + $0xd0] sm:$0xff]  ;;  %v516_v45 = vld [vmem:[#allocation2 + $0x58] sm:$0xff] }
 0x1ad   : > { %1177 = vst [vmem:[#allocation2 + $0xb8] sm:$0xff] %v1145_v48 }
 0x1ae   : > { %v2207_v51 = vpop.f32.mrf.mxu3 }
 0x1b0   : > { %v1084_v53 = vpop.f32.mrf.mxu2  ;;  %v908_v55 = vpop.f32.mrf.mxu0 }
 0x1b1   : > { %v1085_v54 = vadd.f32 %v1084_v53, %v996_v50  ;;  %v997_v58 = vpop.f32.mrf.mxu1 }
 0x1b2   : > { %v998_v59 = vadd.f32 %v997_v58, %v908_v55  ;;  %v525_v55 = vld [vmem:[#allocation2 + $0x10] sm:$0xff] }
 0x1b3   : > { %v1146_v56 = vadd.f32 %v1085_v54, %v511_v52  ;;  %v1031_v54 = vadd.f32 %v2203_v33, %v2171_v4 }
 0x1b5   : > { %1178 = vst [vmem:[#allocation2 + $0x60] sm:$0xff] %v1146_v56 }
 0x1b6   : > { %v2209_v60 = vpop.f32.mrf.mxu3 }
 0x1b8   : > { %v1086_v63 = vpop.f32.mrf.mxu2  ;;  %v911_v1 = vpop.f32.mrf.mxu0 }
 0x1b9   : > { %v1087_v0 = vadd.f32 %v1086_v63, %v998_v59  ;;  %v1000_v2 = vpop.f32.mrf.mxu1 }
 0x1ba   : > { %v1001_v5 = vadd.f32 %v1000_v2, %v911_v1  ;;  %v1033_v2 = vadd.f32 %v2205_v42, %v2181_v20  ;;  %v519_v20 = vld [vmem:[#allocation2 + $0xe0] sm:$0xff] }
 0x1bb   : > { %v1147_v3 = vadd.f32 %v1087_v0, %v512_v61 }
 0x1bd   : > { %1179 = vst [vmem:[#allocation2 + $0xf0] sm:$0xff] %v1147_v3 }
 0x1be   : > { %v2211_v6 = vpop.f32.mrf.mxu3 }
 0x1c0   : > { %v1089_v9 = vpop.f32.mrf.mxu2  ;;  %v913_v11 = vpop.f32.mrf.mxu0 }
 0x1c1   : > { %v1090_v10 = vadd.f32 %v1089_v9, %v1001_v5  ;;  %v1002_v12 = vpop.f32.mrf.mxu1  ;;  %v526_v5 = vld [vmem:[#allocation2 + $0x28] sm:$0xff] }
 0x1c2   : > { %v1003_v14 = vadd.f32 %v1002_v12, %v913_v11  ;;  %v518_v9 = vld [vmem:[#allocation2 + $0xc8] sm:$0xff] }
 0x1c3   : > { %v1148_v13 = vadd.f32 %v1090_v10, %v513_v8 }
 0x1c5   : > { %1180 = vst [vmem:[#allocation2 + $0x8] sm:$0xff] %v1148_v13 }
 0x1c6   : > { %v2213_v16 = vpop.f32.mrf.mxu3 }
 0x1c8   : > { %v1091_v18 = vpop.f32.mrf.mxu2  ;;  %v916_v21 = vpop.f32.mrf.mxu0 }
 0x1c9   : > { %v1092_v19 = vadd.f32 %v1091_v18, %v1003_v14  ;;  %v1005_v22 = vpop.f32.mrf.mxu1  ;;  %v1036_v18 = vadd.f32 %v2207_v51, %v2183_v32 }
 0x1ca   : > { %v1006_v25 = vadd.f32 %v1005_v22, %v916_v21 }
 0x1cb   : > { %v1149_v23 = vadd.f32 %v1092_v19, %v514_v17  ;;  %v527_v19 = vld [vmem:[#allocation2 + $0xa0] sm:$0xff] }
 0x1cd   : > { %1181 = vst [vmem:[#allocation2 + $0x78] sm:$0xff] %v1149_v23 }
 0x1ce   : > { %v1114_v28 = vpop.f32.mrf.mxu3 }
 0x1cf   : > { %v1115_v31 = vadd.f32 %v1114_v28, %v1026_v26 }
 0x1d0   : > { %v1094_v30 = vpop.f32.mrf.mxu2  ;;  %v918_v35 = vpop.f32.mrf.mxu0 }
 0x1d1   : > { %v1095_v34 = vadd.f32 %v1094_v30, %v1006_v25  ;;  %v1158_v36 = vadd.f32 %v1115_v31, %v523_v27  ;;  %v1007_v37 = vpop.f32.mrf.mxu1  ;;  %v528_v31 = vld [vmem:[#allocation2 + $0xf8] sm:$0xff] }
 0x1d2   : > { %v1008_v41 = vadd.f32 %v1007_v37, %v918_v35  ;;  %v520_v35 = vld [vmem:[#allocation2 + $0x90] sm:$0xff] }
 0x1d3   : > { %v1150_v38 = vadd.f32 %v1095_v34, %v515_v29  ;;  %1190 = vst [vmem:[#allocation2 + $0xa8] sm:$0xff] %v1158_v36  ;;  %v1038_v29 = vadd.f32 %v2209_v60, %v2193_v49  ;;  %v521_v49 = vld [vmem:[#allocation2 + $0x70] sm:$0xff] }
 0x1d5   : > { %1182 = vst [vmem:[#allocation2 + $0x38] sm:$0xff] %v1150_v38 }
 0x1d6   : > { %v1116_v44 = vpop.f32.mrf.mxu3 }
 0x1d7   : > { %v1117_v15 = vadd.f32 %v1116_v44, %v1028_v39  ;;  %v1041_v44 = vadd.f32 %v2211_v6, %v2195_v62 }
 0x1d8   : > { %v1096_v40 = vpop.f32.mrf.mxu2  ;;  %v921_v47 = vpop.f32.mrf.mxu0 }
 0x1d9   : > { %v1097_v46 = vadd.f32 %v1096_v40, %v1008_v41  ;;  %v1159_v48 = vadd.f32 %v1117_v15, %v524_v43  ;;  %v1010_v50 = vpop.f32.mrf.mxu1 }
 0x1da   : > { %v1011_v53 = vadd.f32 %v1010_v50, %v921_v47 }
 0x1db   : > { %v1151_v52 = vadd.f32 %v1097_v46, %v516_v45  ;;  %1191 = vst [vmem:[#allocation2 + $0xd0] sm:$0xff] %v1159_v48  ;;  %v529_v45 = vld [vmem:[#allocation2 + $0x20] sm:$0xff] }
 0x1dd   : > { %1183 = vst [vmem:[#allocation2 + $0x58] sm:$0xff] %v1151_v52 }
 0x1de   : > { %v1119_v58 = vpop.f32.mrf.mxu3 }
 0x1df   : > { %v1120_v56 = vadd.f32 %v1119_v58, %v1031_v54 }
 0x1e0   : > { %v1099_v24 = vpop.f32.mrf.mxu2  ;;  %v923_v61 = vpop.f32.mrf.mxu0 }
 0x1e1   : > { %v1100_v59 = vadd.f32 %v1099_v24, %v1011_v53  ;;  %v1160_v63 = vadd.f32 %v1120_v56, %v525_v55  ;;  %v1012_v0 = vpop.f32.mrf.mxu1  ;;  %v1043_v53 = vadd.f32 %v2213_v16, %v2197_v7  ;;  %v530_v55 = vld [vmem:[#allocation2 + $0x98] sm:$0xff] }
 0x1e2   : > { %v1013_v3 = vadd.f32 %v1012_v0, %v923_v61 }
 0x1e3   : > { %v1152_v1 = vadd.f32 %v1100_v59, %v517_v57  ;;  %1192 = vst [vmem:[#allocation2 + $0x10] sm:$0xff] %v1160_v63  ;;  %v522_v57 = vld [vmem:[#allocation2 + $0xc0] sm:$0xff] }
 0x1e5   : > { %1184 = vst [vmem:[#allocation2 + $0x40] sm:$0xff] %v1152_v1 }
 0x1e6   : > { %v1121_v8 = vpop.f32.mrf.mxu3 }
 0x1e7   : > { %v1122_v33 = vadd.f32 %v1121_v8, %v1033_v2 }
 0x1e8   : > { %v1101_v4 = vpop.f32.mrf.mxu2  ;;  %v926_v11 = vpop.f32.mrf.mxu0 }
 0x1e9   : > { %v1102_v10 = vadd.f32 %v1101_v4, %v1013_v3  ;;  %v1161_v12 = vadd.f32 %v1122_v33, %v526_v5  ;;  %v1015_v13 = vpop.f32.mrf.mxu1 }
 0x1ea   : > { %v1016_v17 = vadd.f32 %v1015_v13, %v926_v11 }
 0x1eb   : > { %v1153_v14 = vadd.f32 %v1102_v10, %v518_v9  ;;  %1193 = vst [vmem:[#allocation2 + $0x28] sm:$0xff] %v1161_v12 }
 0x1ed   : > { %1185 = vst [vmem:[#allocation2 + $0xc8] sm:$0xff] %v1153_v14 }
 0x1ee   : > { %v1124_v21 = vpop.f32.mrf.mxu3 }
 0x1ef   : > { %v1125_v22 = vadd.f32 %v1124_v21, %v1036_v18 }
 0x1f0   : > { %v1104_v42 = vpop.f32.mrf.mxu2  ;;  %v928_v25 = vpop.f32.mrf.mxu0 }
 0x1f1   : > { %v1105_v23 = vadd.f32 %v1104_v42, %v1016_v17  ;;  %v1162_v26 = vadd.f32 %v1125_v22, %v527_v19  ;;  %v1017_v27 = vpop.f32.mrf.mxu1 }
 0x1f2   : > { %v1018_v30 = vadd.f32 %v1017_v27, %v928_v25 }
 0x1f3   : > { %v1154_v28 = vadd.f32 %v1105_v23, %v519_v20  ;;  %1194 = vst [vmem:[#allocation2 + $0xa0] sm:$0xff] %v1162_v26 }
 0x1f5   : > { %1186 = vst [vmem:[#allocation2 + $0xe0] sm:$0xff] %v1154_v28 }
 0x1f6   : > { %v1126_v34 = vpop.f32.mrf.mxu3 }
 0x1f7   : > { %v1127_v51 = vadd.f32 %v1126_v34, %v1038_v29 }
 0x1f8   : > { %v1106_v32 = vpop.f32.mrf.mxu2  ;;  %v931_v38 = vpop.f32.mrf.mxu0 }
 0x1f9   : > { %v1107_v36 = vadd.f32 %v1106_v32, %v1018_v30  ;;  %v1163_v37 = vadd.f32 %v1127_v51, %v528_v31  ;;  %v1020_v39 = vpop.f32.mrf.mxu1 }
 0x1fa   : > { %v1021_v43 = vadd.f32 %v1020_v39, %v931_v38 }
 0x1fb   : > { %v1155_v41 = vadd.f32 %v1107_v36, %v520_v35  ;;  %1195 = vst [vmem:[#allocation2 + $0xf8] sm:$0xff] %v1163_v37 }
 0x1fd   : > { %1187 = vst [vmem:[#allocation2 + $0x90] sm:$0xff] %v1155_v41 }
 0x1fe   : > { %v1129_v40 = vpop.f32.mrf.mxu3 }
 0x1ff   : > { %v1130_v15 = vadd.f32 %v1129_v40, %v1041_v44 }
 0x200   : > { %v1109_v60 = vpop.f32.mrf.mxu2  ;;  %v933_v50 = vpop.f32.mrf.mxu0 }
 0x201   : > { %v1110_v46 = vadd.f32 %v1109_v60, %v1021_v43  ;;  %v1164_v47 = vadd.f32 %v1130_v15, %v529_v45  ;;  %v1022_v52 = vpop.f32.mrf.mxu1 }
 0x202   : > { %v1023_v54 = vadd.f32 %v1022_v52, %v933_v50 }
 0x203   : > { %v1156_v48 = vadd.f32 %v1110_v46, %v521_v49  ;;  %1196 = vst [vmem:[#allocation2 + $0x20] sm:$0xff] %v1164_v47 }
 0x205   : > { %1188 = vst [vmem:[#allocation2 + $0x70] sm:$0xff] %v1156_v48 }
 0x206   : > { %v1131_v58 = vpop.f32.mrf.mxu3 }
 0x207   : > { %v1132_v6 = vadd.f32 %v1131_v58, %v1043_v53 }
 0x208   : > { %v1111_v62 = vpop.f32.mrf.mxu2 }
 0x209   : > { %v1112_v24 = vadd.f32 %v1111_v62, %v1023_v54  ;;  %v1165_v56 = vadd.f32 %v1132_v6, %v530_v55  ;;  %1201 = sbr.rel (%p1560_p13) target bundleno = 563 (0x233), region = 63 }
 0x20b   : > { %v1157_v59 = vadd.f32 %v1112_v24, %v522_v57  ;;  %1197 = vst [vmem:[#allocation2 + $0x98] sm:$0xff] %v1165_v56 }
 0x20d   : > { %1189 = vst [vmem:[#allocation2 + $0xc0] sm:$0xff] %v1157_v59 }
 0x20e   : > { %v1202_v61 = vld [vmem:[#allocation2 + $0xb0] sm:$0xff]  ;;  %v2235_v63 = vld [vmem:[%s2324_s2] ss:$0 sm:$0xff]  ;;  %v1204_v16 = vld [vmem:[#allocation2 + $0xd8] sm:$0xff] }
 0x20f   : > { %v1203_v7 = vld [vmem:[#allocation2] sm:$0xff]  ;;  %v1205_v0 = vld [vmem:[#allocation2 + $0x18] sm:$0xff]  ;;  %v1238_v1 = vadd.f32 %v2235_v63, %v1202_v61  ;;  %v1240_v3 = vadd.f32 %v2235_v63, %v1204_v16  ;;  %v1206_v8 = vld [vmem:[#allocation2 + $0x50] sm:$0xff] }
 0x210   : > { %v1239_v2 = vadd.f32 %v2235_v63, %v1203_v7  ;;  %v1241_v5 = vadd.f32 %v2235_v63, %v1205_v0  ;;  %v1207_v9 = vld [vmem:[#allocation2 + $0x68] sm:$0xff]  ;;  %v1208_v4 = vld [vmem:[#allocation2 + $0x30] sm:$0xff]  ;;  %v1242_v33 = vadd.f32 %v2235_v63, %v1206_v8  ;;  %v1210_v12 = vld [vmem:[#allocation2 + $0x80] sm:$0xff] }
 0x211   : > { %v1243_v10 = vadd.f32 %v2235_v63, %v1207_v9  ;;  %v1209_v11 = vld [vmem:[#allocation2 + $0x48] sm:$0xff]  ;;  %v1270_v13 = vmax.f32 %v1238_v1, 0.0  ;;  %v1272_v17 = vmax.f32 %v1240_v3, 0.0  ;;  %v1244_v18 = vadd.f32 %v2235_v63, %v1208_v4  ;;  %v1213_v25 = vld [vmem:[#allocation2 + $0xb8] sm:$0xff]  ;;  %v1214_v28 = vld [vmem:[#allocation2 + $0x60] sm:$0xff] }
 0x212   : > { %v1271_v14 = vmax.f32 %v1239_v2, 0.0  ;;  %v1211_v19 = vld [vmem:[#allocation2 + $0x88] sm:$0xff]  ;;  %v1273_v21 = vmax.f32 %v1241_v5, 0.0  ;;  %v1245_v20 = vadd.f32 %v2235_v63, %v1209_v11  ;;  %v1274_v22 = vmax.f32 %v1242_v33, 0.0  ;;  %v1215_v31 = vld [vmem:[#allocation2 + $0xf0] sm:$0xff]  ;;  %v1217_v37 = vld [vmem:[#allocation2 + $0x78] sm:$0xff] }
 0x213   : > { %v1212_v42 = vld [vmem:[#allocation2 + $0xe8] sm:$0xff]  ;;  %1302 = vst [vmem:[%s2018_s30] sm:$0xff] %v1270_v13  ;;  %v1246_v23 = vadd.f32 %v2235_v63, %v1210_v12  ;;  %v1275_v26 = vmax.f32 %v1243_v10, 0.0  ;;  %v1247_v27 = vadd.f32 %v2235_v63, %v1211_v19  ;;  %v1276_v29 = vmax.f32 %v1244_v18, 0.0  ;;  %v1218_v41 = vld [vmem:[#allocation2 + $0x38] sm:$0xff]  ;;  %v1220_v60 = vld [vmem:[#allocation2 + $0x40] sm:$0xff] }
 0x214   : > { %1303 = vst [vmem:[%s2018_s30 + $0x8] sm:$0xff] %v1271_v14  ;;  %v1248_v30 = vadd.f32 %v2235_v63, %v1212_v42  ;;  %v1277_v34 = vmax.f32 %v1245_v20, 0.0  ;;  %v1249_v35 = vadd.f32 %v2235_v63, %v1213_v25  ;;  %v1216_v32 = vld [vmem:[#allocation2 + $0x8] sm:$0xff]  ;;  %v1250_v36 = vadd.f32 %v2235_v63, %v1214_v28  ;;  %v1219_v45 = vld [vmem:[#allocation2 + $0x58] sm:$0xff]  ;;  %v1222_v52 = vld [vmem:[#allocation2 + $0xe0] sm:$0xff] }
 0x215   : > { %1304 = vst [vmem:[%s2018_s30 + $0x10] sm:$0xff] %v1272_v17  ;;  %v1278_v51 = vmax.f32 %v1246_v23, 0.0  ;;  %v1279_v38 = vmax.f32 %v1247_v27, 0.0  ;;  %v1251_v39 = vadd.f32 %v2235_v63, %v1215_v31  ;;  %v1252_v44 = vadd.f32 %v2235_v63, %v1216_v32  ;;  %v1221_v47 = vld [vmem:[#allocation2 + $0xc8] sm:$0xff]  ;;  %v1223_v55 = vld [vmem:[#allocation2 + $0x90] sm:$0xff]  ;;  %v1225_v56 = vld [vmem:[#allocation2 + $0xc0] sm:$0xff] }
 0x216   : > { %1305 = vst [vmem:[%s2018_s30 + $0x18] sm:$0xff] %v1273_v21  ;;  %v1280_v43 = vmax.f32 %v1248_v30, 0.0  ;;  %v1281_v40 = vmax.f32 %v1249_v35, 0.0  ;;  %v1253_v49 = vadd.f32 %v2235_v63, %v1217_v37  ;;  %v1282_v15 = vmax.f32 %v1250_v36, 0.0  ;;  %v1224_v62 = vld [vmem:[#allocation2 + $0x70] sm:$0xff]  ;;  %v1226_v7 = vld [vmem:[#allocation2 + $0xa8] sm:$0xff] }
 0x217   : > { %1306 = vst [vmem:[%s2018_s30 + $0x20] sm:$0xff] %v1274_v22  ;;  %v1254_v46 = vadd.f32 %v2235_v63, %v1218_v41  ;;  %v1283_v48 = vmax.f32 %v1251_v39, 0.0  ;;  %v1255_v50 = vadd.f32 %v2235_v63, %v1219_v45  ;;  %v1284_v53 = vmax.f32 %v1252_v44, 0.0  ;;  %v1227_v1 = vld [vmem:[#allocation2 + $0xd0] sm:$0xff]  ;;  %v1229_v4 = vld [vmem:[#allocation2 + $0x28] sm:$0xff]  ;;  %v1230_v11 = vld [vmem:[#allocation2 + $0xa0] sm:$0xff] }
 0x218   : > { %1307 = vst [vmem:[%s2018_s30 + $0x28] sm:$0xff] %v1275_v26  ;;  %v1256_v54 = vadd.f32 %v2235_v63, %v1220_v60  ;;  %v1285_v58 = vmax.f32 %v1253_v49, 0.0  ;;  %v1257_v57 = vadd.f32 %v2235_v63, %v1221_v47  ;;  %v1258_v24 = vadd.f32 %v2235_v63, %v1222_v52  ;;  %v1228_v5 = vld [vmem:[#allocation2 + $0x10] sm:$0xff]  ;;  %v1231_v14 = vld [vmem:[#allocation2 + $0xf8] sm:$0xff]  ;;  %v1232_v19 = vld [vmem:[#allocation2 + $0x20] sm:$0xff] }
 0x219   : > { %1308 = vst [vmem:[%s2018_s30 + $0x30] sm:$0xff] %v1276_v29  ;;  %v1286_v6 = vmax.f32 %v1254_v46, 0.0  ;;  %v1287_v59 = vmax.f32 %v1255_v50, 0.0  ;;  %v1259_v61 = vadd.f32 %v2235_v63, %v1223_v55  ;;  %v1260_v0 = vadd.f32 %v2235_v63, %v1224_v62  ;;  %v1233_v42 = vld [vmem:[#allocation2 + $0x98] sm:$0xff] }
 0x21a   : > { %1309 = vst [vmem:[%s2018_s30 + $0x38] sm:$0xff] %v1277_v34  ;;  %v1288_v16 = vmax.f32 %v1256_v54, 0.0  ;;  %v1289_v2 = vmax.f32 %v1257_v57, 0.0  ;;  %v1261_v3 = vadd.f32 %v2235_v63, %v1225_v56  ;;  %v1290_v8 = vmax.f32 %v1258_v24, 0.0 }
 0x21b   : > { %1310 = vst [vmem:[%s2018_s30 + $0x40] sm:$0xff] %v1278_v51  ;;  %v1262_v9 = vadd.f32 %v2235_v63, %v1226_v7  ;;  %v1291_v33 = vmax.f32 %v1259_v61, 0.0  ;;  %v1263_v10 = vadd.f32 %v2235_v63, %v1227_v1  ;;  %v1292_v12 = vmax.f32 %v1260_v0, 0.0 }
 0x21c   : > { %1311 = vst [vmem:[%s2018_s30 + $0x48] sm:$0xff] %v1279_v38  ;;  %v1264_v13 = vadd.f32 %v2235_v63, %v1228_v5  ;;  %v1293_v17 = vmax.f32 %v1261_v3, 0.0  ;;  %v1265_v18 = vadd.f32 %v2235_v63, %v1229_v4  ;;  %v1266_v20 = vadd.f32 %v2235_v63, %v1230_v11 }
 0x21d   : > { %1312 = vst [vmem:[%s2018_s30 + $0x50] sm:$0xff] %v1280_v43  ;;  %v1294_v21 = vmax.f32 %v1262_v9, 0.0  ;;  %v1295_v22 = vmax.f32 %v1263_v10, 0.0  ;;  %v1267_v23 = vadd.f32 %v2235_v63, %v1231_v14  ;;  %v1268_v26 = vadd.f32 %v2235_v63, %v1232_v19 }
 0x21e   : > { %1313 = vst [vmem:[%s2018_s30 + $0x58] sm:$0xff] %v1281_v40  ;;  %v1296_v25 = vmax.f32 %v1264_v13, 0.0  ;;  %v1297_v27 = vmax.f32 %v1265_v18, 0.0  ;;  %v1269_v28 = vadd.f32 %v2235_v63, %v1233_v42  ;;  %v1298_v29 = vmax.f32 %v1266_v20, 0.0 }
 0x21f   : > { %1314 = vst [vmem:[%s2018_s30 + $0x60] sm:$0xff] %v1282_v15  ;;  %v1299_v30 = vmax.f32 %v1267_v23, 0.0  ;;  %v1300_v31 = vmax.f32 %v1268_v26, 0.0 }
 0x220   : > { %1315 = vst [vmem:[%s2018_s30 + $0x68] sm:$0xff] %v1283_v48  ;;  %v1301_v34 = vmax.f32 %v1269_v28, 0.0 }
 0x221   : > { %1316 = vst [vmem:[%s2018_s30 + $0x70] sm:$0xff] %v1284_v53 }
 0x222   : > { %1317 = vst [vmem:[%s2018_s30 + $0x78] sm:$0xff] %v1285_v58 }
 0x223   : > { %1318 = vst [vmem:[%s2018_s30 + $0x80] sm:$0xff] %v1286_v6 }
 0x224   : > { %1319 = vst [vmem:[%s2018_s30 + $0x88] sm:$0xff] %v1287_v59 }
 0x225   : > { %1320 = vst [vmem:[%s2018_s30 + $0x90] sm:$0xff] %v1288_v16 }
 0x226   : > { %1321 = vst [vmem:[%s2018_s30 + $0x98] sm:$0xff] %v1289_v2 }
 0x227   : > { %1322 = vst [vmem:[%s2018_s30 + $0xa0] sm:$0xff] %v1290_v8 }
 0x228   : > { %1323 = vst [vmem:[%s2018_s30 + $0xa8] sm:$0xff] %v1291_v33 }
 0x229   : > { %1324 = vst [vmem:[%s2018_s30 + $0xb0] sm:$0xff] %v1292_v12 }
 0x22a   : > { %1325 = vst [vmem:[%s2018_s30 + $0xb8] sm:$0xff] %v1293_v17 }
 0x22b   : > { %1326 = vst [vmem:[%s2018_s30 + $0xc0] sm:$0xff] %v1294_v21 }
 0x22c   : > { %1327 = vst [vmem:[%s2018_s30 + $0xc8] sm:$0xff] %v1295_v22 }
 0x22d   : > { %1328 = vst [vmem:[%s2018_s30 + $0xd0] sm:$0xff] %v1296_v25 }
 0x22e   : > { %1329 = vst [vmem:[%s2018_s30 + $0xd8] sm:$0xff] %v1297_v27 }
 0x22f   : > { %1330 = vst [vmem:[%s2018_s30 + $0xe0] sm:$0xff] %v1298_v29 }
 0x230   : > { %1331 = vst [vmem:[%s2018_s30 + $0xe8] sm:$0xff] %v1299_v30 }
 0x231   : > { %1332 = vst [vmem:[%s2018_s30 + $0xf0] sm:$0xff] %v1300_v31 }
 0x232   : > { %1333 = vst [vmem:[%s2018_s30 + $0xf8] sm:$0xff] %v1301_v34 }
 0x233 PF: > { %s13_s18 = sadd.s32 1, %s1726_s18   ;;  %s2326_s12 = smov %s1706_s13 }
 0x234   : > { %p10_p0 = scmp.ge.s32.totalorder %s13_s18, 8   ;;  %s2327_s13 = smov %s1800_s25 }
 0x235   : > { %s2328_s14 = smov %s1718_s16  ;;  %s2329_s15 = smov %s1722_s17 }
 0x236   : > { %s2330_s16 = smov %s2333_s19  ;;  %s2331_s17 = smov %s2337_s20 }
 0x237   :  { %12 = sbr.rel (!%p10_p0) target bundleno = 4 (0x4), region = 104 }

// kernel: fuse_backbone_forward.38
= control target key start
LH: loop header
LB: loop body
LE: loop exit
PB: predicated region body
PF: predicated region fallthrough
CT: control target
= control target key end

     0   :  { %s1292_s12 = smov 0   ;;  %s1294_s13 = smov 0   ;;  %s1638_s0 = inlined_call_operand.vmem [shape: f32[128,1152], index: 0, kind: input, shape index: {}]   ;;  %s1639_s1 = inlined_call_operand.vmem [shape: bf16[1152,128], index: 1, kind: input, shape index: {}]   ;;  %s1640_s2 = inlined_call_operand.vmem [shape: f32[1,128], index: 2, kind: input, shape index: {}]   ;;  %s1641_s3 = inlined_call_operand.vmem [shape: f32[128,128], index: 3, kind: output, shape index: {}]  }
   0x1   :  { %s1296_s14 = smov 0   ;;  %s1298_s15 = smov 0  }
   0x2   :  { %s1300_s16 = smov 0  }
   0x3 LB: > { %s25_s17 = sadd.s32 1, %s1265_s15  ;;  %p48_p1 = scmp.ne.s32.totalorder %s1257_s13, %s1253_s12  ;;  %s1269_s16 = sphi %s1300_s16, %s13_s16   ;;  %s1265_s15 = sphi %s1298_s15, %s1645_s15   ;;  %s1261_s14 = sphi %s1296_s14, %s1644_s14   ;;  %s1257_s13 = sphi %s1294_s13, %s1643_s13   ;;  %s1253_s12 = sphi %s1292_s12, %s1642_s12  }
   0x4   : > { %p26_p0 = scmp.ge.s32.totalorder %s25_s17, 3  ;;  %p49_p2 = scmp.eq.s32.totalorder %s1269_s16, 0 }
   0x5   : > { %s41_s19 = sadd.s32 1, %s1257_s13  ;;  %p1032_p5 = scmp.ge.s32.totalorder %s1269_s16, 3 }
   0x6   : > { %s1647_s17 = smov (%p26_p0, %s25_s17), 0  ;;  %p50_p3 = por %p49_p2, %p48_p1 }
   0x7   : > { %s37_s18 = ssub.s32 %s1265_s15, %s1647_s17  ;;  %162 = sbr.rel (%p1032_p5) target bundleno = 65 (0x41), region = 20 }
   0x8   : > { %p39_p4 = scmp.eq.s32.totalorder %s37_s18, 0 }
   0xa   : > { %s1327_s20 = scalar_select %p39_p4, %s1257_s13, %s41_s19  }
   0xc   : > { %165 = sbr.rel (!%p50_p3) target bundleno = 65 (0x41), region = 24  ;;  %s167_s21 = sand.u32 (%p50_p3), 1, %s1257_s13  }
   0xd   : > { %s1138_s22 = smul.u32 (%p50_p3), 24, %s1265_s15 }
   0xe   : > { %s1187_s23 = smul.u32 (%p50_p3), 384, %s167_s21 }
   0xf   : > { %s1335_s26 = scalar_lea.vmem (%p50_p3), %s1638_s0, %s1138_s22 }
  0x10   : > { %v188_v0 = vld [vmem:[%s1335_s26] sm:$0xff] (%p50_p3)  ;;  %v190_v1 = vld [vmem:[%s1335_s26 + $0x8] sm:$0xff] (%p50_p3)  ;;  %v192_v2 = vld [vmem:[%s1335_s26 + $0x10] sm:$0xff] (%p50_p3)  ;;  %s1340_s27 = scalar_lea.vmem (%p50_p3), [#allocation3], %s1187_s23 }
  0x11   : > { %189 = vst [vmem:[%s1340_s27] sm:$0xff] %v188_v0  ;;  %v194_v3 = vld [vmem:[%s1335_s26 + $0x48] sm:$0xff]  ;;  %v196_v4 = vld [vmem:[%s1335_s26 + $0x50] sm:$0xff]  ;;  %v198_v5 = vld [vmem:[%s1335_s26 + $0x58] sm:$0xff] }
  0x12   : > { %191 = vst [vmem:[%s1340_s27 + $0x8] sm:$0xff] %v190_v1  ;;  %v200_v6 = vld [vmem:[%s1335_s26 + $0x90] sm:$0xff]  ;;  %v202_v7 = vld [vmem:[%s1335_s26 + $0x98] sm:$0xff]  ;;  %v204_v8 = vld [vmem:[%s1335_s26 + $0xa0] sm:$0xff] }
  0x13   : > { %193 = vst [vmem:[%s1340_s27 + $0x10] sm:$0xff] %v192_v2  ;;  %v206_v9 = vld [vmem:[%s1335_s26 + $0xd8] sm:$0xff]  ;;  %v208_v10 = vld [vmem:[%s1335_s26 + $0xe0] sm:$0xff]  ;;  %v210_v11 = vld [vmem:[%s1335_s26 + $0xe8] sm:$0xff] }
  0x14   : > { %195 = vst [vmem:[%s1340_s27 + $0x18] sm:$0xff] %v194_v3  ;;  %v212_v12 = vld [vmem:[%s1335_s26 + $0x120] sm:$0xff]  ;;  %v214_v13 = vld [vmem:[%s1335_s26 + $0x128] sm:$0xff]  ;;  %v216_v14 = vld [vmem:[%s1335_s26 + $0x130] sm:$0xff] }
  0x15   : > { %197 = vst [vmem:[%s1340_s27 + $0x20] sm:$0xff] %v196_v4  ;;  %v218_v15 = vld [vmem:[%s1335_s26 + $0x168] sm:$0xff]  ;;  %v220_v16 = vld [vmem:[%s1335_s26 + $0x170] sm:$0xff]  ;;  %v222_v17 = vld [vmem:[%s1335_s26 + $0x178] sm:$0xff] }
  0x16   : > { %199 = vst [vmem:[%s1340_s27 + $0x28] sm:$0xff] %v198_v5  ;;  %v224_v18 = vld [vmem:[%s1335_s26 + $0x1b0] sm:$0xff]  ;;  %v226_v19 = vld [vmem:[%s1335_s26 + $0x1b8] sm:$0xff]  ;;  %v228_v20 = vld [vmem:[%s1335_s26 + $0x1c0] sm:$0xff] }
  0x17   : > { %201 = vst [vmem:[%s1340_s27 + $0x30] sm:$0xff] %v200_v6  ;;  %v230_v21 = vld [vmem:[%s1335_s26 + $0x1f8] sm:$0xff]  ;;  %v232_v22 = vld [vmem:[%s1335_s26 + $0x200] sm:$0xff]  ;;  %v234_v23 = vld [vmem:[%s1335_s26 + $0x208] sm:$0xff] }
  0x18   : > { %203 = vst [vmem:[%s1340_s27 + $0x38] sm:$0xff] %v202_v7  ;;  %v236_v24 = vld [vmem:[%s1335_s26 + $0x240] sm:$0xff]  ;;  %v238_v25 = vld [vmem:[%s1335_s26 + $0x248] sm:$0xff]  ;;  %v240_v26 = vld [vmem:[%s1335_s26 + $0x250] sm:$0xff] }
  0x19   : > { %205 = vst [vmem:[%s1340_s27 + $0x40] sm:$0xff] %v204_v8  ;;  %v242_v27 = vld [vmem:[%s1335_s26 + $0x288] sm:$0xff]  ;;  %v244_v28 = vld [vmem:[%s1335_s26 + $0x290] sm:$0xff]  ;;  %v246_v29 = vld [vmem:[%s1335_s26 + $0x298] sm:$0xff] }
  0x1a   : > { %207 = vst [vmem:[%s1340_s27 + $0x48] sm:$0xff] %v206_v9  ;;  %v248_v30 = vld [vmem:[%s1335_s26 + $0x2d0] sm:$0xff]  ;;  %v250_v31 = vld [vmem:[%s1335_s26 + $0x2d8] sm:$0xff]  ;;  %v252_v32 = vld [vmem:[%s1335_s26 + $0x2e0] sm:$0xff] }
  0x1b   : > { %209 = vst [vmem:[%s1340_s27 + $0x50] sm:$0xff] %v208_v10  ;;  %v254_v33 = vld [vmem:[%s1335_s26 + $0x318] sm:$0xff]  ;;  %v256_v34 = vld [vmem:[%s1335_s26 + $0x320] sm:$0xff]  ;;  %v258_v35 = vld [vmem:[%s1335_s26 + $0x328] sm:$0xff] }
  0x1c   : > { %211 = vst [vmem:[%s1340_s27 + $0x58] sm:$0xff] %v210_v11  ;;  %v260_v36 = vld [vmem:[%s1335_s26 + $0x360] sm:$0xff]  ;;  %v262_v37 = vld [vmem:[%s1335_s26 + $0x368] sm:$0xff]  ;;  %v264_v38 = vld [vmem:[%s1335_s26 + $0x370] sm:$0xff] }
  0x1d   : > { %213 = vst [vmem:[%s1340_s27 + $0x60] sm:$0xff] %v212_v12  ;;  %v266_v39 = vld [vmem:[%s1335_s26 + $0x3a8] sm:$0xff]  ;;  %v268_v40 = vld [vmem:[%s1335_s26 + $0x3b0] sm:$0xff]  ;;  %v270_v41 = vld [vmem:[%s1335_s26 + $0x3b8] sm:$0xff] }
  0x1e   : > { %215 = vst [vmem:[%s1340_s27 + $0x68] sm:$0xff] %v214_v13  ;;  %v272_v42 = vld [vmem:[%s1335_s26 + $0x3f0] sm:$0xff]  ;;  %v274_v43 = vld [vmem:[%s1335_s26 + $0x3f8] sm:$0xff]  ;;  %v276_v44 = vld [vmem:[%s1335_s26 + $0x400] sm:$0xff] }
  0x1f   : > { %217 = vst [vmem:[%s1340_s27 + $0x70] sm:$0xff] %v216_v14  ;;  %v278_v45 = vld [vmem:[%s1335_s26 + $0x438] sm:$0xff]  ;;  %v280_v46 = vld [vmem:[%s1335_s26 + $0x440] sm:$0xff]  ;;  %v282_v47 = vld [vmem:[%s1335_s26 + $0x448] sm:$0xff] }
  0x20   : > { %219 = vst [vmem:[%s1340_s27 + $0x78] sm:$0xff] %v218_v15 }
  0x21   : > { %221 = vst [vmem:[%s1340_s27 + $0x80] sm:$0xff] %v220_v16 }
  0x22   : > { %223 = vst [vmem:[%s1340_s27 + $0x88] sm:$0xff] %v222_v17 }
  0x23   : > { %225 = vst [vmem:[%s1340_s27 + $0x90] sm:$0xff] %v224_v18 }
  0x24   : > { %227 = vst [vmem:[%s1340_s27 + $0x98] sm:$0xff] %v226_v19 }
  0x25   : > { %229 = vst [vmem:[%s1340_s27 + $0xa0] sm:$0xff] %v228_v20 }
  0x26   : > { %231 = vst [vmem:[%s1340_s27 + $0xa8] sm:$0xff] %v230_v21 }
  0x27   : > { %233 = vst [vmem:[%s1340_s27 + $0xb0] sm:$0xff] %v232_v22 }
  0x28   : > { %235 = vst [vmem:[%s1340_s27 + $0xb8] sm:$0xff] %v234_v23 }
  0x29   : > { %237 = vst [vmem:[%s1340_s27 + $0xc0] sm:$0xff] %v236_v24 }
  0x2a   : > { %239 = vst [vmem:[%s1340_s27 + $0xc8] sm:$0xff] %v238_v25 }
  0x2b   : > { %241 = vst [vmem:[%s1340_s27 + $0xd0] sm:$0xff] %v240_v26 }
  0x2c   : > { %243 = vst [vmem:[%s1340_s27 + $0xd8] sm:$0xff] %v242_v27 }
  0x2d   : > { %245 = vst [vmem:[%s1340_s27 + $0xe0] sm:$0xff] %v244_v28 }
  0x2e   : > { %247 = vst [vmem:[%s1340_s27 + $0xe8] sm:$0xff] %v246_v29 }
  0x2f   : > { %249 = vst [vmem:[%s1340_s27 + $0xf0] sm:$0xff] %v248_v30 }
  0x30   : > { %251 = vst [vmem:[%s1340_s27 + $0xf8] sm:$0xff] %v250_v31 }
  0x31   : > { %253 = vst [vmem:[%s1340_s27 + $0x100] sm:$0xff] %v252_v32 }
  0x32   : > { %255 = vst [vmem:[%s1340_s27 + $0x108] sm:$0xff] %v254_v33 }
  0x33   : > { %257 = vst [vmem:[%s1340_s27 + $0x110] sm:$0xff] %v256_v34 }
  0x34   : > { %259 = vst [vmem:[%s1340_s27 + $0x118] sm:$0xff] %v258_v35 }
  0x35   : > { %261 = vst [vmem:[%s1340_s27 + $0x120] sm:$0xff] %v260_v36 }
  0x36   : > { %263 = vst [vmem:[%s1340_s27 + $0x128] sm:$0xff] %v262_v37 }
  0x37   : > { %265 = vst [vmem:[%s1340_s27 + $0x130] sm:$0xff] %v264_v38 }
  0x38   : > { %267 = vst [vmem:[%s1340_s27 + $0x138] sm:$0xff] %v266_v39 }
  0x39   : > { %269 = vst [vmem:[%s1340_s27 + $0x140] sm:$0xff] %v268_v40 }
  0x3a   : > { %271 = vst [vmem:[%s1340_s27 + $0x148] sm:$0xff] %v270_v41 }
  0x3b   : > { %273 = vst [vmem:[%s1340_s27 + $0x150] sm:$0xff] %v272_v42 }
  0x3c   : > { %275 = vst [vmem:[%s1340_s27 + $0x158] sm:$0xff] %v274_v43 }
  0x3d   : > { %277 = vst [vmem:[%s1340_s27 + $0x160] sm:$0xff] %v276_v44 }
  0x3e   : > { %279 = vst [vmem:[%s1340_s27 + $0x168] sm:$0xff] %v278_v45 }
  0x3f   : > { %281 = vst [vmem:[%s1340_s27 + $0x170] sm:$0xff] %v280_v46 }
  0x40   : > { %283 = vst [vmem:[%s1340_s27 + $0x178] sm:$0xff] %v282_v47 }
  0x41 PF: > { %p1034_p6 = scmp.ge.s32.totalorder %s1269_s16, 1  ;;  %p300_p7 = scmp.lt.s32.totalorder %s1269_s16, 4 }
  0x43   : > { %p301_p8 = pnand %p1034_p6, %p300_p7 }
  0x44   : > { %s307_s28 = sand.u32 (!%p301_p8), 1, %s1253_s12   ;;  %s346_s29 = smul.u32 (!%p301_p8), 48, %s1261_s14 }
  0x45   : > { %304 = sbr.rel (%p301_p8) target bundleno = 376 (0x178), region = 51  ;;  %p1036_p10 = scmp.ne.s32.totalorder (!%p301_p8), %s1261_s14, 0 }
  0x46   : > { %s1188_s30 = smul.u32 (!%p301_p8), 384, %s307_s28  ;;  %p347_p9 = scmp.lt.s32.totalorder (!%p301_p8), %s346_s29, 143 }
  0x48   : > { %s1444_s8 = scalar_lea.vmem (!%p301_p8), [#allocation3], %s1188_s30 }
  0x4a   : > { %s1649_s29 = smov (!%p347_p9, %s346_s29), 143  ;;  %370 = sbr.rel (%p1036_p10) target bundleno = 96 (0x60), region = 59 }
  0x4b   : > { %s1035_s4 = sshll.u32 %s1649_s29, 2 }
  0x4c   : > { %s1442_s7 = scalar_lea.vmem %s1639_s1, %s1035_s4 }
  0x4f   : > { %v1271_v48 = vmov 0.0  }
  0x50   : > { %371 = vst [vmem:[#allocation2 + $0x30] sm:$0xff] %v1271_v48 }
  0x51   : > { %372 = vst [vmem:[#allocation2] sm:$0xff] %v1271_v48 }
  0x52   : > { %373 = vst [vmem:[#allocation2 + $0x58] sm:$0xff] %v1271_v48 }
  0x53   : > { %374 = vst [vmem:[#allocation2 + $0x18] sm:$0xff] %v1271_v48 }
  0x54   : > { %375 = vst [vmem:[#allocation2 + $0x50] sm:$0xff] %v1271_v48 }
  0x55   : > { %376 = vst [vmem:[#allocation2 + $0x68] sm:$0xff] %v1271_v48 }
  0x56   : > { %377 = vst [vmem:[#allocation2 + $0x8] sm:$0xff] %v1271_v48 }
  0x57   : > { %378 = vst [vmem:[#allocation2 + $0x48] sm:$0xff] %v1271_v48 }
  0x58   : > { %379 = vst [vmem:[#allocation2 + $0x40] sm:$0xff] %v1271_v48 }
  0x59   : > { %380 = vst [vmem:[#allocation2 + $0x20] sm:$0xff] %v1271_v48 }
  0x5a   : > { %381 = vst [vmem:[#allocation2 + $0x10] sm:$0xff] %v1271_v48 }
  0x5b   : > { %382 = vst [vmem:[#allocation2 + $0x38] sm:$0xff] %v1271_v48 }
  0x5c   : > { %383 = vst [vmem:[#allocation2 + $0x60] sm:$0xff] %v1271_v48 }
  0x5d   : > { %384 = vst [vmem:[#allocation2 + $0x70] sm:$0xff] %v1271_v48 }
  0x5e   : > { %385 = vst [vmem:[#allocation2 + $0x78] sm:$0xff] %v1271_v48 }
  0x5f   : > { %386 = vst [vmem:[#allocation2 + $0x28] sm:$0xff] %v1271_v48 }
  0x60 PF: > { %v1146_v49 = vld [vmem:[%s1442_s7 + $0x38] sm:$0xff]  ;;  %v1145_v52 = vld [vmem:[%s1442_s7 + $0x30] sm:$0xff]  ;;  %v1144_v55 = vld [vmem:[%s1442_s7 + $0x28] sm:$0xff]  ;;  %p1133_p11 = scmp.ne.s32.totalorder %s1261_s14, 2 }
  0x61   : > { %v1449_v50 = vld [vmem:[%s1442_s7 + $0x78] sm:$0xff]  ;;  %667 = vmatpush.bf16.msra.mxu0 %v1146_v49  ;;  %1163 = vmatpush.bf16.msra.mxu3 %v1146_v49  ;;  %v1458_v53 = vld [vmem:[%s1442_s7 + $0x70] sm:$0xff]  ;;  %v1152_v56 = vld [vmem:[%s1442_s7 + $0x68] sm:$0xff] }
  0x62   : > { %v1452_v51 = vld [vmem:[%s1442_s7 + $0xb8] sm:$0xff]  ;;  %716 = vmatpush.bf16.msra.mxu1 %v1449_v50  ;;  %v1461_v54 = vld [vmem:[%s1442_s7 + $0xb0] sm:$0xff]  ;;  %v1468_v57 = vld [vmem:[%s1442_s7 + $0xa8] sm:$0xff] }
  0x63   : > { %765 = vmatpush.bf16.msra.mxu2 %v1452_v51  ;;  %v1143_v58 = vld [vmem:[%s1442_s7 + $0x20] sm:$0xff]  ;;  %v1142_v61 = vld [vmem:[%s1442_s7 + $0x18] sm:$0xff]  ;;  %v1141_v0 = vld [vmem:[%s1442_s7 + $0x10] sm:$0xff] }
  0x64   : > { %v1151_v59 = vld [vmem:[%s1442_s7 + $0x60] sm:$0xff]  ;;  %v1150_v62 = vld [vmem:[%s1442_s7 + $0x58] sm:$0xff]  ;;  %v1149_v1 = vld [vmem:[%s1442_s7 + $0x50] sm:$0xff] }
  0x65   : > { %668 = vmatpush.bf16.msra.mxu0 %v1145_v52  ;;  %1164 = vmatpush.bf16.msra.mxu3 %v1145_v52  ;;  %v1474_v60 = vld [vmem:[%s1442_s7 + $0xa0] sm:$0xff]  ;;  %v1480_v63 = vld [vmem:[%s1442_s7 + $0x98] sm:$0xff]  ;;  %v1486_v2 = vld [vmem:[%s1442_s7 + $0x90] sm:$0xff] }
  0x66   : > { %717 = vmatpush.bf16.msra.mxu1 %v1458_v53  ;;  %v1140_v3 = vld [vmem:[%s1442_s7 + $0x8] sm:$0xff]  ;;  %v1139_v6 = vld [vmem:[%s1442_s7] sm:$0xff]  ;;  %v406_v10 = vld [vmem:[%s1444_s8 + $0x18] sm:$0xff] }
  0x67   : > { %766 = vmatpush.bf16.msra.mxu2 %v1461_v54  ;;  %v1148_v4 = vld [vmem:[%s1442_s7 + $0x48] sm:$0xff]  ;;  %v1147_v7 = vld [vmem:[%s1442_s7 + $0x40] sm:$0xff]  ;;  %v442_v12 = vld [vmem:[%s1444_s8 + $0x138] sm:$0xff] }
  0x68   : > { %v1492_v5 = vld [vmem:[%s1442_s7 + $0x88] sm:$0xff]  ;;  %v1497_v8 = vld [vmem:[%s1442_s7 + $0x80] sm:$0xff]  ;;  %v405_v15 = vld [vmem:[%s1444_s8 + $0x10] sm:$0xff] }
  0x69   : > { %669 = vmatpush.bf16.msra.mxu0 %v1144_v55  ;;  %1165 = vmatpush.bf16.msra.mxu3 %v1144_v55  ;;  %v403_v9 = vld [vmem:[%s1444_s8] sm:$0xff]  ;;  %v404_v13 = vld [vmem:[%s1444_s8 + $0x8] sm:$0xff]  ;;  %v409_v21 = vld [vmem:[%s1444_s8 + $0x30] sm:$0xff] }
  0x6a   : > { %718 = vmatpush.bf16.msra.mxu1 %v1152_v56  ;;  %v439_v11 = vld [vmem:[%s1444_s8 + $0x120] sm:$0xff]  ;;  %v408_v16 = vld [vmem:[%s1444_s8 + $0x28] sm:$0xff]  ;;  %v451_v17 = vpack.c.bf16 %v406_v10, %v403_v9  ;;  %v445_v23 = vld [vmem:[%s1444_s8 + $0x150] sm:$0xff] }
  0x6b   : > { %767 = vmatpush.bf16.msra.mxu2 %v1468_v57  ;;  %v407_v14 = vld [vmem:[%s1444_s8 + $0x20] sm:$0xff]  ;;  %v469_v18 = vpack.c.bf16 %v442_v12, %v439_v11  ;;  %v453_v20 = vpack.c.bf16 %v408_v16, %v405_v15  ;;  %v412_v22 = vld [vmem:[%s1444_s8 + $0x48] sm:$0xff]  ;;  %v410_v25 = vld [vmem:[%s1444_s8 + $0x38] sm:$0xff] }
  0x6c   : > { %v452_v19 = vpack.c.bf16 %v407_v14, %v404_v13  ;;  %v448_v24 = vld [vmem:[%s1444_s8 + $0x168] sm:$0xff]  ;;  %v413_v26 = vld [vmem:[%s1444_s8 + $0x50] sm:$0xff]  ;;  %v411_v27 = vld [vmem:[%s1444_s8 + $0x40] sm:$0xff]  ;;  %v454_v29 = vpack.c.bf16 %v412_v22, %v409_v21 }
  0x6d   : > { %670 = vmatpush.bf16.msra.mxu0 %v1143_v58  ;;  %1166 = vmatpush.bf16.msra.mxu3 %v1143_v58  ;;  %v414_v28 = vld [vmem:[%s1444_s8 + $0x58] sm:$0xff]  ;;  %v472_v30 = vpack.c.bf16 %v448_v24, %v445_v23  ;;  %v455_v31 = vpack.c.bf16 %v413_v26, %v410_v25  ;;  %v415_v33 = vld [vmem:[%s1444_s8 + $0x60] sm:$0xff]  ;;  %v416_v35 = vld [vmem:[%s1444_s8 + $0x68] sm:$0xff] }
  0x6e   : > { %719 = vmatpush.bf16.msra.mxu1 %v1151_v59  ;;  %v456_v32 = vpack.c.bf16 %v414_v28, %v411_v27  ;;  %v418_v34 = vld [vmem:[%s1444_s8 + $0x78] sm:$0xff]  ;;  %v440_v36 = vld [vmem:[%s1444_s8 + $0x128] sm:$0xff]  ;;  %v443_v37 = vld [vmem:[%s1444_s8 + $0x140] sm:$0xff] }
  0x6f   : > { %768 = vmatpush.bf16.msra.mxu2 %v1474_v60  ;;  %v419_v38 = vld [vmem:[%s1444_s8 + $0x80] sm:$0xff]  ;;  %v417_v39 = vld [vmem:[%s1444_s8 + $0x70] sm:$0xff]  ;;  %v420_v40 = vld [vmem:[%s1444_s8 + $0x88] sm:$0xff]  ;;  %v457_v41 = vpack.c.bf16 %v418_v34, %v415_v33  ;;  %v470_v42 = vpack.c.bf16 %v443_v37, %v440_v36 }
  0x70   : > { %v458_v43 = vpack.c.bf16 %v419_v38, %v416_v35  ;;  %v459_v44 = vpack.c.bf16 %v420_v40, %v417_v39  ;;  %v421_v45 = vld [vmem:[%s1444_s8 + $0x90] sm:$0xff]  ;;  %v424_v46 = vld [vmem:[%s1444_s8 + $0xa8] sm:$0xff]  ;;  %v422_v47 = vld [vmem:[%s1444_s8 + $0x98] sm:$0xff] }
  0x71   : > { %671 = vmatpush.bf16.msra.mxu0 %v1142_v61  ;;  %1167 = vmatpush.bf16.msra.mxu3 %v1142_v61  ;;  %v446_v48 = vld [vmem:[%s1444_s8 + $0x158] sm:$0xff]  ;;  %v449_v49 = vld [vmem:[%s1444_s8 + $0x170] sm:$0xff]  ;;  %v444_v61 = vld [vmem:[%s1444_s8 + $0x148] sm:$0xff] }
  0x72   : > { %720 = vmatpush.bf16.msra.mxu1 %v1150_v62  ;;  %v426_v52 = vld [vmem:[%s1444_s8 + $0xb8] sm:$0xff]  ;;  %v473_v55 = vpack.c.bf16 %v449_v49, %v446_v48  ;;  %v447_v9 = vld [vmem:[%s1444_s8 + $0x160] sm:$0xff]  ;;  %v437_v10 = vld [vmem:[%s1444_s8 + $0x110] sm:$0xff] }
  0x73   : > { %769 = vmatpush.bf16.msra.mxu2 %v1480_v63  ;;  %v430_v58 = vld [vmem:[%s1444_s8 + $0xd8] sm:$0xff]  ;;  %v435_v11 = vld [vmem:[%s1444_s8 + $0x100] sm:$0xff]  ;;  %v387_v21 = vld [vmem:[#allocation2 + $0x30] sm:$0xff] }
  0x74   : > { %v438_v12 = vld [vmem:[%s1444_s8 + $0x118] sm:$0xff] }
  0x75   : > { %672 = vmatpush.bf16.msra.mxu0 %v1141_v0  ;;  %1168 = vmatpush.bf16.msra.mxu3 %v1141_v0  ;;  %v432_v0 = vld [vmem:[%s1444_s8 + $0xe8] sm:$0xff]  ;;  %v468_v16 = vpack.c.bf16 %v438_v12, %v435_v11  ;;  %v389_v37 = vld [vmem:[#allocation2 + $0x58] sm:$0xff] }
  0x76   : > { %721 = vmatpush.bf16.msra.mxu1 %v1149_v1 }
  0x77   : > { %770 = vmatpush.bf16.msra.mxu2 %v1486_v2 }
  0x79   : > { %673 = vmatpush.bf16.msra.mxu0 %v1140_v3  ;;  %1169 = vmatpush.bf16.msra.mxu3 %v1140_v3 }
  0x7a   : > { %722 = vmatpush.bf16.msra.mxu1 %v1148_v4 }
  0x7b   : > { %771 = vmatpush.bf16.msra.mxu2 %v1492_v5 }
  0x7d   : > { %674 = vmatpush.bf16.msra.mxu0 %v1139_v6  ;;  %1170 = vmatpush.bf16.msra.mxu3 %v1139_v6  ;;  %v436_v6 = vld [vmem:[%s1444_s8 + $0x108] sm:$0xff] }
  0x7e   : > { %723 = vmatpush.bf16.msra.mxu1 %v1147_v7 }
  0x7f   : > { %772 = vmatpush.bf16.msra.mxu2 %v1497_v8 }
  0x80   : > { %675 = vmatmul.bf16.vlgmr.msra.gmra.mxu0 %v451_v17  ;;  %705 = vmatmul.bf16.vlgmr.msra.gmra.mxu3 %v469_v18 }
  0x81   : > { %1171 = vmatpush.bf16.msrb.mxu3 %v1449_v50  ;;  %724 = vmatmul.bf16.vlgmr.msra.gmra.mxu1 %v452_v19  ;;  %v425_v50 = vld [vmem:[%s1444_s8 + $0xb0] sm:$0xff] }
  0x82   : > { %773 = vmatmul.bf16.vlgmr.msra.gmra.mxu2 %v453_v20 }
  0x85   : > { %1172 = vmatpush.bf16.msrb.mxu3 %v1458_v53  ;;  %v460_v53 = vpack.c.bf16 %v424_v46, %v421_v45  ;;  %v390_v45 = vld [vmem:[#allocation2 + $0x18] sm:$0xff] }
  0x89   : > { %1173 = vmatpush.bf16.msrb.mxu3 %v1152_v56 }
  0x8d   : > { %1174 = vmatpush.bf16.msrb.mxu3 %v1151_v59  ;;  %v428_v59 = vld [vmem:[%s1444_s8 + $0xc8] sm:$0xff] }
  0x90   : > { %680 = vmatmul.bf16.gmra.mxu0 %v454_v29  ;;  %710 = vmatmul.bf16.gmra.mxu3 %v472_v30  ;;  %v388_v29 = vld [vmem:[#allocation2] sm:$0xff] }
  0x91   : > { %1175 = vmatpush.bf16.msrb.mxu3 %v1150_v62  ;;  %729 = vmatmul.bf16.gmra.mxu1 %v455_v31  ;;  %v431_v62 = vld [vmem:[%s1444_s8 + $0xe0] sm:$0xff] }
  0x92   : > { %778 = vmatmul.bf16.gmra.mxu2 %v456_v32  ;;  %v464_v3 = vpack.c.bf16 %v431_v62, %v428_v59 }
  0x95   : > { %1176 = vmatpush.bf16.msrb.mxu3 %v1149_v1 }
  0x99   : > { %1177 = vmatpush.bf16.msrb.mxu3 %v1148_v4 }
  0x9d   : > { %1178 = vmatpush.bf16.msrb.mxu3 %v1147_v7  ;;  %v434_v7 = vld [vmem:[%s1444_s8 + $0xf8] sm:$0xff] }
  0x9e   : > { %v467_v15 = vpack.c.bf16 %v437_v10, %v434_v7 }
  0xa0   : > { %685 = vmatmul.bf16.gmra.mxu0 %v457_v41  ;;  %754 = vmatmul.bf16.vlgmr.msrb.gmra.mxu3 %v470_v42 }
  0xa1   : > { %1179 = vmatpush.bf16.msra.mxu3 %v1452_v51  ;;  %734 = vmatmul.bf16.gmra.mxu1 %v458_v43  ;;  %v423_v51 = vld [vmem:[%s1444_s8 + $0xa0] sm:$0xff] }
  0xa2   : > { %783 = vmatmul.bf16.gmra.mxu2 %v459_v44  ;;  %v462_v56 = vpack.c.bf16 %v426_v52, %v423_v51 }
  0xa5   : > { %1180 = vmatpush.bf16.msra.mxu3 %v1461_v54  ;;  %v461_v54 = vpack.c.bf16 %v425_v50, %v422_v47 }
  0xa9   : > { %1181 = vmatpush.bf16.msra.mxu3 %v1468_v57  ;;  %v427_v57 = vld [vmem:[%s1444_s8 + $0xc0] sm:$0xff] }
  0xaa   : > { %v463_v1 = vpack.c.bf16 %v430_v58, %v427_v57 }
  0xad   : > { %1182 = vmatpush.bf16.msra.mxu3 %v1474_v60  ;;  %v441_v60 = vld [vmem:[%s1444_s8 + $0x130] sm:$0xff] }
  0xb0   : > { %690 = vmatmul.bf16.gmra.mxu0 %v460_v53  ;;  %759 = vmatmul.bf16.gmra.mxu3 %v473_v55  ;;  %v391_v53 = vld [vmem:[#allocation2 + $0x50] sm:$0xff] }
  0xb1   : > { %1183 = vmatpush.bf16.msra.mxu3 %v1480_v63  ;;  %739 = vmatmul.bf16.gmra.mxu1 %v461_v54  ;;  %v429_v63 = vld [vmem:[%s1444_s8 + $0xd0] sm:$0xff] }
  0xb2   : > { %788 = vmatmul.bf16.gmra.mxu2 %v462_v56  ;;  %v465_v4 = vpack.c.bf16 %v432_v0, %v429_v63 }
  0xb5   : > { %1184 = vmatpush.bf16.msra.mxu3 %v1486_v2  ;;  %v471_v2 = vpack.c.bf16 %v444_v61, %v441_v60  ;;  %v392_v61 = vld [vmem:[#allocation2 + $0x68] sm:$0xff] }
  0xb9   : > { %1185 = vmatpush.bf16.msra.mxu3 %v1492_v5  ;;  %v433_v5 = vld [vmem:[%s1444_s8 + $0xf0] sm:$0xff] }
  0xba   : > { %v466_v13 = vpack.c.bf16 %v436_v6, %v433_v5  ;;  %v393_v5 = vld [vmem:[#allocation2 + $0x8] sm:$0xff] }
  0xbd   : > { %1186 = vmatpush.bf16.msra.mxu3 %v1497_v8  ;;  %v450_v8 = vld [vmem:[%s1444_s8 + $0x178] sm:$0xff] }
  0xbe   : > { %v474_v14 = vpack.c.bf16 %v450_v8, %v447_v9 }
  0xc0   : > { %695 = vmatmul.bf16.gmra.mxu0 %v463_v1  ;;  %803 = vmatmul.bf16.vlgmr.msra.gmra.mxu3 %v471_v2 }
  0xc1   : > { %744 = vmatmul.bf16.gmra.mxu1 %v464_v3 }
  0xc2   : > { %793 = vmatmul.bf16.gmra.mxu2 %v465_v4 }
  0xd0   : > { %700 = vmatmul.bf16.gmra.mxu0 %v466_v13  ;;  %808 = vmatmul.bf16.gmra.mxu3 %v474_v14  ;;  %v394_v13 = vld [vmem:[#allocation2 + $0x48] sm:$0xff] }
  0xd1   : > { %749 = vmatmul.bf16.gmra.mxu1 %v467_v15 }
  0xd2   : > { %798 = vmatmul.bf16.gmra.mxu2 %v468_v16 }
  0xfd   : > { %v676_v17 = vpop.f32.mrf.mxu0 }
  0xfe   : > { %v725_v18 = vpop.f32.mrf.mxu1 }
  0xff   : > { %v726_v19 = vadd.f32 %v725_v18, %v676_v17 }
 0x103   : > { %v1559_v20 = vpop.f32.mrf.mxu3 }
 0x105   : > { %v774_v22 = vpop.f32.mrf.mxu2  ;;  %v678_v24 = vpop.f32.mrf.mxu0 }
 0x106   : > { %v775_v23 = vadd.f32 %v774_v22, %v726_v19  ;;  %v727_v25 = vpop.f32.mrf.mxu1  ;;  %v399_v22 = vld [vmem:[#allocation2 + $0x60] sm:$0xff] }
 0x107   : > { %v728_v27 = vadd.f32 %v727_v25, %v678_v24  ;;  %v395_v24 = vld [vmem:[#allocation2 + $0x40] sm:$0xff] }
 0x108   : > { %v814_v26 = vadd.f32 %v775_v23, %v387_v21 }
 0x10a   : > { %830 = vst [vmem:[#allocation2 + $0x30] sm:$0xff] %v814_v26 }
 0x10b   : > { %v1561_v28 = vpop.f32.mrf.mxu3 }
 0x10d   : > { %v776_v30 = vpop.f32.mrf.mxu2  ;;  %v681_v32 = vpop.f32.mrf.mxu0 }
 0x10e   : > { %v777_v31 = vadd.f32 %v776_v30, %v728_v27  ;;  %v730_v33 = vpop.f32.mrf.mxu1 }
 0x10f   : > { %v731_v35 = vadd.f32 %v730_v33, %v681_v32 }
 0x110   : > { %v815_v34 = vadd.f32 %v777_v31, %v388_v29 }
 0x112   : > { %831 = vst [vmem:[#allocation2] sm:$0xff] %v815_v34 }
 0x113   : > { %v1563_v36 = vpop.f32.mrf.mxu3 }
 0x115   : > { %v779_v38 = vpop.f32.mrf.mxu2  ;;  %v683_v40 = vpop.f32.mrf.mxu0 }
 0x116   : > { %v780_v39 = vadd.f32 %v779_v38, %v731_v35  ;;  %v732_v41 = vpop.f32.mrf.mxu1  ;;  %v400_v35 = vld [vmem:[#allocation2 + $0x70] sm:$0xff]  ;;  %v396_v38 = vld [vmem:[#allocation2 + $0x20] sm:$0xff] }
 0x117   : > { %v733_v43 = vadd.f32 %v732_v41, %v683_v40 }
 0x118   : > { %v816_v42 = vadd.f32 %v780_v39, %v389_v37 }
 0x11a   : > { %832 = vst [vmem:[#allocation2 + $0x58] sm:$0xff] %v816_v42 }
 0x11b   : > { %v1565_v44 = vpop.f32.mrf.mxu3 }
 0x11d   : > { %v781_v46 = vpop.f32.mrf.mxu2  ;;  %v686_v48 = vpop.f32.mrf.mxu0 }
 0x11e   : > { %v782_v47 = vadd.f32 %v781_v46, %v733_v43  ;;  %v735_v49 = vpop.f32.mrf.mxu1 }
 0x11f   : > { %v736_v51 = vadd.f32 %v735_v49, %v686_v48  ;;  %v401_v48 = vld [vmem:[#allocation2 + $0x78] sm:$0xff] }
 0x120   : > { %v817_v50 = vadd.f32 %v782_v47, %v390_v45 }
 0x122   : > { %833 = vst [vmem:[#allocation2 + $0x18] sm:$0xff] %v817_v50  ;;  %v397_v50 = vld [vmem:[#allocation2 + $0x10] sm:$0xff] }
 0x123   : > { %v755_v52 = vpop.f32.mrf.mxu3 }
 0x124   : > { %v756_v21 = vadd.f32 %v755_v52, %v1559_v20 }
 0x125   : > { %v784_v55 = vpop.f32.mrf.mxu2  ;;  %v688_v56 = vpop.f32.mrf.mxu0 }
 0x126   : > { %v785_v54 = vadd.f32 %v784_v55, %v736_v51  ;;  %v737_v57 = vpop.f32.mrf.mxu1 }
 0x127   : > { %v738_v59 = vadd.f32 %v737_v57, %v688_v56 }
 0x128   : > { %v818_v58 = vadd.f32 %v785_v54, %v391_v53 }
 0x12a   : > { %834 = vst [vmem:[#allocation2 + $0x50] sm:$0xff] %v818_v58 }
 0x12b   : > { %v757_v60 = vpop.f32.mrf.mxu3 }
 0x12c   : > { %v758_v33 = vadd.f32 %v757_v60, %v1561_v28 }
 0x12d   : > { %v786_v62 = vpop.f32.mrf.mxu2  ;;  %v691_v0 = vpop.f32.mrf.mxu0 }
 0x12e   : > { %v787_v63 = vadd.f32 %v786_v62, %v738_v59  ;;  %v740_v1 = vpop.f32.mrf.mxu1  ;;  %v402_v59 = vld [vmem:[#allocation2 + $0x28] sm:$0xff] }
 0x12f   : > { %v741_v3 = vadd.f32 %v740_v1, %v691_v0 }
 0x130   : > { %v819_v2 = vadd.f32 %v787_v63, %v392_v61  ;;  %v398_v61 = vld [vmem:[#allocation2 + $0x38] sm:$0xff] }
 0x132   : > { %835 = vst [vmem:[#allocation2 + $0x68] sm:$0xff] %v819_v2 }
 0x133   : > { %v760_v4 = vpop.f32.mrf.mxu3 }
 0x134   : > { %v761_v47 = vadd.f32 %v760_v4, %v1563_v36 }
 0x135   : > { %v789_v6 = vpop.f32.mrf.mxu2  ;;  %v693_v9 = vpop.f32.mrf.mxu0 }
 0x136   : > { %v790_v7 = vadd.f32 %v789_v6, %v741_v3  ;;  %v742_v8 = vpop.f32.mrf.mxu1 }
 0x137   : > { %v743_v11 = vadd.f32 %v742_v8, %v693_v9 }
 0x138   : > { %v820_v10 = vadd.f32 %v790_v7, %v393_v5 }
 0x13a   : > { %836 = vst [vmem:[#allocation2 + $0x8] sm:$0xff] %v820_v10 }
 0x13b   : > { %v762_v12 = vpop.f32.mrf.mxu3 }
 0x13c   : > { %v763_v57 = vadd.f32 %v762_v12, %v1565_v44 }
 0x13d   : > { %v791_v14 = vpop.f32.mrf.mxu2  ;;  %v696_v16 = vpop.f32.mrf.mxu0 }
 0x13e   : > { %v792_v15 = vadd.f32 %v791_v14, %v743_v11  ;;  %v745_v17 = vpop.f32.mrf.mxu1 }
 0x13f   : > { %v746_v19 = vadd.f32 %v745_v17, %v696_v16 }
 0x140   : > { %v821_v18 = vadd.f32 %v792_v15, %v394_v13 }
 0x142   : > { %837 = vst [vmem:[#allocation2 + $0x48] sm:$0xff] %v821_v18 }
 0x143   : > { %v804_v23 = vpop.f32.mrf.mxu3 }
 0x144   : > { %v805_v26 = vadd.f32 %v804_v23, %v756_v21 }
 0x145   : > { %v794_v25 = vpop.f32.mrf.mxu2  ;;  %v698_v29 = vpop.f32.mrf.mxu0 }
 0x146   : > { %v795_v27 = vadd.f32 %v794_v25, %v746_v19  ;;  %v826_v30 = vadd.f32 %v805_v26, %v399_v22  ;;  %v747_v31 = vpop.f32.mrf.mxu1 }
 0x147   : > { %v748_v34 = vadd.f32 %v747_v31, %v698_v29 }
 0x148   : > { %v822_v32 = vadd.f32 %v795_v27, %v395_v24  ;;  %842 = vst [vmem:[#allocation2 + $0x60] sm:$0xff] %v826_v30 }
 0x14a   : > { %838 = vst [vmem:[#allocation2 + $0x40] sm:$0xff] %v822_v32 }
 0x14b   : > { %v806_v37 = vpop.f32.mrf.mxu3 }
 0x14c   : > { %v807_v20 = vadd.f32 %v806_v37, %v758_v33 }
 0x14d   : > { %v796_v39 = vpop.f32.mrf.mxu2  ;;  %v701_v42 = vpop.f32.mrf.mxu0 }
 0x14e   : > { %v797_v40 = vadd.f32 %v796_v39, %v748_v34  ;;  %v827_v41 = vadd.f32 %v807_v20, %v400_v35  ;;  %v750_v43 = vpop.f32.mrf.mxu1 }
 0x14f   : > { %v751_v46 = vadd.f32 %v750_v43, %v701_v42 }
 0x150   : > { %v823_v45 = vadd.f32 %v797_v40, %v396_v38  ;;  %843 = vst [vmem:[#allocation2 + $0x70] sm:$0xff] %v827_v41 }
 0x152   : > { %839 = vst [vmem:[#allocation2 + $0x20] sm:$0xff] %v823_v45 }
 0x153   : > { %v809_v49 = vpop.f32.mrf.mxu3 }
 0x154   : > { %v810_v51 = vadd.f32 %v809_v49, %v761_v47 }
 0x155   : > { %v799_v28 = vpop.f32.mrf.mxu2  ;;  %v703_v54 = vpop.f32.mrf.mxu0 }
 0x156   : > { %v800_v52 = vadd.f32 %v799_v28, %v751_v46  ;;  %v828_v53 = vadd.f32 %v810_v51, %v401_v48  ;;  %v752_v56 = vpop.f32.mrf.mxu1 }
 0x157   : > { %v753_v58 = vadd.f32 %v752_v56, %v703_v54 }
 0x158   : > { %v824_v55 = vadd.f32 %v800_v52, %v397_v50  ;;  %844 = vst [vmem:[#allocation2 + $0x78] sm:$0xff] %v828_v53 }
 0x15a   : > { %840 = vst [vmem:[#allocation2 + $0x10] sm:$0xff] %v824_v55 }
 0x15b   : > { %v811_v60 = vpop.f32.mrf.mxu3 }
 0x15c   : > { %v812_v36 = vadd.f32 %v811_v60, %v763_v57 }
 0x15d   : > { %v801_v62 = vpop.f32.mrf.mxu2 }
 0x15e   : > { %v802_v63 = vadd.f32 %v801_v62, %v753_v58  ;;  %v829_v0 = vadd.f32 %v812_v36, %v402_v59  ;;  %849 = sbr.rel (%p1133_p11) target bundleno = 376 (0x178), region = 63 }
 0x160   : > { %v825_v1 = vadd.f32 %v802_v63, %v398_v61  ;;  %845 = vst [vmem:[#allocation2 + $0x28] sm:$0xff] %v829_v0 }
 0x162   : > { %841 = vst [vmem:[#allocation2 + $0x38] sm:$0xff] %v825_v1 }
 0x163   : > { %v850_v2 = vld [vmem:[#allocation2 + $0x30] sm:$0xff]  ;;  %v1230_v3 = vld [vmem:[%s1640_s2] ss:$0 sm:$0xff]  ;;  %v852_v4 = vld [vmem:[#allocation2 + $0x58] sm:$0xff] }
 0x164   : > { %v851_v44 = vld [vmem:[#allocation2] sm:$0xff]  ;;  %v853_v5 = vld [vmem:[#allocation2 + $0x18] sm:$0xff]  ;;  %v870_v6 = vadd.f32 %v1230_v3, %v850_v2  ;;  %v872_v9 = vadd.f32 %v1230_v3, %v852_v4  ;;  %v854_v10 = vld [vmem:[#allocation2 + $0x50] sm:$0xff] }
 0x165   : > { %v871_v7 = vadd.f32 %v1230_v3, %v851_v44  ;;  %v873_v8 = vadd.f32 %v1230_v3, %v853_v5  ;;  %v855_v11 = vld [vmem:[#allocation2 + $0x68] sm:$0xff]  ;;  %v874_v13 = vadd.f32 %v1230_v3, %v854_v10  ;;  %v858_v16 = vld [vmem:[#allocation2 + $0x40] sm:$0xff]  ;;  %v860_v25 = vld [vmem:[#allocation2 + $0x10] sm:$0xff] }
 0x166   : > { %v856_v12 = vld [vmem:[#allocation2 + $0x8] sm:$0xff]  ;;  %v875_v14 = vadd.f32 %v1230_v3, %v855_v11  ;;  %v886_v17 = vmax.f32 %v870_v6, 0.0  ;;  %v888_v19 = vmax.f32 %v872_v9, 0.0  ;;  %v859_v22 = vld [vmem:[#allocation2 + $0x20] sm:$0xff]  ;;  %v878_v27 = vadd.f32 %v1230_v3, %v858_v16  ;;  %v863_v35 = vld [vmem:[#allocation2 + $0x70] sm:$0xff] }
 0x167   : > { %v857_v15 = vld [vmem:[#allocation2 + $0x48] sm:$0xff]  ;;  %v887_v18 = vmax.f32 %v871_v7, 0.0  ;;  %v876_v21 = vadd.f32 %v1230_v3, %v856_v12  ;;  %v889_v23 = vmax.f32 %v873_v8, 0.0  ;;  %v890_v26 = vmax.f32 %v874_v13, 0.0  ;;  %v862_v32 = vld [vmem:[#allocation2 + $0x60] sm:$0xff]  ;;  %v864_v39 = vld [vmem:[#allocation2 + $0x78] sm:$0xff] }
 0x168   : > { %v877_v24 = vadd.f32 %v1230_v3, %v857_v15  ;;  %902 = vst [vmem:[%s1641_s3] sm:$0xff] %v886_v17  ;;  %v891_v30 = vmax.f32 %v875_v14, 0.0  ;;  %v879_v31 = vadd.f32 %v1230_v3, %v859_v22  ;;  %v880_v34 = vadd.f32 %v1230_v3, %v860_v25  ;;  %v865_v41 = vld [vmem:[#allocation2 + $0x28] sm:$0xff] }
 0x169   : > { %v861_v29 = vld [vmem:[#allocation2 + $0x38] sm:$0xff]  ;;  %903 = vst [vmem:[%s1641_s3 + $0x8] sm:$0xff] %v887_v18  ;;  %v892_v33 = vmax.f32 %v876_v21, 0.0  ;;  %v894_v20 = vmax.f32 %v878_v27, 0.0  ;;  %v882_v40 = vadd.f32 %v1230_v3, %v862_v32  ;;  %v883_v43 = vadd.f32 %v1230_v3, %v863_v35 }
 0x16a   : > { %904 = vst [vmem:[%s1641_s3 + $0x10] sm:$0xff] %v888_v19  ;;  %v893_v37 = vmax.f32 %v877_v24, 0.0  ;;  %v881_v38 = vadd.f32 %v1230_v3, %v861_v29  ;;  %v895_v42 = vmax.f32 %v879_v31, 0.0  ;;  %v896_v45 = vmax.f32 %v880_v34, 0.0 }
 0x16b   : > { %905 = vst [vmem:[%s1641_s3 + $0x18] sm:$0xff] %v889_v23  ;;  %v884_v46 = vadd.f32 %v1230_v3, %v864_v39  ;;  %v885_v48 = vadd.f32 %v1230_v3, %v865_v41  ;;  %v898_v49 = vmax.f32 %v882_v40, 0.0  ;;  %v899_v50 = vmax.f32 %v883_v43, 0.0 }
 0x16c   : > { %906 = vst [vmem:[%s1641_s3 + $0x20] sm:$0xff] %v890_v26  ;;  %v897_v47 = vmax.f32 %v881_v38, 0.0 }
 0x16d   : > { %907 = vst [vmem:[%s1641_s3 + $0x28] sm:$0xff] %v891_v30  ;;  %v900_v28 = vmax.f32 %v884_v46, 0.0  ;;  %v901_v51 = vmax.f32 %v885_v48, 0.0 }
 0x16e   : > { %908 = vst [vmem:[%s1641_s3 + $0x30] sm:$0xff] %v892_v33 }
 0x16f   : > { %909 = vst [vmem:[%s1641_s3 + $0x38] sm:$0xff] %v893_v37 }
 0x170   : > { %910 = vst [vmem:[%s1641_s3 + $0x40] sm:$0xff] %v894_v20 }
 0x171   : > { %911 = vst [vmem:[%s1641_s3 + $0x48] sm:$0xff] %v895_v42 }
 0x172   : > { %912 = vst [vmem:[%s1641_s3 + $0x50] sm:$0xff] %v896_v45 }
 0x173   : > { %913 = vst [vmem:[%s1641_s3 + $0x58] sm:$0xff] %v897_v47 }
 0x174   : > { %914 = vst [vmem:[%s1641_s3 + $0x60] sm:$0xff] %v898_v49 }
 0x175   : > { %915 = vst [vmem:[%s1641_s3 + $0x68] sm:$0xff] %v899_v50 }
 0x176   : > { %916 = vst [vmem:[%s1641_s3 + $0x70] sm:$0xff] %v900_v28 }
 0x177   : > { %917 = vst [vmem:[%s1641_s3 + $0x78] sm:$0xff] %v901_v51 }
 0x178 PF: > { %s13_s16 = sadd.s32 1, %s1269_s16   ;;  %s1642_s12 = smov %s1257_s13 }
 0x179   : > { %p10_p12 = scmp.ge.s32.totalorder %s13_s16, 5   ;;  %s1643_s13 = smov %s1327_s20 }
 0x17a   : > { %s1644_s14 = smov %s1265_s15  ;;  %s1645_s15 = smov %s1647_s17 }
 0x17b   :  { %12 = sbr.rel (!%p10_p12) target bundleno = 3 (0x3), region = 104 }

// kernel: fuse_backbone_forward.39
= control target key start
LH: loop header
LB: loop body
LE: loop exit
PB: predicated region body
PF: predicated region fallthrough
CT: control target
= control target key end

     0   :  { %s964_s12 = smov 0   ;;  %s966_s13 = smov 0   ;;  %s1086_s0 = inlined_call_operand.vmem [shape: f32[32,1152], index: 0, kind: input, shape index: {}]   ;;  %s1087_s1 = inlined_call_operand.vmem [shape: bf16[1152,128], index: 1, kind: input, shape index: {}]   ;;  %s1088_s2 = inlined_call_operand.vmem [shape: f32[1,128], index: 2, kind: input, shape index: {}]   ;;  %s1089_s3 = inlined_call_operand.vmem [shape: f32[32,128], index: 3, kind: output, shape index: {}]  }
   0x1   :  { %s968_s14 = smov 0   ;;  %s970_s15 = smov 0  }
   0x2   :  { %s972_s16 = smov 0  }
   0x3 LB: > { %s25_s17 = sadd.s32 1, %s937_s15  ;;  %p48_p1 = scmp.ne.s32.totalorder %s929_s13, %s925_s12  ;;  %s941_s16 = sphi %s972_s16, %s13_s16   ;;  %s937_s15 = sphi %s970_s15, %s1093_s15   ;;  %s933_s14 = sphi %s968_s14, %s1092_s14   ;;  %s929_s13 = sphi %s966_s13, %s1091_s13   ;;  %s925_s12 = sphi %s964_s12, %s1090_s12  }
   0x4   : > { %p26_p0 = scmp.ge.s32.totalorder %s25_s17, 3  ;;  %p49_p2 = scmp.eq.s32.totalorder %s941_s16, 0 }
   0x5   : > { %s41_s19 = sadd.s32 1, %s929_s13  ;;  %p720_p5 = scmp.ge.s32.totalorder %s941_s16, 3 }
   0x6   : > { %s1095_s17 = smov (%p26_p0, %s25_s17), 0  ;;  %p50_p3 = por %p49_p2, %p48_p1 }
   0x7   : > { %s37_s18 = ssub.s32 %s937_s15, %s1095_s17  ;;  %162 = sbr.rel (%p720_p5) target bundleno = 29 (0x1d), region = 20 }
   0x8   : > { %p39_p4 = scmp.eq.s32.totalorder %s37_s18, 0 }
   0xa   : > { %s999_s20 = scalar_select %p39_p4, %s929_s13, %s41_s19  }
   0xc   : > { %165 = sbr.rel (!%p50_p3) target bundleno = 29 (0x1d), region = 24  ;;  %s167_s21 = sand.u32 (%p50_p3), 1, %s929_s13  }
   0xd   : > { %s826_s22 = smul.u32 (%p50_p3), 24, %s937_s15 }
   0xe   : > { %s859_s23 = smul.u32 (%p50_p3), 96, %s167_s21 }
   0xf   : > { %s175_s26 = scalar_lea.vmem (%p50_p3), %s1086_s0, %s826_s22 }
  0x10   : > { %v188_v0 = vld [vmem:[%s175_s26] sm:$0xff] (%p50_p3)  ;;  %v190_v1 = vld [vmem:[%s175_s26 + $0x8] sm:$0xff] (%p50_p3)  ;;  %v192_v2 = vld [vmem:[%s175_s26 + $0x10] sm:$0xff] (%p50_p3)  ;;  %s169_s27 = scalar_lea.vmem (%p50_p3), [#allocation3], %s859_s23 }
  0x11   : > { %189 = vst [vmem:[%s169_s27] sm:$0xff] %v188_v0  ;;  %v194_v3 = vld [vmem:[%s175_s26 + $0x48] sm:$0xff]  ;;  %v196_v4 = vld [vmem:[%s175_s26 + $0x50] sm:$0xff]  ;;  %v198_v5 = vld [vmem:[%s175_s26 + $0x58] sm:$0xff] }
  0x12   : > { %191 = vst [vmem:[%s169_s27 + $0x8] sm:$0xff] %v190_v1  ;;  %v200_v6 = vld [vmem:[%s175_s26 + $0x90] sm:$0xff]  ;;  %v202_v7 = vld [vmem:[%s175_s26 + $0x98] sm:$0xff]  ;;  %v204_v8 = vld [vmem:[%s175_s26 + $0xa0] sm:$0xff] }
  0x13   : > { %193 = vst [vmem:[%s169_s27 + $0x10] sm:$0xff] %v192_v2  ;;  %v206_v9 = vld [vmem:[%s175_s26 + $0xd8] sm:$0xff]  ;;  %v208_v10 = vld [vmem:[%s175_s26 + $0xe0] sm:$0xff]  ;;  %v210_v11 = vld [vmem:[%s175_s26 + $0xe8] sm:$0xff] }
  0x14   : > { %195 = vst [vmem:[%s169_s27 + $0x18] sm:$0xff] %v194_v3 }
  0x15   : > { %197 = vst [vmem:[%s169_s27 + $0x20] sm:$0xff] %v196_v4 }
  0x16   : > { %199 = vst [vmem:[%s169_s27 + $0x28] sm:$0xff] %v198_v5 }
  0x17   : > { %201 = vst [vmem:[%s169_s27 + $0x30] sm:$0xff] %v200_v6 }
  0x18   : > { %203 = vst [vmem:[%s169_s27 + $0x38] sm:$0xff] %v202_v7 }
  0x19   : > { %205 = vst [vmem:[%s169_s27 + $0x40] sm:$0xff] %v204_v8 }
  0x1a   : > { %207 = vst [vmem:[%s169_s27 + $0x48] sm:$0xff] %v206_v9 }
  0x1b   : > { %209 = vst [vmem:[%s169_s27 + $0x50] sm:$0xff] %v208_v10 }
  0x1c   : > { %211 = vst [vmem:[%s169_s27 + $0x58] sm:$0xff] %v210_v11 }
  0x1d PF: > { %p722_p6 = scmp.ge.s32.totalorder %s941_s16, 1  ;;  %p228_p7 = scmp.lt.s32.totalorder %s941_s16, 4 }
  0x1f   : > { %p229_p8 = pnand %p722_p6, %p228_p7 }
  0x20   : > { %s235_s28 = sand.u32 (!%p229_p8), 1, %s925_s12   ;;  %s274_s29 = smul.u32 (!%p229_p8), 48, %s933_s14 }
  0x21   : > { %232 = sbr.rel (%p229_p8) target bundleno = 255 (0xff), region = 51  ;;  %p724_p10 = scmp.ne.s32.totalorder (!%p229_p8), %s933_s14, 0 }
  0x22   : > { %s860_s30 = smul.u32 (!%p229_p8), 96, %s235_s28  ;;  %p275_p9 = scmp.lt.s32.totalorder (!%p229_p8), %s274_s29, 143 }
  0x24   : > { %s1016_s8 = scalar_lea.vmem (!%p229_p8), [#allocation3], %s860_s30 }
  0x26   : > { %s1097_s29 = smov (!%p275_p9, %s274_s29), 143  ;;  %298 = sbr.rel (%p724_p10) target bundleno = 48 (0x30), region = 59 }
  0x27   : > { %s723_s4 = sshll.u32 %s1097_s29, 2 }
  0x28   : > { %s1014_s7 = scalar_lea.vmem %s1087_s1, %s723_s4 }
  0x2b   : > { %v943_v12 = vmov 0.0  }
  0x2c   : > { %299 = vst [vmem:[#allocation2 + $0x10] sm:$0xff] %v943_v12 }
  0x2d   : > { %300 = vst [vmem:[#allocation2] sm:$0xff] %v943_v12 }
  0x2e   : > { %301 = vst [vmem:[#allocation2 + $0x18] sm:$0xff] %v943_v12 }
  0x2f   : > { %302 = vst [vmem:[#allocation2 + $0x8] sm:$0xff] %v943_v12 }
  0x30 PF: > { %v834_v13 = vld [vmem:[%s1014_s7 + $0x38] sm:$0xff]  ;;  %v833_v16 = vld [vmem:[%s1014_s7 + $0x30] sm:$0xff]  ;;  %v832_v19 = vld [vmem:[%s1014_s7 + $0x28] sm:$0xff]  ;;  %p821_p11 = scmp.ne.s32.totalorder %s933_s14, 2 }
  0x31   : > { %v842_v14 = vld [vmem:[%s1014_s7 + $0x78] sm:$0xff]  ;;  %517 = vmatpush.bf16.msra.mxu0 %v834_v13  ;;  %v841_v17 = vld [vmem:[%s1014_s7 + $0x70] sm:$0xff]  ;;  %851 = vmatpush.bf16.msra.mxu3 %v834_v13  ;;  %v840_v20 = vld [vmem:[%s1014_s7 + $0x68] sm:$0xff] }
  0x32   : > { %v850_v15 = vld [vmem:[%s1014_s7 + $0xb8] sm:$0xff]  ;;  %536 = vmatpush.bf16.msra.mxu1 %v842_v14  ;;  %v849_v18 = vld [vmem:[%s1014_s7 + $0xb0] sm:$0xff]  ;;  %v848_v21 = vld [vmem:[%s1014_s7 + $0xa8] sm:$0xff] }
  0x33   : > { %555 = vmatpush.bf16.msra.mxu2 %v850_v15  ;;  %v831_v22 = vld [vmem:[%s1014_s7 + $0x20] sm:$0xff]  ;;  %v830_v25 = vld [vmem:[%s1014_s7 + $0x18] sm:$0xff]  ;;  %v829_v28 = vld [vmem:[%s1014_s7 + $0x10] sm:$0xff] }
  0x34   : > { %v839_v23 = vld [vmem:[%s1014_s7 + $0x60] sm:$0xff]  ;;  %v838_v26 = vld [vmem:[%s1014_s7 + $0x58] sm:$0xff]  ;;  %v837_v29 = vld [vmem:[%s1014_s7 + $0x50] sm:$0xff] }
  0x35   : > { %518 = vmatpush.bf16.msra.mxu0 %v833_v16  ;;  %852 = vmatpush.bf16.msra.mxu3 %v833_v16  ;;  %v847_v24 = vld [vmem:[%s1014_s7 + $0xa0] sm:$0xff]  ;;  %v846_v27 = vld [vmem:[%s1014_s7 + $0x98] sm:$0xff]  ;;  %v845_v30 = vld [vmem:[%s1014_s7 + $0x90] sm:$0xff] }
  0x36   : > { %537 = vmatpush.bf16.msra.mxu1 %v841_v17  ;;  %v828_v31 = vld [vmem:[%s1014_s7 + $0x8] sm:$0xff]  ;;  %v827_v34 = vld [vmem:[%s1014_s7] sm:$0xff]  ;;  %v310_v38 = vld [vmem:[%s1016_s8 + $0x18] sm:$0xff] }
  0x37   : > { %556 = vmatpush.bf16.msra.mxu2 %v849_v18  ;;  %v836_v32 = vld [vmem:[%s1014_s7 + $0x48] sm:$0xff]  ;;  %v835_v35 = vld [vmem:[%s1014_s7 + $0x40] sm:$0xff]  ;;  %v309_v41 = vld [vmem:[%s1016_s8 + $0x10] sm:$0xff] }
  0x38   : > { %v844_v33 = vld [vmem:[%s1014_s7 + $0x88] sm:$0xff]  ;;  %v843_v36 = vld [vmem:[%s1014_s7 + $0x80] sm:$0xff]  ;;  %v313_v43 = vld [vmem:[%s1016_s8 + $0x30] sm:$0xff] }
  0x39   : > { %519 = vmatpush.bf16.msra.mxu0 %v832_v19  ;;  %853 = vmatpush.bf16.msra.mxu3 %v832_v19  ;;  %v307_v37 = vld [vmem:[%s1016_s8] sm:$0xff]  ;;  %v308_v39 = vld [vmem:[%s1016_s8 + $0x8] sm:$0xff]  ;;  %v314_v49 = vld [vmem:[%s1016_s8 + $0x38] sm:$0xff] }
  0x3a   : > { %538 = vmatpush.bf16.msra.mxu1 %v840_v20  ;;  %v311_v40 = vld [vmem:[%s1016_s8 + $0x20] sm:$0xff]  ;;  %v312_v42 = vld [vmem:[%s1016_s8 + $0x28] sm:$0xff]  ;;  %v319_v45 = vpack.c.bf16 %v310_v38, %v307_v37  ;;  %v317_v50 = vld [vmem:[%s1016_s8 + $0x50] sm:$0xff] }
  0x3b   : > { %557 = vmatpush.bf16.msra.mxu2 %v848_v21  ;;  %v316_v44 = vld [vmem:[%s1016_s8 + $0x48] sm:$0xff]  ;;  %v320_v46 = vpack.c.bf16 %v311_v40, %v308_v39  ;;  %v321_v47 = vpack.c.bf16 %v312_v42, %v309_v41  ;;  %v315_v51 = vld [vmem:[%s1016_s8 + $0x40] sm:$0xff]  ;;  %v318_v52 = vld [vmem:[%s1016_s8 + $0x58] sm:$0xff]  ;;  %v323_v53 = vpack.c.bf16 %v317_v50, %v314_v49 }
  0x3c   : > { %v322_v48 = vpack.c.bf16 %v316_v44, %v313_v43  ;;  %v324_v54 = vpack.c.bf16 %v318_v52, %v315_v51  ;;  %v303_v58 = vld [vmem:[#allocation2 + $0x10] sm:$0xff]  ;;  %v304_v1 = vld [vmem:[#allocation2] sm:$0xff]  ;;  %v305_v8 = vld [vmem:[#allocation2 + $0x18] sm:$0xff] }
  0x3d   : > { %520 = vmatpush.bf16.msra.mxu0 %v831_v22  ;;  %854 = vmatpush.bf16.msra.mxu3 %v831_v22  ;;  %v306_v15 = vld [vmem:[#allocation2 + $0x8] sm:$0xff] }
  0x3e   : > { %539 = vmatpush.bf16.msra.mxu1 %v839_v23 }
  0x3f   : > { %558 = vmatpush.bf16.msra.mxu2 %v847_v24 }
  0x41   : > { %521 = vmatpush.bf16.msra.mxu0 %v830_v25  ;;  %855 = vmatpush.bf16.msra.mxu3 %v830_v25 }
  0x42   : > { %540 = vmatpush.bf16.msra.mxu1 %v838_v26 }
  0x43   : > { %559 = vmatpush.bf16.msra.mxu2 %v846_v27 }
  0x45   : > { %522 = vmatpush.bf16.msra.mxu0 %v829_v28  ;;  %856 = vmatpush.bf16.msra.mxu3 %v829_v28 }
  0x46   : > { %541 = vmatpush.bf16.msra.mxu1 %v837_v29 }
  0x47   : > { %560 = vmatpush.bf16.msra.mxu2 %v845_v30 }
  0x49   : > { %523 = vmatpush.bf16.msra.mxu0 %v828_v31  ;;  %857 = vmatpush.bf16.msra.mxu3 %v828_v31 }
  0x4a   : > { %542 = vmatpush.bf16.msra.mxu1 %v836_v32 }
  0x4b   : > { %561 = vmatpush.bf16.msra.mxu2 %v844_v33 }
  0x4d   : > { %524 = vmatpush.bf16.msra.mxu0 %v827_v34  ;;  %858 = vmatpush.bf16.msra.mxu3 %v827_v34 }
  0x4e   : > { %543 = vmatpush.bf16.msra.mxu1 %v835_v35 }
  0x4f   : > { %562 = vmatpush.bf16.msra.mxu2 %v843_v36 }
  0x50   : > { %525 = vmatmul.bf16.vlgmr.msra.gmra.mxu0 %v319_v45  ;;  %530 = vmatmul.bf16.vlgmr.msra.gmra.mxu3 %v322_v48 }
  0x51   : > { %544 = vmatmul.bf16.vlgmr.msra.gmra.mxu1 %v320_v46 }
  0x52   : > { %563 = vmatmul.bf16.vlgmr.msra.gmra.mxu2 %v321_v47 }
  0x61   : > { %549 = vmatmul.bf16.gmra.mxu1 %v323_v53 }
  0x62   : > { %568 = vmatmul.bf16.gmra.mxu2 %v324_v54 }
  0xcd   : > { %v526_v56 = vpop.f32.mrf.mxu0 }
  0xce   : > { %v545_v55 = vpop.f32.mrf.mxu1 }
  0xcf   : > { %v546_v57 = vadd.f32 %v545_v55, %v526_v56 }
  0xd3   : > { %v531_v6 = vpop.f32.mrf.mxu3 }
  0xd5   : > { %v564_v59 = vpop.f32.mrf.mxu2  ;;  %v528_v63 = vpop.f32.mrf.mxu0 }
  0xd6   : > { %v565_v60 = vadd.f32 %v564_v59, %v546_v57  ;;  %v547_v61 = vpop.f32.mrf.mxu1 }
  0xd7   : > { %v548_v0 = vadd.f32 %v547_v61, %v528_v63 }
  0xd8   : > { %v574_v62 = vadd.f32 %v565_v60, %v303_v58 }
  0xda   : > { %578 = vst [vmem:[#allocation2 + $0x10] sm:$0xff] %v574_v62 }
  0xdb   : > { %v533_v13 = vpop.f32.mrf.mxu3 }
  0xdd   : > { %v566_v2 = vpop.f32.mrf.mxu2 }
  0xde   : > { %v567_v3 = vadd.f32 %v566_v2, %v548_v0  ;;  %v550_v4 = vpop.f32.mrf.mxu1 }
  0xdf   : > { %v551_v7 = vadd.f32 %v550_v4, %v531_v6 }
  0xe0   : > { %v575_v5 = vadd.f32 %v567_v3, %v304_v1 }
  0xe2   : > { %579 = vst [vmem:[#allocation2] sm:$0xff] %v575_v5 }
  0xe5   : > { %v569_v9 = vpop.f32.mrf.mxu2 }
  0xe6   : > { %v570_v10 = vadd.f32 %v569_v9, %v551_v7  ;;  %v552_v12 = vpop.f32.mrf.mxu1 }
  0xe7   : > { %v553_v14 = vadd.f32 %v552_v12, %v533_v13 }
  0xe8   : > { %v576_v11 = vadd.f32 %v570_v10, %v305_v8 }
  0xea   : > { %580 = vst [vmem:[#allocation2 + $0x18] sm:$0xff] %v576_v11 }
  0xed   : > { %v571_v16 = vpop.f32.mrf.mxu2 }
  0xee   : > { %v572_v17 = vadd.f32 %v571_v16, %v553_v14  ;;  %585 = sbr.rel (%p821_p11) target bundleno = 255 (0xff), region = 63 }
  0xf0   : > { %v577_v18 = vadd.f32 %v572_v17, %v306_v15 }
  0xf2   : > { %581 = vst [vmem:[#allocation2 + $0x8] sm:$0xff] %v577_v18 }
  0xf3   : > { %v586_v19 = vld [vmem:[#allocation2 + $0x10] sm:$0xff]  ;;  %v902_v20 = vld [vmem:[%s1088_s2] ss:$0 sm:$0xff]  ;;  %v588_v22 = vld [vmem:[#allocation2 + $0x18] sm:$0xff] }
  0xf4   : > { %v587_v21 = vld [vmem:[#allocation2] sm:$0xff]  ;;  %v594_v24 = vadd.f32 %v902_v20, %v586_v19  ;;  %v596_v26 = vadd.f32 %v902_v20, %v588_v22 }
  0xf5   : > { %v595_v25 = vadd.f32 %v902_v20, %v587_v21 }
  0xf6   : > { %v598_v28 = vmax.f32 %v594_v24, 0.0  ;;  %v600_v30 = vmax.f32 %v596_v26, 0.0 }
  0xf7   : > { %v599_v29 = vmax.f32 %v595_v25, 0.0 }
  0xf8   : > { %602 = vst [vmem:[%s1089_s3] sm:$0xff] %v598_v28 }
  0xf9   : > { %v589_v23 = vld [vmem:[#allocation2 + $0x8] sm:$0xff]  ;;  %603 = vst [vmem:[%s1089_s3 + $0x8] sm:$0xff] %v599_v29 }
  0xfa   : > { %v597_v27 = vadd.f32 %v902_v20, %v589_v23  ;;  %604 = vst [vmem:[%s1089_s3 + $0x10] sm:$0xff] %v600_v30 }
  0xfc   : > { %v601_v31 = vmax.f32 %v597_v27, 0.0 }
  0xfe   : > { %605 = vst [vmem:[%s1089_s3 + $0x18] sm:$0xff] %v601_v31 }
  0xff PF: > { %s13_s16 = sadd.s32 1, %s941_s16   ;;  %s1090_s12 = smov %s929_s13 }
 0x100   : > { %p10_p12 = scmp.ge.s32.totalorder %s13_s16, 5   ;;  %s1091_s13 = smov %s999_s20 }
 0x101   : > { %s1092_s14 = smov %s937_s15  ;;  %s1093_s15 = smov %s1095_s17 }
 0x102   :  { %12 = sbr.rel (!%p10_p12) target bundleno = 3 (0x3), region = 104 }

// kernel: fuse_backbone_forward.20
= control target key start
LH: loop header
LB: loop body
LE: loop exit
PB: predicated region body
PF: predicated region fallthrough
CT: control target
= control target key end

     0   :  { %s960_s12 = smov 0   ;;  %s962_s13 = smov 0   ;;  %s1082_s0 = inlined_call_operand.vmem [shape: f32[32,768], index: 0, kind: input, shape index: {}]   ;;  %s1083_s1 = inlined_call_operand.vmem [shape: bf16[768,128], index: 1, kind: input, shape index: {}]   ;;  %s1084_s2 = inlined_call_operand.vmem [shape: f32[1,128], index: 2, kind: input, shape index: {}]   ;;  %s1085_s3 = inlined_call_operand.vmem [shape: f32[32,128], index: 3, kind: output, shape index: {}]  }
   0x1   :  { %s964_s14 = smov 0   ;;  %s966_s15 = smov 0  }
   0x2   :  { %s968_s16 = smov 0  }
   0x3 LB: > { %s25_s17 = sadd.s32 1, %s933_s15  ;;  %p48_p1 = scmp.ne.s32.totalorder %s925_s13, %s921_s12  ;;  %s937_s16 = sphi %s968_s16, %s13_s16   ;;  %s933_s15 = sphi %s966_s15, %s1089_s15   ;;  %s929_s14 = sphi %s964_s14, %s1088_s14   ;;  %s925_s13 = sphi %s962_s13, %s1087_s13   ;;  %s921_s12 = sphi %s960_s12, %s1086_s12  }
   0x4   : > { %p26_p0 = scmp.ge.s32.totalorder %s25_s17, 2  ;;  %p49_p2 = scmp.eq.s32.totalorder %s937_s16, 0 }
   0x5   : > { %s41_s19 = sadd.s32 1, %s925_s13  ;;  %p716_p5 = scmp.ge.s32.totalorder %s937_s16, 2 }
   0x6   : > { %s1091_s17 = smov (%p26_p0, %s25_s17), 0  ;;  %p50_p3 = por %p49_p2, %p48_p1 }
   0x7   : > { %s37_s18 = ssub.s32 %s933_s15, %s1091_s17  ;;  %162 = sbr.rel (%p716_p5) target bundleno = 29 (0x1d), region = 20 }
   0x8   : > { %p39_p4 = scmp.eq.s32.totalorder %s37_s18, 0 }
   0xa   : > { %s995_s20 = scalar_select %p39_p4, %s925_s13, %s41_s19  }
   0xc   : > { %165 = sbr.rel (!%p50_p3) target bundleno = 29 (0x1d), region = 24  ;;  %s167_s21 = sand.u32 (%p50_p3), 1, %s925_s13  }
   0xd   : > { %s822_s22 = smul.u32 (%p50_p3), 24, %s933_s15 }
   0xe   : > { %s855_s23 = smul.u32 (%p50_p3), 96, %s167_s21 }
   0xf   : > { %s175_s26 = scalar_lea.vmem (%p50_p3), %s1082_s0, %s822_s22 }
  0x10   : > { %v188_v0 = vld [vmem:[%s175_s26] sm:$0xff] (%p50_p3)  ;;  %v190_v1 = vld [vmem:[%s175_s26 + $0x8] sm:$0xff] (%p50_p3)  ;;  %v192_v2 = vld [vmem:[%s175_s26 + $0x10] sm:$0xff] (%p50_p3)  ;;  %s169_s27 = scalar_lea.vmem (%p50_p3), [#allocation3], %s855_s23 }
  0x11   : > { %189 = vst [vmem:[%s169_s27] sm:$0xff] %v188_v0  ;;  %v194_v3 = vld [vmem:[%s175_s26 + $0x30] sm:$0xff]  ;;  %v196_v4 = vld [vmem:[%s175_s26 + $0x38] sm:$0xff]  ;;  %v198_v5 = vld [vmem:[%s175_s26 + $0x40] sm:$0xff] }
  0x12   : > { %191 = vst [vmem:[%s169_s27 + $0x8] sm:$0xff] %v190_v1  ;;  %v200_v6 = vld [vmem:[%s175_s26 + $0x60] sm:$0xff]  ;;  %v202_v7 = vld [vmem:[%s175_s26 + $0x68] sm:$0xff]  ;;  %v204_v8 = vld [vmem:[%s175_s26 + $0x70] sm:$0xff] }
  0x13   : > { %193 = vst [vmem:[%s169_s27 + $0x10] sm:$0xff] %v192_v2  ;;  %v206_v9 = vld [vmem:[%s175_s26 + $0x90] sm:$0xff]  ;;  %v208_v10 = vld [vmem:[%s175_s26 + $0x98] sm:$0xff]  ;;  %v210_v11 = vld [vmem:[%s175_s26 + $0xa0] sm:$0xff] }
  0x14   : > { %195 = vst [vmem:[%s169_s27 + $0x18] sm:$0xff] %v194_v3 }
  0x15   : > { %197 = vst [vmem:[%s169_s27 + $0x20] sm:$0xff] %v196_v4 }
  0x16   : > { %199 = vst [vmem:[%s169_s27 + $0x28] sm:$0xff] %v198_v5 }
  0x17   : > { %201 = vst [vmem:[%s169_s27 + $0x30] sm:$0xff] %v200_v6 }
  0x18   : > { %203 = vst [vmem:[%s169_s27 + $0x38] sm:$0xff] %v202_v7 }
  0x19   : > { %205 = vst [vmem:[%s169_s27 + $0x40] sm:$0xff] %v204_v8 }
  0x1a   : > { %207 = vst [vmem:[%s169_s27 + $0x48] sm:$0xff] %v206_v9 }
  0x1b   : > { %209 = vst [vmem:[%s169_s27 + $0x50] sm:$0xff] %v208_v10 }
  0x1c   : > { %211 = vst [vmem:[%s169_s27 + $0x58] sm:$0xff] %v210_v11 }
  0x1d PF: > { %p718_p6 = scmp.ge.s32.totalorder %s937_s16, 1  ;;  %p228_p7 = scmp.lt.s32.totalorder %s937_s16, 3 }
  0x1f   : > { %p229_p8 = pnand %p718_p6, %p228_p7 }
  0x20   : > { %s235_s28 = sand.u32 (!%p229_p8), 1, %s921_s12   ;;  %s274_s29 = smul.u32 (!%p229_p8), 48, %s929_s14 }
  0x21   : > { %232 = sbr.rel (%p229_p8) target bundleno = 253 (0xfd), region = 51  ;;  %p720_p10 = scmp.ne.s32.totalorder (!%p229_p8), %s929_s14, 0 }
  0x22   : > { %s856_s30 = smul.u32 (!%p229_p8), 96, %s235_s28  ;;  %p275_p9 = scmp.lt.s32.totalorder (!%p229_p8), %s274_s29, 95 }
  0x24   : > { %s1012_s8 = scalar_lea.vmem (!%p229_p8), [#allocation3], %s856_s30 }
  0x26   : > { %s1093_s29 = smov (!%p275_p9, %s274_s29), 95  ;;  %298 = sbr.rel (%p720_p10) target bundleno = 48 (0x30), region = 59 }
  0x27   : > { %s719_s4 = sshll.u32 %s1093_s29, 2 }
  0x28   : > { %s1010_s7 = scalar_lea.vmem %s1083_s1, %s719_s4 }
  0x2b   : > { %v939_v12 = vmov 0.0  }
  0x2c   : > { %299 = vst [vmem:[#allocation2 + $0x10] sm:$0xff] %v939_v12 }
  0x2d   : > { %300 = vst [vmem:[#allocation2] sm:$0xff] %v939_v12 }
  0x2e   : > { %301 = vst [vmem:[#allocation2 + $0x18] sm:$0xff] %v939_v12 }
  0x2f   : > { %302 = vst [vmem:[#allocation2 + $0x8] sm:$0xff] %v939_v12 }
  0x30 PF: > { %v830_v13 = vld [vmem:[%s1010_s7 + $0x38] sm:$0xff]  ;;  %v829_v16 = vld [vmem:[%s1010_s7 + $0x30] sm:$0xff]  ;;  %v828_v19 = vld [vmem:[%s1010_s7 + $0x28] sm:$0xff]  ;;  %p817_p11 = scmp.ne.s32.totalorder %s929_s14, 1 }
  0x31   : > { %v838_v14 = vld [vmem:[%s1010_s7 + $0x78] sm:$0xff]  ;;  %517 = vmatpush.bf16.msra.mxu0 %v830_v13  ;;  %v837_v17 = vld [vmem:[%s1010_s7 + $0x70] sm:$0xff]  ;;  %847 = vmatpush.bf16.msra.mxu3 %v830_v13  ;;  %v836_v20 = vld [vmem:[%s1010_s7 + $0x68] sm:$0xff] }
  0x32   : > { %v846_v15 = vld [vmem:[%s1010_s7 + $0xb8] sm:$0xff]  ;;  %536 = vmatpush.bf16.msra.mxu1 %v838_v14  ;;  %v845_v18 = vld [vmem:[%s1010_s7 + $0xb0] sm:$0xff]  ;;  %v844_v21 = vld [vmem:[%s1010_s7 + $0xa8] sm:$0xff] }
  0x33   : > { %555 = vmatpush.bf16.msra.mxu2 %v846_v15  ;;  %v827_v22 = vld [vmem:[%s1010_s7 + $0x20] sm:$0xff]  ;;  %v826_v25 = vld [vmem:[%s1010_s7 + $0x18] sm:$0xff]  ;;  %v825_v28 = vld [vmem:[%s1010_s7 + $0x10] sm:$0xff] }
  0x34   : > { %v835_v23 = vld [vmem:[%s1010_s7 + $0x60] sm:$0xff]  ;;  %v834_v26 = vld [vmem:[%s1010_s7 + $0x58] sm:$0xff]  ;;  %v833_v29 = vld [vmem:[%s1010_s7 + $0x50] sm:$0xff] }
  0x35   : > { %518 = vmatpush.bf16.msra.mxu0 %v829_v16  ;;  %848 = vmatpush.bf16.msra.mxu3 %v829_v16  ;;  %v843_v24 = vld [vmem:[%s1010_s7 + $0xa0] sm:$0xff]  ;;  %v842_v27 = vld [vmem:[%s1010_s7 + $0x98] sm:$0xff]  ;;  %v841_v30 = vld [vmem:[%s1010_s7 + $0x90] sm:$0xff] }
  0x36   : > { %537 = vmatpush.bf16.msra.mxu1 %v837_v17  ;;  %v824_v31 = vld [vmem:[%s1010_s7 + $0x8] sm:$0xff]  ;;  %v823_v34 = vld [vmem:[%s1010_s7] sm:$0xff]  ;;  %v310_v38 = vld [vmem:[%s1012_s8 + $0x18] sm:$0xff] }
  0x37   : > { %556 = vmatpush.bf16.msra.mxu2 %v845_v18  ;;  %v832_v32 = vld [vmem:[%s1010_s7 + $0x48] sm:$0xff]  ;;  %v831_v35 = vld [vmem:[%s1010_s7 + $0x40] sm:$0xff]  ;;  %v309_v41 = vld [vmem:[%s1012_s8 + $0x10] sm:$0xff] }
  0x38   : > { %v840_v33 = vld [vmem:[%s1010_s7 + $0x88] sm:$0xff]  ;;  %v839_v36 = vld [vmem:[%s1010_s7 + $0x80] sm:$0xff]  ;;  %v313_v43 = vld [vmem:[%s1012_s8 + $0x30] sm:$0xff] }
  0x39   : > { %519 = vmatpush.bf16.msra.mxu0 %v828_v19  ;;  %849 = vmatpush.bf16.msra.mxu3 %v828_v19  ;;  %v307_v37 = vld [vmem:[%s1012_s8] sm:$0xff]  ;;  %v308_v39 = vld [vmem:[%s1012_s8 + $0x8] sm:$0xff]  ;;  %v314_v49 = vld [vmem:[%s1012_s8 + $0x38] sm:$0xff] }
  0x3a   : > { %538 = vmatpush.bf16.msra.mxu1 %v836_v20  ;;  %v311_v40 = vld [vmem:[%s1012_s8 + $0x20] sm:$0xff]  ;;  %v312_v42 = vld [vmem:[%s1012_s8 + $0x28] sm:$0xff]  ;;  %v319_v45 = vpack.c.bf16 %v310_v38, %v307_v37  ;;  %v317_v50 = vld [vmem:[%s1012_s8 + $0x50] sm:$0xff] }
  0x3b   : > { %557 = vmatpush.bf16.msra.mxu2 %v844_v21  ;;  %v316_v44 = vld [vmem:[%s1012_s8 + $0x48] sm:$0xff]  ;;  %v320_v46 = vpack.c.bf16 %v311_v40, %v308_v39  ;;  %v321_v47 = vpack.c.bf16 %v312_v42, %v309_v41  ;;  %v315_v51 = vld [vmem:[%s1012_s8 + $0x40] sm:$0xff]  ;;  %v318_v52 = vld [vmem:[%s1012_s8 + $0x58] sm:$0xff]  ;;  %v323_v53 = vpack.c.bf16 %v317_v50, %v314_v49 }
  0x3c   : > { %v322_v48 = vpack.c.bf16 %v316_v44, %v313_v43  ;;  %v324_v54 = vpack.c.bf16 %v318_v52, %v315_v51  ;;  %v303_v58 = vld [vmem:[#allocation2 + $0x10] sm:$0xff]  ;;  %v304_v1 = vld [vmem:[#allocation2] sm:$0xff]  ;;  %v305_v8 = vld [vmem:[#allocation2 + $0x18] sm:$0xff] }
  0x3d   : > { %520 = vmatpush.bf16.msra.mxu0 %v827_v22  ;;  %850 = vmatpush.bf16.msra.mxu3 %v827_v22  ;;  %v306_v15 = vld [vmem:[#allocation2 + $0x8] sm:$0xff] }
  0x3e   : > { %539 = vmatpush.bf16.msra.mxu1 %v835_v23 }
  0x3f   : > { %558 = vmatpush.bf16.msra.mxu2 %v843_v24 }
  0x41   : > { %521 = vmatpush.bf16.msra.mxu0 %v826_v25  ;;  %851 = vmatpush.bf16.msra.mxu3 %v826_v25 }
  0x42   : > { %540 = vmatpush.bf16.msra.mxu1 %v834_v26 }
  0x43   : > { %559 = vmatpush.bf16.msra.mxu2 %v842_v27 }
  0x45   : > { %522 = vmatpush.bf16.msra.mxu0 %v825_v28  ;;  %852 = vmatpush.bf16.msra.mxu3 %v825_v28 }
  0x46   : > { %541 = vmatpush.bf16.msra.mxu1 %v833_v29 }
  0x47   : > { %560 = vmatpush.bf16.msra.mxu2 %v841_v30 }
  0x49   : > { %523 = vmatpush.bf16.msra.mxu0 %v824_v31  ;;  %853 = vmatpush.bf16.msra.mxu3 %v824_v31 }
  0x4a   : > { %542 = vmatpush.bf16.msra.mxu1 %v832_v32 }
  0x4b   : > { %561 = vmatpush.bf16.msra.mxu2 %v840_v33 }
  0x4d   : > { %524 = vmatpush.bf16.msra.mxu0 %v823_v34  ;;  %854 = vmatpush.bf16.msra.mxu3 %v823_v34 }
  0x4e   : > { %543 = vmatpush.bf16.msra.mxu1 %v831_v35 }
  0x4f   : > { %562 = vmatpush.bf16.msra.mxu2 %v839_v36 }
  0x50   : > { %525 = vmatmul.bf16.vlgmr.msra.gmra.mxu0 %v319_v45  ;;  %530 = vmatmul.bf16.vlgmr.msra.gmra.mxu3 %v322_v48 }
  0x51   : > { %544 = vmatmul.bf16.vlgmr.msra.gmra.mxu1 %v320_v46 }
  0x52   : > { %563 = vmatmul.bf16.vlgmr.msra.gmra.mxu2 %v321_v47 }
  0x61   : > { %549 = vmatmul.bf16.gmra.mxu1 %v323_v53 }
  0x62   : > { %568 = vmatmul.bf16.gmra.mxu2 %v324_v54 }
  0xcd   : > { %v526_v56 = vpop.f32.mrf.mxu0 }
  0xce   : > { %v545_v55 = vpop.f32.mrf.mxu1 }
  0xcf   : > { %v546_v57 = vadd.f32 %v545_v55, %v526_v56 }
  0xd3   : > { %v531_v6 = vpop.f32.mrf.mxu3 }
  0xd5   : > { %v564_v59 = vpop.f32.mrf.mxu2  ;;  %v528_v63 = vpop.f32.mrf.mxu0 }
  0xd6   : > { %v565_v60 = vadd.f32 %v564_v59, %v546_v57  ;;  %v547_v61 = vpop.f32.mrf.mxu1 }
  0xd7   : > { %v548_v0 = vadd.f32 %v547_v61, %v528_v63 }
  0xd8   : > { %v574_v62 = vadd.f32 %v565_v60, %v303_v58 }
  0xda   : > { %578 = vst [vmem:[#allocation2 + $0x10] sm:$0xff] %v574_v62 }
  0xdb   : > { %v533_v13 = vpop.f32.mrf.mxu3 }
  0xdd   : > { %v566_v2 = vpop.f32.mrf.mxu2 }
  0xde   : > { %v567_v3 = vadd.f32 %v566_v2, %v548_v0  ;;  %v550_v4 = vpop.f32.mrf.mxu1 }
  0xdf   : > { %v551_v7 = vadd.f32 %v550_v4, %v531_v6 }
  0xe0   : > { %v575_v5 = vadd.f32 %v567_v3, %v304_v1 }
  0xe2   : > { %579 = vst [vmem:[#allocation2] sm:$0xff] %v575_v5 }
  0xe5   : > { %v569_v9 = vpop.f32.mrf.mxu2 }
  0xe6   : > { %v570_v10 = vadd.f32 %v569_v9, %v551_v7  ;;  %v552_v12 = vpop.f32.mrf.mxu1 }
  0xe7   : > { %v553_v14 = vadd.f32 %v552_v12, %v533_v13 }
  0xe8   : > { %v576_v11 = vadd.f32 %v570_v10, %v305_v8 }
  0xea   : > { %580 = vst [vmem:[#allocation2 + $0x18] sm:$0xff] %v576_v11 }
  0xed   : > { %v571_v16 = vpop.f32.mrf.mxu2 }
  0xee   : > { %v572_v17 = vadd.f32 %v571_v16, %v553_v14  ;;  %585 = sbr.rel (%p817_p11) target bundleno = 253 (0xfd), region = 63 }
  0xf0   : > { %v577_v18 = vadd.f32 %v572_v17, %v306_v15 }
  0xf2   : > { %581 = vst [vmem:[#allocation2 + $0x8] sm:$0xff] %v577_v18 }
  0xf3   : > { %v586_v19 = vld [vmem:[#allocation2 + $0x10] sm:$0xff]  ;;  %v898_v20 = vld [vmem:[%s1084_s2] ss:$0 sm:$0xff]  ;;  %v588_v22 = vld [vmem:[#allocation2 + $0x18] sm:$0xff] }
  0xf4   : > { %v587_v21 = vld [vmem:[#allocation2] sm:$0xff]  ;;  %v594_v24 = vadd.f32 %v898_v20, %v586_v19  ;;  %v596_v26 = vadd.f32 %v898_v20, %v588_v22 }
  0xf5   : > { %v595_v25 = vadd.f32 %v898_v20, %v587_v21 }
  0xf6   : > { %598 = vst [vmem:[%s1085_s3] sm:$0xff] %v594_v24 }
  0xf7   : > { %599 = vst [vmem:[%s1085_s3 + $0x8] sm:$0xff] %v595_v25 }
  0xf8   : > { %600 = vst [vmem:[%s1085_s3 + $0x10] sm:$0xff] %v596_v26 }
  0xf9   : > { %v589_v23 = vld [vmem:[#allocation2 + $0x8] sm:$0xff] }
  0xfa   : > { %v597_v27 = vadd.f32 %v898_v20, %v589_v23 }
  0xfc   : > { %601 = vst [vmem:[%s1085_s3 + $0x18] sm:$0xff] %v597_v27 }
  0xfd PF: > { %s13_s16 = sadd.s32 1, %s937_s16   ;;  %s1086_s12 = smov %s925_s13 }
  0xfe   : > { %p10_p12 = scmp.ge.s32.totalorder %s13_s16, 4   ;;  %s1087_s13 = smov %s995_s20 }
  0xff   : > { %s1088_s14 = smov %s933_s15  ;;  %s1089_s15 = smov %s1091_s17 }
 0x100   :  { %12 = sbr.rel (!%p10_p12) target bundleno = 3 (0x3), region = 104 }

// kernel: fuse_backbone_forward.21
= control target key start
LH: loop header
LB: loop body
LE: loop exit
PB: predicated region body
PF: predicated region fallthrough
CT: control target
= control target key end

     0   :  { %v142_v4 = vmov 128.0   ;;  %s203_s0 = inlined_call_operand.vmem [shape: f32[32,128], index: 0, kind: input, shape index: {}]   ;;  %s204_s1 = inlined_call_operand.vmem [shape: f32[1,128], index: 1, kind: input, shape index: {}]   ;;  %s205_s2 = inlined_call_operand.vmem [shape: f32[1,128], index: 2, kind: input, shape index: {}]   ;;  %s206_s3 = inlined_call_operand.vmem [shape: f32[32,128], index: 3, kind: output, shape index: {}]  }
   0x1   :  { %v16_v0 = vld [vmem:[%s203_s0 + $0x10] sm:$0xff]  ;;  %v14_v1 = vld [vmem:[%s203_s0] sm:$0xff]  ;;  %v17_v2 = vld [vmem:[%s203_s0 + $0x18] sm:$0xff]  ;;  %132 = vrcp.f32 %v142_v4 }
   0x2   :  { %22 = vadd.xlane.f32.xlu1 %v16_v0  ;;  %18 = vadd.xlane.f32.xlu0 %v14_v1  ;;  %v15_v3 = vld [vmem:[%s203_s0 + $0x8] sm:$0xff]  ;;  %v130_v53 = vld [vmem:[%s204_s1] ss:$0 sm:$0xff] }
   0x3   :  { %v131_v58 = vld [vmem:[%s205_s2] ss:$0 sm:$0xff] }
   0x7   :  { %v133_v5 = vpop.eup %132 }
   0x8   :  { %v27_v6 = vmul.f32 128.0, %v133_v5  ;;  %vm31_vm0 = vweird.f32 %v133_v5 }
   0xa   :  { %24 = vadd.xlane.f32.xlu1 %v17_v2  ;;  %20 = vadd.xlane.f32.xlu0 %v15_v3  ;;  %v28_v7 = vsub.f32 1.0, %v27_v6 }
   0xc   :  { %v29_v8 = vmul.f32 %v133_v5, %v28_v7 }
   0xe   :  { %v30_v9 = vadd.f32 %v133_v5, %v29_v8 }
  0x10   :  { %v32_v10 = vsel %vm31_vm0, %v133_v5, %v30_v9 }
  0x75   :  { %v23_v11 = vpop.xlane.xlu1 %22  ;;  %v19_v12 = vpop.xlane.xlu0 %18 }
  0x76   :  { %v35_v13 = vmul.f32 %v32_v10, %v23_v11  ;;  %v33_v14 = vmul.f32 %v32_v10, %v19_v12 }
  0x78   :  { %v39_v15 = vsub.f32 %v16_v0, %v35_v13  ;;  %v37_v16 = vsub.f32 %v14_v1, %v33_v14 }
  0x7a   :  { %v43_v17 = vmul.f32 %v39_v15, %v39_v15  ;;  %v41_v18 = vmul.f32 %v37_v16, %v37_v16 }
  0x7c   :  { %49 = vadd.xlane.f32.xlu0 %v43_v17  ;;  %45 = vadd.xlane.f32.xlu2 %v41_v18 }
  0x7d   :  { %v25_v19 = vpop.xlane.xlu1 %24  ;;  %v21_v20 = vpop.xlane.xlu0 %20 }
  0x7e   :  { %v36_v21 = vmul.f32 %v32_v10, %v25_v19  ;;  %v34_v22 = vmul.f32 %v32_v10, %v21_v20 }
  0x80   :  { %v175_v23 = vsub.f32 %v17_v2, %v36_v21  ;;  %v177_v24 = vsub.f32 %v15_v3, %v34_v22 }
  0x82   :  { %v44_v25 = vmul.f32 %v175_v23, %v175_v23  ;;  %v42_v26 = vmul.f32 %v177_v24, %v177_v24 }
  0x84   :  { %51 = vadd.xlane.f32.xlu1 %v44_v25  ;;  %47 = vadd.xlane.f32.xlu2 %v42_v26 }
  0xef   :  { %v46_v27 = vpop.xlane.xlu2 %45  ;;  %v50_v28 = vpop.xlane.xlu0 %49 }
  0xf0   :  { %v53_v29 = vmul.f32 %v46_v27, %v32_v10  ;;  %v55_v30 = vmul.f32 %v50_v28, %v32_v10 }
  0xf2   :  { %v57_v31 = vadd.f32 1e-06, %v53_v29  ;;  %v59_v32 = vadd.f32 1e-06, %v55_v30 }
  0xf4   :  { %134 = vrsqrt.f32 %v57_v31  ;;  %vm67_vm3 = vweird.f32 %v57_v31  ;;  %vm87_vm5 = vweird.f32 %v59_v32 }
  0xf5   :  { %136 = vrsqrt.f32 %v59_v32 }
  0xf7   :  { %v52_v33 = vpop.xlane.xlu1 %51  ;;  %v48_v34 = vpop.xlane.xlu2 %47 }
  0xf8   :  { %v56_v35 = vmul.f32 %v52_v33, %v32_v10  ;;  %v54_v36 = vmul.f32 %v48_v34, %v32_v10 }
  0xfa   :  { %v135_v37 = vpop.eup %134  ;;  %v60_v38 = vadd.f32 1e-06, %v56_v35  ;;  %v58_v39 = vadd.f32 1e-06, %v54_v36 }
  0xfb   :  { %v137_v40 = vpop.eup %136  ;;  %v62_v41 = vmul.f32 %v135_v37, %v57_v31  ;;  %vm68_vm1 = vweird.f32 %v135_v37 }
  0xfc   :  { %v82_v42 = vmul.f32 %v137_v40, %v59_v32  ;;  %138 = vrsqrt.f32 %v60_v38  ;;  %vm88_vm2 = vweird.f32 %v137_v40  ;;  %vm69_vm4 = vmor %vm67_vm3, %vm68_vm1  ;;  %vm97_vm9 = vweird.f32 %v60_v38 }
  0xfd   :  { %v63_v43 = vmul.f32 %v135_v37, %v62_v41  ;;  %140 = vrsqrt.f32 %v58_v39  ;;  %vm89_vm6 = vmor %vm87_vm5, %vm88_vm2  ;;  %vm77_vm11 = vweird.f32 %v58_v39 }
  0xfe   :  { %v83_v44 = vmul.f32 %v137_v40, %v82_v42 }
  0xff   :  { %v64_v45 = vmul.f32 0.5, %v63_v43 }
 0x100   :  { %v84_v46 = vmul.f32 0.5, %v83_v44 }
 0x101   :  { %v65_v47 = vsub.f32 1.5, %v64_v45 }
 0x102   :  { %v139_v48 = vpop.eup %138  ;;  %v85_v49 = vsub.f32 1.5, %v84_v46 }
 0x103   :  { %v141_v50 = vpop.eup %140  ;;  %v66_v51 = vmul.f32 %v135_v37, %v65_v47  ;;  %v92_v52 = vmul.f32 %v139_v48, %v60_v38  ;;  %vm98_vm7 = vweird.f32 %v139_v48 }
 0x104   :  { %v86_v54 = vmul.f32 %v137_v40, %v85_v49  ;;  %v72_v55 = vmul.f32 %v141_v50, %v58_v39  ;;  %vm78_vm8 = vweird.f32 %v141_v50  ;;  %vm99_vm10 = vmor %vm97_vm9, %vm98_vm7 }
 0x105   :  { %v70_v56 = vsel %vm69_vm4, %v135_v37, %v66_v51  ;;  %v93_v57 = vmul.f32 %v139_v48, %v92_v52  ;;  %vm79_vm12 = vmor %vm77_vm11, %vm78_vm8 }
 0x106   :  { %v101_v59 = vmul.f32 %v70_v56, %v37_v16  ;;  %v90_v60 = vsel %vm89_vm6, %v137_v40, %v86_v54  ;;  %v73_v61 = vmul.f32 %v141_v50, %v72_v55 }
 0x107   :  { %v103_v62 = vmul.f32 %v90_v60, %v39_v15  ;;  %v94_v63 = vmul.f32 0.5, %v93_v57 }
 0x108   :  { %v109_v0 = vmul.f32 %v130_v53, %v101_v59  ;;  %v74_v1 = vmul.f32 0.5, %v73_v61 }
 0x109   :  { %v111_v2 = vmul.f32 %v130_v53, %v103_v62  ;;  %v95_v3 = vsub.f32 1.5, %v94_v63 }
 0x10a   :  { %v117_v4 = vadd.f32 %v131_v58, %v109_v0  ;;  %v75_v5 = vsub.f32 1.5, %v74_v1 }
 0x10b   :  { %v119_v6 = vadd.f32 %v131_v58, %v111_v2  ;;  %v96_v7 = vmul.f32 %v139_v48, %v95_v3 }
 0x10c   :  { %121 = vst [vmem:[%s206_s3] sm:$0xff] %v117_v4  ;;  %v76_v8 = vmul.f32 %v141_v50, %v75_v5 }
 0x10d   :  { %123 = vst [vmem:[%s206_s3 + $0x10] sm:$0xff] %v119_v6  ;;  %v100_v9 = vsel %vm99_vm10, %v139_v48, %v96_v7 }
 0x10e   :  { %v104_v10 = vmul.f32 %v100_v9, %v175_v23  ;;  %v80_v11 = vsel %vm79_vm12, %v141_v50, %v76_v8 }
 0x10f   :  { %v102_v12 = vmul.f32 %v80_v11, %v177_v24 }
 0x110   :  { %v112_v13 = vmul.f32 %v130_v53, %v104_v10 }
 0x111   :  { %v110_v14 = vmul.f32 %v130_v53, %v102_v12 }
 0x112   :  { %v120_v15 = vadd.f32 %v131_v58, %v112_v13 }
 0x113   :  { %v118_v16 = vadd.f32 %v131_v58, %v110_v14 }
 0x114   :  { %124 = vst [vmem:[%s206_s3 + $0x18] sm:$0xff] %v120_v15 }
 0x115   :  { %122 = vst [vmem:[%s206_s3 + $0x8] sm:$0xff] %v118_v16 }

// kernel: fuse_backbone_forward.22
= control target key start
LH: loop header
LB: loop body
LE: loop exit
PB: predicated region body
PF: predicated region fallthrough
CT: control target
= control target key end

     0   :  { %s790_s12 = smov 0   ;;  %s792_s13 = smov 0   ;;  %s909_s0 = inlined_call_operand.vmem [shape: f32[32,128], index: 0, kind: input, shape index: {}]   ;;  %s910_s1 = inlined_call_operand.vmem [shape: bf16[128,384], index: 1, kind: input, shape index: {}]   ;;  %s911_s2 = inlined_call_operand.vmem [shape: f32[1,384], index: 2, kind: input, shape index: {}]   ;;  %s912_s3 = inlined_call_operand.vmem [shape: f32[32,384], index: 3, kind: output, shape index: {}]  }
   0x1   :  { %s794_s14 = smov 0   ;;  %s796_s15 = smov 0  }
   0x2   :  { %s798_s16 = smov 0  }
   0x3 LB: > { %s28_s17 = sadd.s32 1, %s764_s15  ;;  %s627_s18 = sadd.s32 4294967295, %s768_s16   ;;  %s768_s16 = sphi %s798_s16, %s13_s16   ;;  %s764_s15 = sphi %s796_s15, %s917_s15   ;;  %s760_s14 = sphi %s794_s14, %s916_s14   ;;  %s756_s13 = sphi %s792_s13, %s915_s13   ;;  %s752_s12 = sphi %s790_s12, %s914_s12  }
   0x4   : > { %p30_p0 = scmp.ge.s32.totalorder %s28_s17, 3  ;;  %p76_p1 = scmp.ne.s32.totalorder %s756_s13, %s752_s12 }
   0x5   : > { %p77_p2 = scmp.eq.s32.totalorder %s768_s16, 0  ;;  %p134_p4 = scmp.eq.s32.totalorder %s627_s18, 2 }
   0x6   : > { %s919_s17 = smov (%p30_p0, %s28_s17), 0  ;;  %s69_s20 = sadd.s32 1, %s756_s13 }
   0x7   : > { %p78_p3 = por %p77_p2, %p76_p1  ;;  %s65_s19 = ssub.s32 %s764_s15, %s919_s17 }
   0x8   : > { %p67_p5 = scmp.eq.s32.totalorder %s65_s19, 0  ;;  %p825_p6 = por %p134_p4, %p76_p1 }
   0x9   : > { %p631_p7 = scmp.ge.s32.totalorder %s768_s16, 3 }
   0xa   : > { %s830_s22 = scalar_select %p67_p5, %s756_s13, %s69_s20  }
   0xb   : > { %168 = sbr.rel (%p631_p7) target bundleno = 36 (0x24), region = 20 }
  0x10   : > { %171 = sbr.rel (!%p78_p3) target bundleno = 36 (0x24), region = 24  ;;  %s173_s23 = sand.u32 (%p78_p3), 1, %s756_s13  }
  0x11   : > { %s633_s24 = sshll.u32 (%p78_p3), %s764_s15, 2  ;;  %s632_s25 = sshll.u32 (%p78_p3), %s173_s23, 6 }
  0x12   : > { %s838_s28 = scalar_lea.vmem (%p78_p3), %s910_s1, %s633_s24  ;;  %s175_s29 = scalar_lea.vmem (%p78_p3), [#allocation3], %s632_s25 }
  0x13   : > { %v197_v0 = vld [vmem:[%s838_s28] sm:$0xf] (%p78_p3)  ;;  %v199_v1 = vld [vmem:[%s838_s28 + $0xc] sm:$0xf] (%p78_p3)  ;;  %v201_v2 = vld [vmem:[%s838_s28 + $0x18] sm:$0xf] (%p78_p3) }
  0x14   : > { %198 = vst [vmem:[%s175_s29] sm:$0xf] (%p78_p3), %v197_v0  ;;  %v203_v3 = vld [vmem:[%s838_s28 + $0x24] sm:$0xf] (%p78_p3)  ;;  %v205_v4 = vld [vmem:[%s838_s28 + $0x30] sm:$0xf] (%p78_p3) }
  0x15   : > { %200 = vst [vmem:[%s175_s29 + $0x4] sm:$0xf] %v199_v1  ;;  %v207_v5 = vld [vmem:[%s838_s28 + $0x3c] sm:$0xf]  ;;  %v209_v6 = vld [vmem:[%s838_s28 + $0x48] sm:$0xf] }
  0x16   : > { %202 = vst [vmem:[%s175_s29 + $0x8] sm:$0xf] %v201_v2  ;;  %v211_v7 = vld [vmem:[%s838_s28 + $0x54] sm:$0xf]  ;;  %v213_v8 = vld [vmem:[%s838_s28 + $0x60] sm:$0xf] }
  0x17   : > { %204 = vst [vmem:[%s175_s29 + $0xc] sm:$0xf] %v203_v3  ;;  %v215_v9 = vld [vmem:[%s838_s28 + $0x6c] sm:$0xf]  ;;  %v217_v10 = vld [vmem:[%s838_s28 + $0x78] sm:$0xf] }
  0x18   : > { %206 = vst [vmem:[%s175_s29 + $0x10] sm:$0xf] %v205_v4  ;;  %v219_v11 = vld [vmem:[%s838_s28 + $0x84] sm:$0xf]  ;;  %v221_v12 = vld [vmem:[%s838_s28 + $0x90] sm:$0xf] }
  0x19   : > { %208 = vst [vmem:[%s175_s29 + $0x14] sm:$0xf] %v207_v5  ;;  %v223_v13 = vld [vmem:[%s838_s28 + $0x9c] sm:$0xf]  ;;  %v225_v14 = vld [vmem:[%s838_s28 + $0xa8] sm:$0xf] }
  0x1a   : > { %210 = vst [vmem:[%s175_s29 + $0x18] sm:$0xf] %v209_v6  ;;  %v227_v15 = vld [vmem:[%s838_s28 + $0xb4] sm:$0xf] }
  0x1b   : > { %212 = vst [vmem:[%s175_s29 + $0x1c] sm:$0xf] %v211_v7 }
  0x1c   : > { %214 = vst [vmem:[%s175_s29 + $0x20] sm:$0xf] %v213_v8 }
  0x1d   : > { %216 = vst [vmem:[%s175_s29 + $0x24] sm:$0xf] %v215_v9 }
  0x1e   : > { %218 = vst [vmem:[%s175_s29 + $0x28] sm:$0xf] %v217_v10 }
  0x1f   : > { %220 = vst [vmem:[%s175_s29 + $0x2c] sm:$0xf] %v219_v11 }
  0x20   : > { %222 = vst [vmem:[%s175_s29 + $0x30] sm:$0xf] %v221_v12 }
  0x21   : > { %224 = vst [vmem:[%s175_s29 + $0x34] sm:$0xf] %v223_v13 }
  0x22   : > { %226 = vst [vmem:[%s175_s29 + $0x38] sm:$0xf] %v225_v14 }
  0x23   : > { %228 = vst [vmem:[%s175_s29 + $0x3c] sm:$0xf] %v227_v15 }
  0x24 PF: > { %p634_p8 = scmp.ge.s32.totalorder %s768_s16, 1  ;;  %p289_p9 = scmp.lt.s32.totalorder %s768_s16, 4 }
  0x26   : > { %p290_p10 = pnand %p634_p8, %p289_p9 }
  0x27   : > { %s296_s30 = sand.u32 (!%p290_p10), 1, %s752_s12   ;;  %p339_p11 = scmp.lt.s32.totalorder (!%p290_p10), %s760_s14, 2 }
  0x28   : > { %293 = sbr.rel (%p290_p10) target bundleno = 223 (0xdf), region = 69  ;;  %s635_s4 = sshll.u32 (!%p290_p10), %s296_s30, 6 }
  0x29   : > { %s298_s5 = scalar_lea.vmem (!%p290_p10), [#allocation3], %s635_s4  ;;  %s636_s26 = sshll.u32 (!%p290_p10), %s296_s30, 5 }
  0x2a   : > { %s328_s29 = scalar_lea.vmem (!%p290_p10), [#allocation4], %s636_s26 }
  0x2d   : > { %v680_v16 = vld [vmem:[%s298_s5 + $0x38] sm:$0xff]  ;;  %s863_s6 = scalar_select %p339_p11, %s760_s14, 2  ;;  %v679_v17 = vld [vmem:[%s298_s5 + $0x30] sm:$0xff]  ;;  %v678_v18 = vld [vmem:[%s298_s5 + $0x28] sm:$0xff] }
  0x2e   : > { %425 = vmatpush.bf16.msra.mxu0 %v680_v16  ;;  %681 = vmatpush.bf16.msra.mxu1 %v680_v16  ;;  %v677_v19 = vld [vmem:[%s298_s5 + $0x20] sm:$0xff]  ;;  %v676_v20 = vld [vmem:[%s298_s5 + $0x18] sm:$0xff]  ;;  %v675_v21 = vld [vmem:[%s298_s5 + $0x10] sm:$0xff]  ;;  %s670_s12 = sshll.u32 (%p825_p6), %s760_s14, 3 }
  0x2f   : > { %s341_s9 = scalar_lea.vmem %s911_s2, %s863_s6  ;;  %v674_v22 = vld [vmem:[%s298_s5 + $0x8] sm:$0xff]  ;;  %v355_v23 = vld [vmem:[%s909_s0] sm:$0xff]  ;;  %v357_v26 = vld [vmem:[%s909_s0 + $0x10] sm:$0xff] }
  0x30   : > { %v356_v24 = vld [vmem:[%s909_s0 + $0x8] sm:$0xff]  ;;  %v673_v25 = vld [vmem:[%s298_s5] sm:$0xff]  ;;  %v358_v27 = vld [vmem:[%s909_s0 + $0x18] sm:$0xff]  ;;  %s482_s5 = scalar_lea.vmem (%p825_p6), %s912_s3, %s670_s12 }
  0x31   : > { %v359_v28 = vpack.c.bf16 %v356_v24, %v355_v23  ;;  %v360_v29 = vpack.c.bf16 %v358_v27, %v357_v26  ;;  %v729_v30 = vld [vmem:[%s341_s9] ss:$0 sm:$0xff] }
  0x32   : > { %426 = vmatpush.bf16.msra.mxu0 %v679_v17  ;;  %682 = vmatpush.bf16.msra.mxu1 %v679_v17 }
  0x36   : > { %427 = vmatpush.bf16.msra.mxu0 %v678_v18  ;;  %683 = vmatpush.bf16.msra.mxu1 %v678_v18 }
  0x3a   : > { %428 = vmatpush.bf16.msra.mxu0 %v677_v19  ;;  %684 = vmatpush.bf16.msra.mxu1 %v677_v19 }
  0x3e   : > { %429 = vmatpush.bf16.msra.mxu0 %v676_v20  ;;  %685 = vmatpush.bf16.msra.mxu1 %v676_v20 }
  0x42   : > { %430 = vmatpush.bf16.msra.mxu0 %v675_v21  ;;  %686 = vmatpush.bf16.msra.mxu1 %v675_v21 }
  0x46   : > { %431 = vmatpush.bf16.msra.mxu0 %v674_v22  ;;  %687 = vmatpush.bf16.msra.mxu1 %v674_v22 }
  0x4a   : > { %432 = vmatpush.bf16.msra.mxu0 %v673_v25  ;;  %688 = vmatpush.bf16.msra.mxu1 %v673_v25 }
  0x4d   : > { %433 = vmatmul.bf16.vlgmr.msra.gmra.mxu0 %v359_v28  ;;  %438 = vmatmul.bf16.vlgmr.msra.gmra.mxu1 %v360_v29 }
  0xca   : > { %v434_v31 = vpop.f32.mrf.mxu0  ;;  %v439_v32 = vpop.f32.mrf.mxu1 }
  0xcb   : > { %v463_v33 = vadd.f32 %v729_v30, %v434_v31  ;;  %v465_v34 = vadd.f32 %v729_v30, %v439_v32 }
  0xcd   : > { %467 = vst [vmem:[%s328_s29] sm:$0xff] %v463_v33 }
  0xce   : > { %469 = vst [vmem:[%s328_s29 + $0x10] sm:$0xff] %v465_v34 }
  0xd2   : > { %v436_v35 = vpop.f32.mrf.mxu0  ;;  %v441_v36 = vpop.f32.mrf.mxu1  ;;  %477 = sbr.rel (!%p825_p6) target bundleno = 223 (0xdf), region = 85 }
  0xd3   : > { %v464_v37 = vadd.f32 %v729_v30, %v436_v35  ;;  %v466_v38 = vadd.f32 %v729_v30, %v441_v36 }
  0xd4   : > { %v517_v39 = vld [vmem:[%s328_s29] sm:$0xff] (%p825_p6) }
  0xd5   : > { %468 = vst [vmem:[%s328_s29 + $0x8] sm:$0xff] %v464_v37  ;;  %v521_v41 = vld [vmem:[%s328_s29 + $0x10] sm:$0xff] (%p825_p6) }
  0xd6   : > { %470 = vst [vmem:[%s328_s29 + $0x18] sm:$0xff] %v466_v38 }
  0xd7   : > { %518 = vst [vmem:[%s482_s5] sm:$0xff] %v517_v39 }
  0xd8   : > { %522 = vst [vmem:[%s482_s5 + $0x30] sm:$0xff] %v521_v41 }
  0xdc   : > { %v519_v40 = vld [vmem:[%s328_s29 + $0x8] sm:$0xff] }
  0xdd   : > { %v523_v42 = vld [vmem:[%s328_s29 + $0x18] sm:$0xff]  ;;  %520 = vst [vmem:[%s482_s5 + $0x18] sm:$0xff] %v519_v40 }
  0xde   : > { %524 = vst [vmem:[%s482_s5 + $0x48] sm:$0xff] %v523_v42 }
  0xdf PF: > { %s13_s16 = sadd.s32 1, %s768_s16   ;;  %s914_s12 = smov %s756_s13 }
  0xe0   : > { %p10_p12 = scmp.ge.s32.totalorder %s13_s16, 5   ;;  %s915_s13 = smov %s830_s22 }
  0xe1   : > { %s916_s14 = smov %s764_s15  ;;  %s917_s15 = smov %s919_s17 }
  0xe2   :  { %12 = sbr.rel (!%p10_p12) target bundleno = 3 (0x3), region = 160 }

// kernel: fuse_backbone_forward.24
= control target key start
LH: loop header
LB: loop body
LE: loop exit
PB: predicated region body
PF: predicated region fallthrough
CT: control target
= control target key end

     0   :  { %s294_s1 = inlined_call_operand.vmem [shape: bf16[128,128], index: 1, kind: input, shape index: {}]   ;;  %s295_s2 = inlined_call_operand.vmem [shape: f32[1,128], index: 2, kind: input, shape index: {}]   ;;  %s296_s0 = inlined_call_operand.vmem [shape: f32[32,128], index: 0, kind: input, shape index: {}]   ;;  %s297_s3 = inlined_call_operand.vmem [shape: f32[32,128], index: 3, kind: input, shape index: {}]   ;;  %s298_s4 = inlined_call_operand.vmem [shape: f32[32,128], index: 4, kind: output, shape index: {}]  }
   0x1   :  { %v196_v0 = vld [vmem:[%s294_s1 + $0x38] sm:$0xff]  ;;  %v195_v1 = vld [vmem:[%s294_s1 + $0x30] sm:$0xff]  ;;  %v194_v2 = vld [vmem:[%s294_s1 + $0x28] sm:$0xff] }
   0x2   :  { %99 = vmatpush.bf16.msra.mxu0 %v196_v0  ;;  %197 = vmatpush.bf16.msra.mxu1 %v196_v0  ;;  %v193_v3 = vld [vmem:[%s294_s1 + $0x20] sm:$0xff]  ;;  %v192_v4 = vld [vmem:[%s294_s1 + $0x18] sm:$0xff]  ;;  %v191_v5 = vld [vmem:[%s294_s1 + $0x10] sm:$0xff] }
   0x3   :  { %v190_v6 = vld [vmem:[%s294_s1 + $0x8] sm:$0xff]  ;;  %v189_v7 = vld [vmem:[%s294_s1] sm:$0xff]  ;;  %v31_v10 = vld [vmem:[%s296_s0 + $0x10] sm:$0xff] }
   0x4   :  { %v29_v8 = vld [vmem:[%s296_s0] sm:$0xff]  ;;  %v30_v9 = vld [vmem:[%s296_s0 + $0x8] sm:$0xff]  ;;  %v32_v11 = vld [vmem:[%s296_s0 + $0x18] sm:$0xff] }
   0x5   :  { %v33_v12 = vpack.c.bf16 %v30_v9, %v29_v8  ;;  %v34_v13 = vpack.c.bf16 %v32_v11, %v31_v10  ;;  %v205_v14 = vld [vmem:[%s295_s2] ss:$0 sm:$0xff]  ;;  %v143_v18 = vld [vmem:[%s297_s3 + $0x10] sm:$0xff]  ;;  %v142_v24 = vld [vmem:[%s297_s3 + $0x8] sm:$0xff] }
   0x6   :  { %100 = vmatpush.bf16.msra.mxu0 %v195_v1  ;;  %198 = vmatpush.bf16.msra.mxu1 %v195_v1  ;;  %v141_v16 = vld [vmem:[%s297_s3] sm:$0xff]  ;;  %v144_v26 = vld [vmem:[%s297_s3 + $0x18] sm:$0xff] }
   0xa   :  { %101 = vmatpush.bf16.msra.mxu0 %v194_v2  ;;  %199 = vmatpush.bf16.msra.mxu1 %v194_v2 }
   0xe   :  { %102 = vmatpush.bf16.msra.mxu0 %v193_v3  ;;  %200 = vmatpush.bf16.msra.mxu1 %v193_v3 }
  0x12   :  { %103 = vmatpush.bf16.msra.mxu0 %v192_v4  ;;  %201 = vmatpush.bf16.msra.mxu1 %v192_v4 }
  0x16   :  { %104 = vmatpush.bf16.msra.mxu0 %v191_v5  ;;  %202 = vmatpush.bf16.msra.mxu1 %v191_v5 }
  0x1a   :  { %105 = vmatpush.bf16.msra.mxu0 %v190_v6  ;;  %203 = vmatpush.bf16.msra.mxu1 %v190_v6 }
  0x1e   :  { %106 = vmatpush.bf16.msra.mxu0 %v189_v7  ;;  %204 = vmatpush.bf16.msra.mxu1 %v189_v7 }
  0x21   :  { %107 = vmatmul.bf16.vlgmr.msra.gmra.mxu0 %v33_v12  ;;  %112 = vmatmul.bf16.vlgmr.msra.gmra.mxu1 %v34_v13 }
  0x9e   :  { %v108_v15 = vpop.f32.mrf.mxu0  ;;  %v113_v17 = vpop.f32.mrf.mxu1 }
  0x9f   :  { %v137_v19 = vadd.f32 %v205_v14, %v108_v15  ;;  %v139_v20 = vadd.f32 %v205_v14, %v113_v17 }
  0xa1   :  { %v145_v21 = vadd.f32 %v141_v16, %v137_v19  ;;  %v147_v22 = vadd.f32 %v143_v18, %v139_v20 }
  0xa3   :  { %149 = vst [vmem:[%s298_s4] sm:$0xff] %v145_v21 }
  0xa4   :  { %151 = vst [vmem:[%s298_s4 + $0x10] sm:$0xff] %v147_v22 }
  0xa6   :  { %v110_v23 = vpop.f32.mrf.mxu0  ;;  %v115_v25 = vpop.f32.mrf.mxu1 }
  0xa7   :  { %v138_v27 = vadd.f32 %v205_v14, %v110_v23  ;;  %v140_v28 = vadd.f32 %v205_v14, %v115_v25 }
  0xa9   :  { %v146_v29 = vadd.f32 %v142_v24, %v138_v27  ;;  %v148_v30 = vadd.f32 %v144_v26, %v140_v28 }
  0xab   :  { %150 = vst [vmem:[%s298_s4 + $0x8] sm:$0xff] %v146_v29 }
  0xac   :  { %152 = vst [vmem:[%s298_s4 + $0x18] sm:$0xff] %v148_v30 }

// kernel: fuse_backbone_forward.23
= control target key start
LH: loop header
LB: loop body
LE: loop exit
PB: predicated region body
PF: predicated region fallthrough
CT: control target
= control target key end

     0   :  { %s809_s12 = smov 0   ;;  %s919_s0 = inlined_call_operand.vmem [shape: f32[2,3,4,16,32], index: 0, kind: input, shape index: {}, may-alias: {0,1,2}]   ;;  %s920_s1 = inlined_call_operand.vmem [shape: f32[2,3,4,16,32], index: 1, kind: input, shape index: {}, may-alias: {0,1,2}]   ;;  %s921_s2 = inlined_call_operand.vmem [shape: f32[2,3,4,16,32], index: 2, kind: input, shape index: {}, may-alias: {0,1,2}]   ;;  %s922_s3 = inlined_call_operand.vmem [shape: f32[2,4,16,32], index: 3, kind: output, shape index: {}]  }
   0x1 LB: > { %s703_s13 = sadd.s32 4294967295, %s787_s12   ;;  %p707_p0 = scmp.ge.s32.totalorder %s787_s12, 1  ;;  %s787_s12 = sphi %s809_s12, %s13_s12  }
   0x2   : > { %p159_p1 = scmp.lt.s32.totalorder %s787_s12, 3 }
   0x4   : > { %p160_p2 = pnand %p707_p0, %p159_p1 }
   0x5   : > { %p195_p3 = scmp.lt.s32.totalorder (!%p160_p2), %s703_s13, 1 }
   0x6   : > { %163 = sbr.rel (%p160_p2) target bundleno = 578 (0x242), region = 32 }
   0xb   : > { %s924_s13 = smov (!%p195_p3, %s703_s13), 1  ;;  %vm276_vm0 = vcmask 261120   ;;  %vm395_vm1 = vcmask 130048  }
   0xc   : > { %s820_s14 = smul.u32 192, %s924_s13  ;;  %s739_s24 = sshll.u32 %s924_s13, 6 }
   0xd   : > { %s216_s27 = scalar_lea.vmem %s922_s3, %s739_s24 }
   0xe   : > { %s659_s17 = scalar_lea.vmem %s920_s1, %s820_s14  ;;  %s830_s20 = scalar_lea.vmem %s919_s0, %s820_s14 }
   0xf   : > { %v713_v0 = vld [vmem:[%s659_s17 + $0x40] sm:$0xff]  ;;  %v714_v1 = vld [vmem:[%s659_s17 + $0x48] sm:$0xff]  ;;  %v719_v7 = vld [vmem:[%s659_s17 + $0x70] sm:$0xff]  ;;  %s663_s23 = scalar_lea.vmem %s921_s2, %s820_s14 }
  0x10   : > { %v717_v2 = vld [vmem:[%s659_s17 + $0x60] sm:$0xff]  ;;  %v242_v3 = vpack.c.bf16 %v713_v0, %v713_v0  ;;  %v243_v4 = vpack.c.bf16 %v714_v1, %v714_v1  ;;  %v718_v5 = vld [vmem:[%s659_s17 + $0x68] sm:$0xff]  ;;  %v720_v8 = vld [vmem:[%s659_s17 + $0x78] sm:$0xff]  ;;  %v248_v10 = vpack.c.bf16 %v719_v7, %v719_v7 }
  0x11   : > { %v246_v6 = vpack.c.bf16 %v717_v2, %v717_v2  ;;  %v247_v9 = vpack.c.bf16 %v718_v5, %v718_v5  ;;  %v249_v11 = vpack.c.bf16 %v720_v8, %v720_v8  ;;  %v715_v12 = vld [vmem:[%s659_s17 + $0x50] sm:$0xff]  ;;  %v716_v13 = vld [vmem:[%s659_s17 + $0x58] sm:$0xff]  ;;  %v218_v14 = vld [vmem:[%s830_s20] sm:$0xff] }
  0x12   : > { %v273_v15 = vunpack.c.l.b16 %v242_v3  ;;  %v274_v16 = vunpack.c.l.b16 %v243_v4  ;;  %v244_v18 = vpack.c.bf16 %v715_v12, %v715_v12  ;;  %v219_v19 = vld [vmem:[%s830_s20 + $0x8] sm:$0xff]  ;;  %v222_v20 = vld [vmem:[%s830_s20 + $0x20] sm:$0xff]  ;;  %v364_v22 = vunpack.c.l.b16 %v248_v10  ;;  %v224_v34 = vld [vmem:[%s830_s20 + $0x30] sm:$0xff] }
  0x13   : > { %v334_v17 = vunpack.c.l.b16 %v246_v6  ;;  %v335_v21 = vunpack.c.l.b16 %v247_v9  ;;  %v365_v23 = vunpack.c.l.b16 %v249_v11  ;;  %v245_v24 = vpack.c.bf16 %v716_v13, %v716_v13  ;;  %v223_v25 = vld [vmem:[%s830_s20 + $0x28] sm:$0xff]  ;;  %v225_v35 = vld [vmem:[%s830_s20 + $0x38] sm:$0xff]  ;;  %v220_v40 = vld [vmem:[%s830_s20 + $0x10] sm:$0xff] }
  0x14   : > { %v275_v26 = vpack.c.b16 %v274_v16, %v273_v15  ;;  %v304_v27 = vunpack.c.l.b16 %v244_v18  ;;  %v226_v28 = vpack.c.bf16 %v218_v14, %v218_v14  ;;  %v227_v29 = vpack.c.bf16 %v219_v19, %v219_v19  ;;  %v221_v41 = vld [vmem:[%s830_s20 + $0x18] sm:$0xff] }
  0x15   : > { %v336_v30 = vpack.c.b16 %v335_v21, %v334_v17  ;;  %v366_v31 = vpack.c.b16 %v365_v23, %v364_v22  ;;  %v305_v32 = vunpack.c.l.b16 %v245_v24  ;;  %v230_v33 = vpack.c.bf16 %v222_v20, %v222_v20 }
  0x16   : > { %v281_v36 = vsel %vm276_vm0, %v275_v26, 0  ;;  %v268_v37 = vunpack.c.l.b16 %v226_v28  ;;  %v269_v38 = vunpack.c.l.b16 %v227_v29  ;;  %v231_v39 = vpack.c.bf16 %v223_v25, %v223_v25 }
  0x17   : > { %290 = vmatpush.bf16.xpose.msra.mxu0 %v281_v36  ;;  %v341_v42 = vsel %vm276_vm0, %v336_v30, 0  ;;  %v371_v43 = vsel %vm276_vm0, %v366_v31, 0  ;;  %v306_v44 = vpack.c.b16 %v305_v32, %v304_v27  ;;  %v329_v45 = vunpack.c.l.b16 %v230_v33 }
  0x18   : > { %350 = vmatpush.bf16.xpose.msra.mxu2 %v341_v42  ;;  %380 = vmatpush.bf16.xpose.msra.mxu3 %v371_v43  ;;  %v330_v46 = vunpack.c.l.b16 %v231_v39  ;;  %v232_v47 = vpack.c.bf16 %v224_v34, %v224_v34  ;;  %v233_v48 = vpack.c.bf16 %v225_v35, %v225_v35  ;;  %v228_v50 = vpack.c.bf16 %v220_v40, %v220_v40 }
  0x19   : > { %v311_v49 = vsel %vm276_vm0, %v306_v44, 0  ;;  %v229_v51 = vpack.c.bf16 %v221_v41, %v221_v41  ;;  %v270_v52 = vpack.c.b16 %v269_v38, %v268_v37 }
  0x1a   : > { %320 = vmatpush.bf16.xpose.msra.mxu1 %v311_v49  ;;  %v359_v53 = vunpack.c.l.b16 %v232_v47  ;;  %v360_v54 = vunpack.c.l.b16 %v233_v48  ;;  %v331_v55 = vpack.c.b16 %v330_v46, %v329_v45  ;;  %v299_v56 = vunpack.c.l.b16 %v228_v50 }
  0x1b   : > { %v300_v57 = vunpack.c.l.b16 %v229_v51 }
  0x1c   : > { %v361_v58 = vpack.c.b16 %v360_v54, %v359_v53 }
  0x1d   : > { %v301_v59 = vpack.c.b16 %v300_v57, %v299_v56 }
  0x1e   : > { %729 = vmatmul.msk.bf16.vlgmr.msra.gmra.mxu0 %vm276_vm0, %v270_v52 }
  0x1f   : > { %731 = vmatmul.msk.bf16.vlgmr.msra.gmra.mxu2 %vm276_vm0, %v331_v55  ;;  %732 = vmatmul.msk.bf16.vlgmr.msra.gmra.mxu3 %vm276_vm0, %v361_v58 }
  0x21   : > { %730 = vmatmul.msk.bf16.vlgmr.msra.gmra.mxu1 %vm276_vm0, %v301_v59 }
  0x9b   : > { %v292_v60 = vpop.f32.mrf.mxu0 }
  0x9c   : > { %v387_v61 = vmul.f32 0.17677669, %v292_v60  ;;  %v725_v60 = vld [vmem:[%s663_s23 + $0xa0] sm:$0xff] }
  0x9e   : > { %v396_v62 = vsel %vm395_vm1, %v387_v61, -inf  ;;  %v322_v4 = vpop.f32.mrf.mxu1 }
  0x9f   : > { %397 = vmax.xlane.f32.xlu2 %v396_v62  ;;  %v389_v16 = vmul.f32 0.17677669, %v322_v4  ;;  %v727_v62 = vld [vmem:[%s663_s23 + $0xb0] sm:$0xff]  ;;  %v722_v4 = vld [vmem:[%s663_s23 + $0x88] sm:$0xff] }
  0xa1   : > { %v402_v18 = vsel %vm395_vm1, %v389_v16, -inf }
  0xa2   : > { %v352_v63 = vpop.f32.mrf.mxu2  ;;  %v382_v0 = vpop.f32.mrf.mxu3 }
  0xa3   : > { %v391_v1 = vmul.f32 0.17677669, %v352_v63  ;;  %v393_v2 = vmul.f32 0.17677669, %v382_v0  ;;  %v294_v3 = vpop.f32.mrf.mxu0  ;;  %v262_v63 = vpack.c.bf16 %v725_v60, %v725_v60 }
  0xa4   : > { %v388_v5 = vmul.f32 0.17677669, %v294_v3  ;;  %v721_v3 = vld [vmem:[%s663_s23 + $0x80] sm:$0xff] }
  0xa5   : > { %v414_v6 = vsel %vm395_vm1, %v393_v2, -inf  ;;  %v408_v7 = vsel %vm395_vm1, %v391_v1, -inf }
  0xa6   : > { %415 = vmax.xlane.f32.xlu1 %v414_v6  ;;  %409 = vmax.xlane.f32.xlu0 %v408_v7  ;;  %v399_v8 = vsel %vm395_vm1, %v388_v5, -inf  ;;  %v324_v15 = vpop.f32.mrf.mxu1  ;;  %v258_v6 = vpack.c.bf16 %v721_v3, %v721_v3  ;;  %v259_v7 = vpack.c.bf16 %v722_v4, %v722_v4 }
  0xa7   : > { %400 = vmax.xlane.f32.xlu2 %v399_v8  ;;  %v390_v17 = vmul.f32 0.17677669, %v324_v15  ;;  %v555_v8 = vunpack.c.l.b16 %v262_v63 }
  0xa9   : > { %v405_v19 = vsel %vm395_vm1, %v390_v17, -inf }
  0xaa   : > { %v354_v9 = vpop.f32.mrf.mxu2  ;;  %v384_v10 = vpop.f32.mrf.mxu3 }
  0xab   : > { %v392_v11 = vmul.f32 0.17677669, %v354_v9  ;;  %v394_v12 = vmul.f32 0.17677669, %v384_v10 }
  0xad   : > { %v417_v13 = vsel %vm395_vm1, %v394_v12, -inf  ;;  %v411_v14 = vsel %vm395_vm1, %v392_v11, -inf }
  0xae   : > { %418 = vmax.xlane.f32.xlu1 %v417_v13  ;;  %412 = vmax.xlane.f32.xlu0 %v411_v14  ;;  %v500_v13 = vunpack.c.l.b16 %v259_v7 }
  0xb6   : > { %403 = vmax.xlane.f32.xlu0 %v402_v18  ;;  %406 = vmax.xlane.f32.xlu1 %v405_v19  ;;  %v724_v18 = vld [vmem:[%s663_s23 + $0x98] sm:$0xff] }
 0x112   : > { %v398_v20 = vpop.xlane.xlu2 %397 }
 0x113   : > { %v420_v21 = vsub.f32 %v387_v61, %v398_v20  ;;  %v726_v61 = vld [vmem:[%s663_s23 + $0xa8] sm:$0xff]  ;;  %v261_v20 = vpack.c.bf16 %v724_v18, %v724_v18 }
 0x114   : > { %v263_v0 = vpack.c.bf16 %v726_v61, %v726_v61 }
 0x115   : > { %v428_v22 = vmul.f32 1.442695, %v420_v21 }
 0x116   : > { %v556_v9 = vunpack.c.l.b16 %v263_v0 }
 0x117   : > { %749 = vpow2.f32 %v428_v22  ;;  %v528_v22 = vunpack.c.l.b16 %v261_v20 }
 0x118   : > { %v557_v14 = vpack.c.b16 %v556_v9, %v555_v8 }
 0x119   : > { %v416_v23 = vpop.xlane.xlu1 %415  ;;  %v410_v24 = vpop.xlane.xlu0 %409 }
 0x11a   : > { %v426_v25 = vsub.f32 %v393_v2, %v416_v23  ;;  %v424_v26 = vsub.f32 %v391_v1, %v410_v24  ;;  %v401_v27 = vpop.xlane.xlu2 %400  ;;  %v728_v1 = vld [vmem:[%s663_s23 + $0xb8] sm:$0xff]  ;;  %v264_v2 = vpack.c.bf16 %v727_v62, %v727_v62  ;;  %569 = vmatpush.bf16.msrb.mxu2 %v557_v14 }
 0x11b   : > { %v421_v30 = vsub.f32 %v388_v5, %v401_v27  ;;  %v265_v5 = vpack.c.bf16 %v728_v1, %v728_v1 }
 0x11c   : > { %v440_v28 = vmul.f32 1.442695, %v426_v25  ;;  %v436_v29 = vmul.f32 1.442695, %v424_v26  ;;  %v583_v10 = vunpack.c.l.b16 %v264_v2 }
 0x11d   : > { %v856_v31 = vpop.eup %749  ;;  %v430_v33 = vmul.f32 1.442695, %v421_v30 }
 0x11e   : > { %751 = vpow2.f32 %v440_v28  ;;  %v444_v32 = vsel %vm395_vm1, %v856_v31, 0.0 }
 0x11f   : > { %753 = vpow2.f32 %v436_v29  ;;  %445 = vadd.xlane.f32.xlu0 %v444_v32 }
 0x120   : > { %755 = vpow2.f32 %v430_v33 }
 0x121   : > { %v419_v34 = vpop.xlane.xlu1 %418  ;;  %v413_v35 = vpop.xlane.xlu0 %412 }
 0x122   : > { %v427_v36 = vsub.f32 %v394_v12, %v419_v34  ;;  %v425_v37 = vsub.f32 %v392_v11, %v413_v35  ;;  %v584_v11 = vunpack.c.l.b16 %v265_v5  ;;  %v499_v12 = vunpack.c.l.b16 %v258_v6 }
 0x124   : > { %v860_v38 = vpop.eup %751  ;;  %v442_v39 = vmul.f32 1.442695, %v427_v36  ;;  %v438_v40 = vmul.f32 1.442695, %v425_v37  ;;  %v585_v15 = vpack.c.b16 %v584_v11, %v583_v10 }
 0x125   : > { %v862_v41 = vpop.eup %753  ;;  %v462_v42 = vsel %vm395_vm1, %v860_v38, 0.0 }
 0x126   : > { %757 = vpow2.f32 %v442_v39  ;;  %463 = vadd.xlane.f32.xlu1 %v462_v42  ;;  %v456_v43 = vsel %vm395_vm1, %v862_v41, 0.0  ;;  %v868_v46 = vpop.eup %755  ;;  %597 = vmatpush.bf16.msrb.mxu3 %v585_v15 }
 0x127   : > { %759 = vpow2.f32 %v438_v40  ;;  %457 = vadd.xlane.f32.xlu2 %v456_v43  ;;  %v447_v54 = vsel %vm395_vm1, %v868_v46, 0.0 }
 0x129   : > { %v404_v44 = vpop.xlane.xlu0 %403  ;;  %v407_v45 = vpop.xlane.xlu1 %406 }
 0x12a   : > { %v422_v47 = vsub.f32 %v389_v16, %v404_v44  ;;  %v423_v48 = vsub.f32 %v390_v17, %v407_v45  ;;  %v501_v16 = vpack.c.b16 %v500_v13, %v499_v12  ;;  %v723_v17 = vld [vmem:[%s663_s23 + $0x90] sm:$0xff] }
 0x12b   : > { %v260_v19 = vpack.c.bf16 %v723_v17, %v723_v17 }
 0x12c   : > { %v870_v49 = vpop.eup %757  ;;  %v432_v50 = vmul.f32 1.442695, %v422_v47  ;;  %v434_v51 = vmul.f32 1.442695, %v423_v48  ;;  %513 = vmatpush.bf16.msrb.mxu0 %v501_v16 }
 0x12d   : > { %v872_v52 = vpop.eup %759  ;;  %v465_v53 = vsel %vm395_vm1, %v870_v49, 0.0  ;;  %v527_v21 = vunpack.c.l.b16 %v260_v19 }
 0x12e   : > { %761 = vpow2.f32 %v432_v50  ;;  %v459_v55 = vsel %vm395_vm1, %v872_v52, 0.0  ;;  %448 = vadd.xlane.f32.xlu1 %v447_v54 }
 0x12f   : > { %763 = vpow2.f32 %v434_v51  ;;  %460 = vadd.xlane.f32.xlu0 %v459_v55  ;;  %466 = vadd.xlane.f32.xlu2 %v465_v53  ;;  %v529_v23 = vpack.c.b16 %v528_v22, %v527_v21 }
 0x131   : > { %541 = vmatpush.bf16.msrb.mxu1 %v529_v23 }
 0x134   : > { %v880_v56 = vpop.eup %761 }
 0x135   : > { %v882_v57 = vpop.eup %763  ;;  %v450_v58 = vsel %vm395_vm1, %v880_v56, 0.0 }
 0x136   : > { %v453_v59 = vsel %vm395_vm1, %v882_v57, 0.0 }
 0x137   : > { %454 = vadd.xlane.f32.xlu0 %v453_v59  ;;  %451 = vadd.xlane.f32.xlu2 %v450_v58 }
 0x192   : > { %v446_v24 = vpop.xlane.xlu0 %445 }
 0x193   : > { %765 = vrcp.f32 %v446_v24 }
 0x199   : > { %v464_v25 = vpop.xlane.xlu1 %463  ;;  %v766_v28 = vpop.eup %765 }
 0x19a   : > { %v458_v26 = vpop.xlane.xlu2 %457  ;;  %v476_v34 = vmul.f32 %v766_v28, %v856_v31 }
 0x19b   : > { %767 = vrcp.f32 %v458_v26 }
 0x19c   : > { %769 = vrcp.f32 %v464_v25  ;;  %v484_v40 = vpack.c.bf16 %v476_v34, %v476_v34 }
 0x1a1   : > { %v449_v27 = vpop.xlane.xlu1 %448  ;;  %v768_v32 = vpop.eup %767 }
 0x1a2   : > { %v461_v29 = vpop.xlane.xlu0 %460  ;;  %771 = vrcp.f32 %v449_v27  ;;  %v467_v30 = vpop.xlane.xlu2 %466  ;;  %v480_v35 = vmul.f32 %v768_v32, %v862_v41  ;;  %v494_v41 = vunpack.c.l.b16 %v484_v40 }
 0x1a3   : > { %773 = vrcp.f32 %v461_v29  ;;  %v770_v33 = vpop.eup %769 }
 0x1a4   : > { %775 = vrcp.f32 %v467_v30  ;;  %v482_v36 = vmul.f32 %v770_v33, %v860_v38  ;;  %v488_v44 = vpack.c.bf16 %v480_v35, %v480_v35 }
 0x1a6   : > { %v490_v50 = vpack.c.bf16 %v482_v36, %v482_v36  ;;  %v550_v55 = vunpack.c.l.b16 %v488_v44 }
 0x1a8   : > { %v772_v37 = vpop.eup %771  ;;  %v578_v59 = vunpack.c.l.b16 %v490_v50 }
 0x1a9   : > { %v774_v39 = vpop.eup %773  ;;  %v477_v42 = vmul.f32 %v772_v37, %v868_v46 }
 0x1aa   : > { %v776_v43 = vpop.eup %775  ;;  %v481_v45 = vmul.f32 %v774_v39, %v872_v52  ;;  %v455_v47 = vpop.xlane.xlu0 %454 }
 0x1ab   : > { %v452_v48 = vpop.xlane.xlu2 %451  ;;  %v485_v51 = vpack.c.bf16 %v477_v42, %v477_v42  ;;  %v483_v53 = vmul.f32 %v776_v43, %v870_v49  ;;  %777 = vrcp.f32 %v455_v47 }
 0x1ac   : > { %v489_v31 = vpack.c.bf16 %v481_v45, %v481_v45  ;;  %779 = vrcp.f32 %v452_v48 }
 0x1ad   : > { %v495_v38 = vunpack.c.l.b16 %v485_v51  ;;  %v491_v54 = vpack.c.bf16 %v483_v53, %v483_v53 }
 0x1ae   : > { %v551_v58 = vunpack.c.l.b16 %v489_v31 }
 0x1af   : > { %v579_v46 = vunpack.c.l.b16 %v491_v54  ;;  %v496_v60 = vpack.c.b16 %v495_v38, %v494_v41 }
 0x1b0   : > { %v552_v61 = vpack.c.b16 %v551_v58, %v550_v55 }
 0x1b1   : > { %v778_v52 = vpop.eup %777  ;;  %733 = vmatmul.msk.bf16.vlgmr.msrb.gmra.mxu0 %vm395_vm1, %v496_v60  ;;  %v580_v62 = vpack.c.b16 %v579_v46, %v578_v59 }
 0x1b2   : > { %v780_v63 = vpop.eup %779  ;;  %v479_v49 = vmul.f32 %v778_v52, %v882_v57  ;;  %735 = vmatmul.msk.bf16.vlgmr.msrb.gmra.mxu2 %vm395_vm1, %v552_v61 }
 0x1b3   : > { %v478_v0 = vmul.f32 %v780_v63, %v880_v56  ;;  %736 = vmatmul.msk.bf16.vlgmr.msrb.gmra.mxu3 %vm395_vm1, %v580_v62 }
 0x1b4   : > { %v487_v1 = vpack.c.bf16 %v479_v49, %v479_v49 }
 0x1b5   : > { %v486_v2 = vpack.c.bf16 %v478_v0, %v478_v0 }
 0x1b6   : > { %v523_v3 = vunpack.c.l.b16 %v487_v1 }
 0x1b7   : > { %v522_v4 = vunpack.c.l.b16 %v486_v2 }
 0x1b9   : > { %v524_v5 = vpack.c.b16 %v523_v3, %v522_v4 }
 0x1bb   : > { %734 = vmatmul.msk.bf16.vlgmr.msrb.gmra.mxu1 %vm395_vm1, %v524_v5 }
 0x22e   : > { %v515_v6 = vpop.f32.mrf.mxu0 }
 0x22f   : > { %604 = vst.msk [vmem:[%s216_s27] sm:$0xff] %vm276_vm0, %v515_v6 }
 0x235   : > { %v571_v57 = vpop.f32.mrf.mxu2 }
 0x236   : > { %608 = vst.msk [vmem:[%s216_s27 + $0x20] sm:$0xff] %vm276_vm0, %v571_v57  ;;  %v599_v56 = vpop.f32.mrf.mxu3  ;;  %v517_v7 = vpop.f32.mrf.mxu0 }
 0x237   : > { %610 = vst.msk [vmem:[%s216_s27 + $0x30] sm:$0xff] %vm276_vm0, %v599_v56 }
 0x238   : > { %605 = vst.msk [vmem:[%s216_s27 + $0x8] sm:$0xff] %vm276_vm0, %v517_v7  ;;  %v543_v8 = vpop.f32.mrf.mxu1 }
 0x239   : > { %606 = vst.msk [vmem:[%s216_s27 + $0x10] sm:$0xff] %vm276_vm0, %v543_v8 }
 0x23d   : > { %v573_v9 = vpop.f32.mrf.mxu2 }
 0x23e   : > { %609 = vst.msk [vmem:[%s216_s27 + $0x28] sm:$0xff] %vm276_vm0, %v573_v9  ;;  %v601_v10 = vpop.f32.mrf.mxu3 }
 0x23f   : > { %611 = vst.msk [vmem:[%s216_s27 + $0x38] sm:$0xff] %vm276_vm0, %v601_v10 }
 0x240   : > { %v545_v11 = vpop.f32.mrf.mxu1 }
 0x241   : > { %607 = vst.msk [vmem:[%s216_s27 + $0x18] sm:$0xff] %vm276_vm0, %v545_v11 }
 0x242 PF: > { %s13_s12 = sadd.s32 1, %s787_s12  }
 0x243   : > { %p10_p4 = scmp.ge.s32.totalorder %s13_s12, 4  }
 0x245   :  { %12 = sbr.rel (!%p10_p4) target bundleno = 1 (0x1), region = 68 }

// kernel: fuse_backbone_forward.26
= control target key start
LH: loop header
LB: loop body
LE: loop exit
PB: predicated region body
PF: predicated region fallthrough
CT: control target
= control target key end

     0   :  { %s834_s12 = smov 0   ;;  %s836_s13 = smov 0   ;;  %s948_s0 = inlined_call_operand.vmem [shape: f32[32,128], index: 0, kind: input, shape index: {}]   ;;  %s949_s1 = inlined_call_operand.vmem [shape: bf16[128,256], index: 1, kind: input, shape index: {}]   ;;  %s950_s2 = inlined_call_operand.vmem [shape: f32[1,256], index: 2, kind: input, shape index: {}]   ;;  %s951_s3 = inlined_call_operand.vmem [shape: f32[32,256], index: 3, kind: output, shape index: {}]  }
   0x1   :  { %s838_s14 = smov 0   ;;  %s840_s15 = smov 0  }
   0x2   :  { %s842_s16 = smov 0  }
   0x3 LB: > { %s28_s17 = sadd.s32 1, %s808_s15  ;;  %s663_s18 = sadd.s32 4294967295, %s812_s16   ;;  %s812_s16 = sphi %s842_s16, %s13_s16   ;;  %s808_s15 = sphi %s840_s15, %s956_s15   ;;  %s804_s14 = sphi %s838_s14, %s955_s14   ;;  %s800_s13 = sphi %s836_s13, %s954_s13   ;;  %s796_s12 = sphi %s834_s12, %s953_s12  }
   0x4   : > { %p30_p0 = scmp.ge.s32.totalorder %s28_s17, 2  ;;  %p76_p1 = scmp.ne.s32.totalorder %s800_s13, %s796_s12 }
   0x5   : > { %p77_p2 = scmp.eq.s32.totalorder %s812_s16, 0  ;;  %p134_p4 = scmp.eq.s32.totalorder %s663_s18, 1 }
   0x6   : > { %s958_s17 = smov (%p30_p0, %s28_s17), 0  ;;  %s69_s20 = sadd.s32 1, %s800_s13 }
   0x7   : > { %p78_p3 = por %p77_p2, %p76_p1  ;;  %s65_s19 = ssub.s32 %s808_s15, %s958_s17 }
   0x8   : > { %p67_p5 = scmp.eq.s32.totalorder %s65_s19, 0  ;;  %p869_p6 = por %p134_p4, %p76_p1 }
   0x9   : > { %p667_p7 = scmp.ge.s32.totalorder %s812_s16, 2 }
   0xa   : > { %s874_s22 = scalar_select %p67_p5, %s800_s13, %s69_s20  }
   0xb   : > { %168 = sbr.rel (%p667_p7) target bundleno = 36 (0x24), region = 20 }
  0x10   : > { %171 = sbr.rel (!%p78_p3) target bundleno = 36 (0x24), region = 24  ;;  %s173_s23 = sand.u32 (%p78_p3), 1, %s800_s13  }
  0x11   : > { %s669_s24 = sshll.u32 (%p78_p3), %s808_s15, 2  ;;  %s668_s25 = sshll.u32 (%p78_p3), %s173_s23, 6 }
  0x12   : > { %s882_s28 = scalar_lea.vmem (%p78_p3), %s949_s1, %s669_s24  ;;  %s175_s29 = scalar_lea.vmem (%p78_p3), [#allocation3], %s668_s25 }
  0x13   : > { %v197_v0 = vld [vmem:[%s882_s28] sm:$0xf] (%p78_p3)  ;;  %v199_v1 = vld [vmem:[%s882_s28 + $0x8] sm:$0xf] (%p78_p3)  ;;  %v201_v2 = vld [vmem:[%s882_s28 + $0x10] sm:$0xf] (%p78_p3) }
  0x14   : > { %198 = vst [vmem:[%s175_s29] sm:$0xf] (%p78_p3), %v197_v0  ;;  %v203_v3 = vld [vmem:[%s882_s28 + $0x18] sm:$0xf] (%p78_p3)  ;;  %v205_v4 = vld [vmem:[%s882_s28 + $0x20] sm:$0xf] (%p78_p3) }
  0x15   : > { %200 = vst [vmem:[%s175_s29 + $0x4] sm:$0xf] %v199_v1  ;;  %v207_v5 = vld [vmem:[%s882_s28 + $0x28] sm:$0xf]  ;;  %v209_v6 = vld [vmem:[%s882_s28 + $0x30] sm:$0xf] }
  0x16   : > { %202 = vst [vmem:[%s175_s29 + $0x8] sm:$0xf] %v201_v2  ;;  %v211_v7 = vld [vmem:[%s882_s28 + $0x38] sm:$0xf]  ;;  %v213_v8 = vld [vmem:[%s882_s28 + $0x40] sm:$0xf] }
  0x17   : > { %204 = vst [vmem:[%s175_s29 + $0xc] sm:$0xf] %v203_v3  ;;  %v215_v9 = vld [vmem:[%s882_s28 + $0x48] sm:$0xf]  ;;  %v217_v10 = vld [vmem:[%s882_s28 + $0x50] sm:$0xf] }
  0x18   : > { %206 = vst [vmem:[%s175_s29 + $0x10] sm:$0xf] %v205_v4  ;;  %v219_v11 = vld [vmem:[%s882_s28 + $0x58] sm:$0xf]  ;;  %v221_v12 = vld [vmem:[%s882_s28 + $0x60] sm:$0xf] }
  0x19   : > { %208 = vst [vmem:[%s175_s29 + $0x14] sm:$0xf] %v207_v5  ;;  %v223_v13 = vld [vmem:[%s882_s28 + $0x68] sm:$0xf]  ;;  %v225_v14 = vld [vmem:[%s882_s28 + $0x70] sm:$0xf] }
  0x1a   : > { %210 = vst [vmem:[%s175_s29 + $0x18] sm:$0xf] %v209_v6  ;;  %v227_v15 = vld [vmem:[%s882_s28 + $0x78] sm:$0xf] }
  0x1b   : > { %212 = vst [vmem:[%s175_s29 + $0x1c] sm:$0xf] %v211_v7 }
  0x1c   : > { %214 = vst [vmem:[%s175_s29 + $0x20] sm:$0xf] %v213_v8 }
  0x1d   : > { %216 = vst [vmem:[%s175_s29 + $0x24] sm:$0xf] %v215_v9 }
  0x1e   : > { %218 = vst [vmem:[%s175_s29 + $0x28] sm:$0xf] %v217_v10 }
  0x1f   : > { %220 = vst [vmem:[%s175_s29 + $0x2c] sm:$0xf] %v219_v11 }
  0x20   : > { %222 = vst [vmem:[%s175_s29 + $0x30] sm:$0xf] %v221_v12 }
  0x21   : > { %224 = vst [vmem:[%s175_s29 + $0x34] sm:$0xf] %v223_v13 }
  0x22   : > { %226 = vst [vmem:[%s175_s29 + $0x38] sm:$0xf] %v225_v14 }
  0x23   : > { %228 = vst [vmem:[%s175_s29 + $0x3c] sm:$0xf] %v227_v15 }
  0x24 PF: > { %p670_p8 = scmp.ge.s32.totalorder %s812_s16, 1  ;;  %p289_p9 = scmp.lt.s32.totalorder %s812_s16, 3 }
  0x26   : > { %p290_p10 = pnand %p670_p8, %p289_p9 }
  0x27   : > { %s296_s30 = sand.u32 (!%p290_p10), 1, %s796_s12   ;;  %p339_p11 = scmp.lt.s32.totalorder (!%p290_p10), %s804_s14, 1 }
  0x28   : > { %293 = sbr.rel (%p290_p10) target bundleno = 244 (0xf4), region = 69  ;;  %s671_s4 = sshll.u32 (!%p290_p10), %s296_s30, 6 }
  0x29   : > { %s298_s5 = scalar_lea.vmem (!%p290_p10), [#allocation3], %s671_s4  ;;  %s672_s26 = sshll.u32 (!%p290_p10), %s296_s30, 5 }
  0x2a   : > { %s328_s27 = scalar_lea.vmem (!%p290_p10), [#allocation4], %s672_s26 }
  0x2d   : > { %v716_v16 = vld [vmem:[%s298_s5 + $0x38] sm:$0xff]  ;;  %s907_s6 = scalar_select %p339_p11, %s804_s14, 1  ;;  %v715_v17 = vld [vmem:[%s298_s5 + $0x30] sm:$0xff]  ;;  %v714_v18 = vld [vmem:[%s298_s5 + $0x28] sm:$0xff] }
  0x2e   : > { %425 = vmatpush.bf16.msra.mxu0 %v716_v16  ;;  %717 = vmatpush.bf16.msra.mxu1 %v716_v16  ;;  %v713_v19 = vld [vmem:[%s298_s5 + $0x20] sm:$0xff]  ;;  %v712_v20 = vld [vmem:[%s298_s5 + $0x18] sm:$0xff]  ;;  %v711_v21 = vld [vmem:[%s298_s5 + $0x10] sm:$0xff]  ;;  %s706_s12 = sshll.u32 (%p869_p6), %s804_s14, 3 }
  0x2f   : > { %s341_s9 = scalar_lea.vmem %s950_s2, %s907_s6  ;;  %v710_v22 = vld [vmem:[%s298_s5 + $0x8] sm:$0xff]  ;;  %v355_v23 = vld [vmem:[%s948_s0] sm:$0xff]  ;;  %v357_v26 = vld [vmem:[%s948_s0 + $0x10] sm:$0xff]  ;;  %s518_s30 = scalar_lea.vmem (%p869_p6), %s951_s3, %s706_s12 }
  0x30   : > { %v356_v24 = vld [vmem:[%s948_s0 + $0x8] sm:$0xff]  ;;  %v709_v25 = vld [vmem:[%s298_s5] sm:$0xff]  ;;  %v358_v27 = vld [vmem:[%s948_s0 + $0x18] sm:$0xff] }
  0x31   : > { %v359_v28 = vpack.c.bf16 %v356_v24, %v355_v23  ;;  %v360_v29 = vpack.c.bf16 %v358_v27, %v357_v26  ;;  %v765_v30 = vld [vmem:[%s341_s9] ss:$0 sm:$0xff] }
  0x32   : > { %426 = vmatpush.bf16.msra.mxu0 %v715_v17  ;;  %718 = vmatpush.bf16.msra.mxu1 %v715_v17 }
  0x36   : > { %427 = vmatpush.bf16.msra.mxu0 %v714_v18  ;;  %719 = vmatpush.bf16.msra.mxu1 %v714_v18 }
  0x3a   : > { %428 = vmatpush.bf16.msra.mxu0 %v713_v19  ;;  %720 = vmatpush.bf16.msra.mxu1 %v713_v19 }
  0x3e   : > { %429 = vmatpush.bf16.msra.mxu0 %v712_v20  ;;  %721 = vmatpush.bf16.msra.mxu1 %v712_v20 }
  0x42   : > { %430 = vmatpush.bf16.msra.mxu0 %v711_v21  ;;  %722 = vmatpush.bf16.msra.mxu1 %v711_v21 }
  0x46   : > { %431 = vmatpush.bf16.msra.mxu0 %v710_v22  ;;  %723 = vmatpush.bf16.msra.mxu1 %v710_v22 }
  0x4a   : > { %432 = vmatpush.bf16.msra.mxu0 %v709_v25  ;;  %724 = vmatpush.bf16.msra.mxu1 %v709_v25 }
  0x4d   : > { %433 = vmatmul.bf16.vlgmr.msra.gmra.mxu0 %v359_v28  ;;  %438 = vmatmul.bf16.vlgmr.msra.gmra.mxu1 %v360_v29 }
  0xca   : > { %v434_v31 = vpop.f32.mrf.mxu0  ;;  %v439_v32 = vpop.f32.mrf.mxu1 }
  0xcb   : > { %v463_v33 = vadd.f32 %v765_v30, %v434_v31  ;;  %v465_v34 = vadd.f32 %v765_v30, %v439_v32 }
  0xcd   : > { %v471_v35 = vmul.f32 0.044715, %v463_v33  ;;  %v473_v36 = vmul.f32 0.044715, %v465_v34  ;;  %v467_v59 = vmul.f32 0.5, %v463_v33  ;;  %v469_v63 = vmul.f32 0.5, %v465_v34 }
  0xcf   : > { %v475_v37 = vmul.f32 %v471_v35, %v463_v33  ;;  %v477_v38 = vmul.f32 %v473_v36, %v465_v34 }
  0xd1   : > { %v479_v39 = vmul.f32 %v475_v37, %v463_v33  ;;  %v481_v40 = vmul.f32 %v477_v38, %v465_v34 }
  0xd2   : > { %v436_v41 = vpop.f32.mrf.mxu0  ;;  %v441_v42 = vpop.f32.mrf.mxu1 }
  0xd3   : > { %v483_v43 = vadd.f32 %v479_v39, %v463_v33  ;;  %v485_v44 = vadd.f32 %v481_v40, %v465_v34  ;;  %v464_v45 = vadd.f32 %v765_v30, %v436_v41  ;;  %v466_v46 = vadd.f32 %v765_v30, %v441_v42 }
  0xd5   : > { %v487_v47 = vmul.f32 0.7978846, %v483_v43  ;;  %v489_v48 = vmul.f32 0.7978846, %v485_v44  ;;  %v472_v49 = vmul.f32 0.044715, %v464_v45 }
  0xd6   : > { %v474_v50 = vmul.f32 0.044715, %v466_v46  ;;  %v468_v5 = vmul.f32 0.5, %v464_v45  ;;  %v470_v7 = vmul.f32 0.5, %v466_v46 }
  0xd7   : > { %766 = vtanh.f32 %v487_v47  ;;  %v476_v51 = vmul.f32 %v472_v49, %v464_v45 }
  0xd8   : > { %768 = vtanh.f32 %v489_v48  ;;  %v478_v52 = vmul.f32 %v474_v50, %v466_v46 }
  0xd9   : > { %v480_v53 = vmul.f32 %v476_v51, %v464_v45 }
  0xda   : > { %v482_v54 = vmul.f32 %v478_v52, %v466_v46 }
  0xdb   : > { %v484_v55 = vadd.f32 %v480_v53, %v464_v45 }
  0xdc   : > { %v486_v56 = vadd.f32 %v482_v54, %v466_v46 }
  0xdd   : > { %v767_v57 = vpop.eup %766  ;;  %v488_v61 = vmul.f32 0.7978846, %v484_v55 }
  0xde   : > { %v769_v58 = vpop.eup %768  ;;  %v495_v60 = vadd.f32 1.0, %v767_v57  ;;  %v490_v62 = vmul.f32 0.7978846, %v486_v56 }
  0xdf   : > { %v497_v0 = vadd.f32 1.0, %v769_v58  ;;  %770 = vtanh.f32 %v488_v61 }
  0xe0   : > { %v499_v1 = vmul.f32 %v495_v60, %v467_v59  ;;  %772 = vtanh.f32 %v490_v62 }
  0xe1   : > { %v501_v2 = vmul.f32 %v497_v0, %v469_v63 }
  0xe2   : > { %503 = vst [vmem:[%s328_s27] sm:$0xff] %v499_v1 }
  0xe3   : > { %505 = vst [vmem:[%s328_s27 + $0x10] sm:$0xff] %v501_v2 }
  0xe5   : > { %v771_v3 = vpop.eup %770 }
  0xe6   : > { %v773_v4 = vpop.eup %772  ;;  %v496_v6 = vadd.f32 1.0, %v771_v3 }
  0xe7   : > { %v498_v8 = vadd.f32 1.0, %v773_v4  ;;  %513 = sbr.rel (!%p869_p6) target bundleno = 244 (0xf4), region = 85 }
  0xe8   : > { %v500_v9 = vmul.f32 %v496_v6, %v468_v5 }
  0xe9   : > { %v502_v10 = vmul.f32 %v498_v8, %v470_v7  ;;  %v553_v11 = vld [vmem:[%s328_s27] sm:$0xff] (%p869_p6) }
  0xea   : > { %504 = vst [vmem:[%s328_s27 + $0x8] sm:$0xff] %v500_v9  ;;  %v557_v13 = vld [vmem:[%s328_s27 + $0x10] sm:$0xff] (%p869_p6) }
  0xeb   : > { %506 = vst [vmem:[%s328_s27 + $0x18] sm:$0xff] %v502_v10 }
  0xec   : > { %554 = vst [vmem:[%s518_s30] sm:$0xff] %v553_v11 }
  0xed   : > { %558 = vst [vmem:[%s518_s30 + $0x20] sm:$0xff] %v557_v13 }
  0xf1   : > { %v555_v12 = vld [vmem:[%s328_s27 + $0x8] sm:$0xff] }
  0xf2   : > { %v559_v14 = vld [vmem:[%s328_s27 + $0x18] sm:$0xff]  ;;  %556 = vst [vmem:[%s518_s30 + $0x10] sm:$0xff] %v555_v12 }
  0xf3   : > { %560 = vst [vmem:[%s518_s30 + $0x30] sm:$0xff] %v559_v14 }
  0xf4 PF: > { %s13_s16 = sadd.s32 1, %s812_s16   ;;  %s953_s12 = smov %s800_s13 }
  0xf5   : > { %p10_p12 = scmp.ge.s32.totalorder %s13_s16, 4   ;;  %s954_s13 = smov %s874_s22 }
  0xf6   : > { %s955_s14 = smov %s808_s15  ;;  %s956_s15 = smov %s958_s17 }
  0xf7   :  { %12 = sbr.rel (!%p10_p12) target bundleno = 3 (0x3), region = 160 }

// kernel: fuse_backbone_forward.27
= control target key start
LH: loop header
LB: loop body
LE: loop exit
PB: predicated region body
PF: predicated region fallthrough
CT: control target
= control target key end

     0   :  { %s467_s1 = inlined_call_operand.vmem [shape: bf16[256,128], index: 1, kind: input, shape index: {}]   ;;  %s468_s0 = inlined_call_operand.vmem [shape: f32[32,256], index: 0, kind: input, shape index: {}]   ;;  %s469_s2 = inlined_call_operand.vmem [shape: f32[1,128], index: 2, kind: input, shape index: {}]   ;;  %s470_s3 = inlined_call_operand.vmem [shape: f32[32,128], index: 3, kind: input, shape index: {}]   ;;  %s471_s4 = inlined_call_operand.vmem [shape: f32[32,128], index: 4, kind: output, shape index: {}]  }
   0x1   :  { %v317_v0 = vld [vmem:[%s467_s1 + $0x38] sm:$0xff]  ;;  %v316_v2 = vld [vmem:[%s467_s1 + $0x30] sm:$0xff]  ;;  %v315_v4 = vld [vmem:[%s467_s1 + $0x28] sm:$0xff] }
   0x2   :  { %v325_v1 = vld [vmem:[%s467_s1 + $0x78] sm:$0xff]  ;;  %169 = vmatpush.bf16.msra.mxu0 %v317_v0  ;;  %326 = vmatpush.bf16.msra.mxu2 %v317_v0  ;;  %v324_v3 = vld [vmem:[%s467_s1 + $0x70] sm:$0xff]  ;;  %v323_v5 = vld [vmem:[%s467_s1 + $0x68] sm:$0xff] }
   0x3   :  { %188 = vmatpush.bf16.msra.mxu1 %v325_v1  ;;  %334 = vmatpush.bf16.msra.mxu3 %v325_v1  ;;  %v314_v6 = vld [vmem:[%s467_s1 + $0x20] sm:$0xff]  ;;  %v313_v8 = vld [vmem:[%s467_s1 + $0x18] sm:$0xff]  ;;  %v312_v10 = vld [vmem:[%s467_s1 + $0x10] sm:$0xff] }
   0x4   :  { %v322_v7 = vld [vmem:[%s467_s1 + $0x60] sm:$0xff]  ;;  %v321_v9 = vld [vmem:[%s467_s1 + $0x58] sm:$0xff]  ;;  %v320_v11 = vld [vmem:[%s467_s1 + $0x50] sm:$0xff] }
   0x5   :  { %v311_v12 = vld [vmem:[%s467_s1 + $0x8] sm:$0xff]  ;;  %v310_v14 = vld [vmem:[%s467_s1] sm:$0xff]  ;;  %v31_v17 = vld [vmem:[%s468_s0 + $0x10] sm:$0xff] }
   0x6   :  { %170 = vmatpush.bf16.msra.mxu0 %v316_v2  ;;  %327 = vmatpush.bf16.msra.mxu2 %v316_v2  ;;  %v319_v13 = vld [vmem:[%s467_s1 + $0x48] sm:$0xff]  ;;  %v318_v15 = vld [vmem:[%s467_s1 + $0x40] sm:$0xff]  ;;  %v35_v19 = vld [vmem:[%s468_s0 + $0x30] sm:$0xff] }
   0x7   :  { %189 = vmatpush.bf16.msra.mxu1 %v324_v3  ;;  %335 = vmatpush.bf16.msra.mxu3 %v324_v3  ;;  %v29_v16 = vld [vmem:[%s468_s0] sm:$0xff]  ;;  %v30_v20 = vld [vmem:[%s468_s0 + $0x8] sm:$0xff]  ;;  %v32_v21 = vld [vmem:[%s468_s0 + $0x18] sm:$0xff] }
   0x8   :  { %v33_v18 = vld [vmem:[%s468_s0 + $0x20] sm:$0xff]  ;;  %v34_v22 = vld [vmem:[%s468_s0 + $0x28] sm:$0xff]  ;;  %v36_v23 = vld [vmem:[%s468_s0 + $0x38] sm:$0xff]  ;;  %v37_v24 = vpack.c.bf16 %v31_v17, %v29_v16  ;;  %v38_v26 = vpack.c.bf16 %v32_v21, %v30_v20 }
   0x9   :  { %v39_v25 = vpack.c.bf16 %v35_v19, %v33_v18  ;;  %v40_v27 = vpack.c.bf16 %v36_v23, %v34_v22  ;;  %v342_v29 = vld [vmem:[%s469_s2] ss:$0 sm:$0xff]  ;;  %v232_v39 = vld [vmem:[%s470_s3 + $0x10] sm:$0xff]  ;;  %v231_v43 = vld [vmem:[%s470_s3 + $0x8] sm:$0xff] }
   0xa   :  { %171 = vmatpush.bf16.msra.mxu0 %v315_v4  ;;  %328 = vmatpush.bf16.msra.mxu2 %v315_v4  ;;  %v230_v32 = vld [vmem:[%s470_s3] sm:$0xff]  ;;  %v233_v50 = vld [vmem:[%s470_s3 + $0x18] sm:$0xff] }
   0xb   :  { %190 = vmatpush.bf16.msra.mxu1 %v323_v5  ;;  %336 = vmatpush.bf16.msra.mxu3 %v323_v5 }
   0xe   :  { %172 = vmatpush.bf16.msra.mxu0 %v314_v6  ;;  %329 = vmatpush.bf16.msra.mxu2 %v314_v6 }
   0xf   :  { %191 = vmatpush.bf16.msra.mxu1 %v322_v7  ;;  %337 = vmatpush.bf16.msra.mxu3 %v322_v7 }
  0x12   :  { %173 = vmatpush.bf16.msra.mxu0 %v313_v8  ;;  %330 = vmatpush.bf16.msra.mxu2 %v313_v8 }
  0x13   :  { %192 = vmatpush.bf16.msra.mxu1 %v321_v9  ;;  %338 = vmatpush.bf16.msra.mxu3 %v321_v9 }
  0x16   :  { %174 = vmatpush.bf16.msra.mxu0 %v312_v10  ;;  %331 = vmatpush.bf16.msra.mxu2 %v312_v10 }
  0x17   :  { %193 = vmatpush.bf16.msra.mxu1 %v320_v11  ;;  %339 = vmatpush.bf16.msra.mxu3 %v320_v11 }
  0x1a   :  { %175 = vmatpush.bf16.msra.mxu0 %v311_v12  ;;  %332 = vmatpush.bf16.msra.mxu2 %v311_v12 }
  0x1b   :  { %194 = vmatpush.bf16.msra.mxu1 %v319_v13  ;;  %340 = vmatpush.bf16.msra.mxu3 %v319_v13 }
  0x1e   :  { %176 = vmatpush.bf16.msra.mxu0 %v310_v14  ;;  %333 = vmatpush.bf16.msra.mxu2 %v310_v14 }
  0x1f   :  { %195 = vmatpush.bf16.msra.mxu1 %v318_v15  ;;  %341 = vmatpush.bf16.msra.mxu3 %v318_v15 }
  0x21   :  { %177 = vmatmul.bf16.vlgmr.msra.gmra.mxu0 %v37_v24  ;;  %182 = vmatmul.bf16.vlgmr.msra.gmra.mxu2 %v39_v25 }
  0x22   :  { %196 = vmatmul.bf16.vlgmr.msra.gmra.mxu1 %v38_v26  ;;  %201 = vmatmul.bf16.vlgmr.msra.gmra.mxu3 %v40_v27 }
  0x9e   :  { %v178_v28 = vpop.f32.mrf.mxu0 }
  0x9f   :  { %v197_v30 = vpop.f32.mrf.mxu1 }
  0xa0   :  { %v198_v31 = vadd.f32 %v197_v30, %v178_v28 }
  0xa2   :  { %v226_v33 = vadd.f32 %v342_v29, %v198_v31 }
  0xa4   :  { %v234_v34 = vadd.f32 %v230_v32, %v226_v33  ;;  %v183_v35 = vpop.f32.mrf.mxu2 }
  0xa5   :  { %v202_v36 = vpop.f32.mrf.mxu3 }
  0xa6   :  { %238 = vst [vmem:[%s471_s4] sm:$0xff] %v234_v34  ;;  %v203_v37 = vadd.f32 %v202_v36, %v183_v35  ;;  %v180_v38 = vpop.f32.mrf.mxu0 }
  0xa7   :  { %v199_v40 = vpop.f32.mrf.mxu1 }
  0xa8   :  { %v228_v41 = vadd.f32 %v342_v29, %v203_v37  ;;  %v200_v42 = vadd.f32 %v199_v40, %v180_v38 }
  0xaa   :  { %v236_v44 = vadd.f32 %v232_v39, %v228_v41  ;;  %v227_v45 = vadd.f32 %v342_v29, %v200_v42 }
  0xac   :  { %240 = vst [vmem:[%s471_s4 + $0x10] sm:$0xff] %v236_v44  ;;  %v235_v46 = vadd.f32 %v231_v43, %v227_v45  ;;  %v185_v47 = vpop.f32.mrf.mxu2 }
  0xad   :  { %v204_v48 = vpop.f32.mrf.mxu3 }
  0xae   :  { %239 = vst [vmem:[%s471_s4 + $0x8] sm:$0xff] %v235_v46  ;;  %v205_v49 = vadd.f32 %v204_v48, %v185_v47 }
  0xb0   :  { %v229_v51 = vadd.f32 %v342_v29, %v205_v49 }
  0xb2   :  { %v237_v52 = vadd.f32 %v233_v50, %v229_v51 }
  0xb4   :  { %241 = vst [vmem:[%s471_s4 + $0x18] sm:$0xff] %v237_v52 }

</bundles_post_ra>
